<compile_context>
chip_gen: v6e
topology: v6e:2x2x1
jax: 0.10.0
libtpu: 0.0.40
codegen_flags: <defaults>
</compile_context>

<pallas_src>
import functools
import math

import jax
import jax.numpy as jnp
from jax.experimental import pallas as pl
from jax.experimental.pallas import tpu as pltpu


def _header_kernel(feat_ref, w_ref, b_ref, out_ref, *, inv_hw, return_logits):
    """Single fused step: pool -> 1x1 conv (matmul) -> bias -> (sigmoid)."""
    # feat_ref: [b_tile, C, HW]  (C on sublanes, HW on lanes)
    # Cast to f32 before reducing (keeps v5e off the bf16-decomposition path
    # and preserves accuracy); lane-axis reduce lands on the XLU slot.
    f = feat_ref[...].astype(jnp.float32)
    pooled = jnp.sum(f, axis=-1) * inv_hw                 # [b_tile, C], C on lanes

    # 1x1 conv == matmul over channels.  Tiny (M=b_tile, K=C, N=NC) — no MXU
    # tiling is warranted; this kernel is HBM/launch-overhead bound.
    logits = jnp.dot(pooled, w_ref[...].astype(jnp.float32),
                     preferred_element_type=jnp.float32)
    logits = logits + b_ref[...]                          # bias broadcast [1, NC]

    if return_logits:
        out_ref[...] = logits.astype(out_ref.dtype)
    else:
        out_ref[...] = jax.nn.sigmoid(logits).astype(out_ref.dtype)


def nih_resnet_header(features_nchw, weight_c_nc, bias, *, b_tile=None,
                      return_logits=False):
    """features_nchw: [B, C, H, W] (PyTorch layout). weight_c_nc: [C, NC]. bias: [NC]."""
    B, C, H, W = features_nchw.shape
    NC = weight_c_nc.shape[1]
    HW = H * W

    # Optional batch tiling (only useful for large serving batches on v7x's
    # two TensorCores); default is one block == whole batch == one grid step.
    if b_tile is None or b_tile > B:
        b_tile = B
    assert B % b_tile == 0, "batch dim must tile evenly"

    # Glue: NCHW -> [B, C, HW] is a pure reshape (no transpose, no HBM pass).
    feat = features_nchw.reshape(B, C, HW)
    bias2d = bias.reshape(1, NC).astype(jnp.float32)

    kernel = functools.partial(_header_kernel, inv_hw=1.0 / HW,
                               return_logits=return_logits)

    out = pl.pallas_call(
        kernel,
        out_shape=jax.ShapeDtypeStruct((B, NC), jnp.float32),
        grid_spec=pltpu.PrefetchScalarGridSpec(
            num_scalar_prefetch=0,
            grid=(B // b_tile,),
            in_specs=[
                pl.BlockSpec((b_tile, C, HW), lambda b: (b, 0, 0)),  # feature block
                pl.BlockSpec((C, NC), lambda b: (0, 0)),             # 1x1 conv weight
                pl.BlockSpec((1, NC), lambda b: (0, 0)),             # bias
            ],
            out_specs=pl.BlockSpec((b_tile, NC), lambda b: (b, 0)),
        ),
        compiler_params=pltpu.CompilerParams(
            dimension_semantics=("parallel",)),   # batch axis is independent
    )(feat, weight_c_nc, bias2d)
    return out


if __name__ == "__main__":
    key = jax.random.PRNGKey(0)
    kf, kw = jax.random.split(key)

    # Backbone (resnet50, out_indices=[4]) feature map: C = 2048, small spatial.
    B, C, Hf, Wf = 2, 2048, 7, 7
    NUM_CLASSES = 10
    features = jax.random.normal(kf, (B, C, Hf, Wf), dtype=jnp.float32)

    # Header 1x1 Conv2d(C, NUM_CLASSES) params, deterministic init.
    # PyTorch weight shape is [NC, C, 1, 1]; kernel uses its [C, NC] matmul form.
    bound = 1.0 / math.sqrt(C)
    w_torch = jax.random.uniform(kw, (NUM_CLASSES, C, 1, 1), dtype=jnp.float32,
                                 minval=-bound, maxval=bound)
    weight = jnp.transpose(w_torch[:, :, 0, 0], (1, 0))               # [C, NC]

    # nn.init.constant_(bias, -log((1 - 0.01) / 0.01))
    init_prob = 0.01
    bias = jnp.full((NUM_CLASSES,),
                    -jnp.log((1.0 - init_prob) / init_prob), jnp.float32)

    probs = nih_resnet_header(features, weight, bias, return_logits=False)
    probs = jax.block_until_ready(probs)

    # Pure-JAX reference of the header for a correctness sanity check.
    pooled_ref = jnp.mean(features, axis=(2, 3))                      # [B, C]
    ref = jax.nn.sigmoid(pooled_ref @ weight + bias[None, :])         # [B, NC]
    assert probs.shape == (B, NUM_CLASSES)
    assert jnp.allclose(probs, ref, atol=1e-5, rtol=1e-5), "mismatch vs reference"

    print("KERNEL_OK")
</pallas_src>

<mosaic_0001>
module attributes {stable_mosaic.version = 11 : i64} {
  func.func @_header_kernel(%arg0: i32, %arg1: memref<2x2048x49xf32, #tpu.memory_space<vmem>>, %arg2: memref<2048x10xf32, #tpu.memory_space<vmem>>, %arg3: memref<1x10xf32, #tpu.memory_space<vmem>>, %arg4: memref<2x10xf32, #tpu.memory_space<vmem>>) attributes {dimension_semantics = [#tpu.dimension_semantics<parallel>], iteration_bounds = array<i64: 1>, scalar_prefetch = 0 : i64, scratch_operands = 0 : i64, tpu.core_type = #tpu.core_type<tc>, window_params = [{transform_indices = @transform_0, window_bounds = array<i64: 2, 2048, 49>}, {pipeline_mode = #tpu.pipeline_mode<synchronous>, transform_indices = @transform_1, window_bounds = array<i64: 2048, 10>}, {pipeline_mode = #tpu.pipeline_mode<synchronous>, transform_indices = @transform_2, window_bounds = array<i64: 1, 10>}, {transform_indices = @transform_3, window_bounds = array<i64: 2, 10>}]} {
    %c0 = arith.constant 0 : index
    %c0_0 = arith.constant 0 : index
    %c0_1 = arith.constant 0 : index
    %0 = vector.load %arg1[%c0, %c0_0, %c0_1] : memref<2x2048x49xf32, #tpu.memory_space<vmem>>, vector<2x2048x49xf32>
    %cst = arith.constant dense<0.000000e+00> : vector<2x2048xf32>
    %1 = vector.multi_reduction <add>, %0, %cst [2] : vector<2x2048x49xf32> to vector<2x2048xf32>
    %cst_2 = arith.constant 0.0204081628 : f32
    %2 = vector.broadcast %cst_2 : f32 to vector<2x2048xf32>
    %3 = arith.mulf %1, %2 : vector<2x2048xf32>
    %c0_3 = arith.constant 0 : index
    %c0_4 = arith.constant 0 : index
    %4 = vector.load %arg2[%c0_3, %c0_4] : memref<2048x10xf32, #tpu.memory_space<vmem>>, vector<2048x10xf32>
    %cst_5 = arith.constant dense<0.000000e+00> : vector<2x10xf32>
    %5 = tpu.matmul %3, %4, %cst_5 {dimension_numbers = #tpu.dot_dimension_numbers<[1], [0], [0], [1], [0, 0, 1, 1], [], []>} : vector<2x2048xf32>, vector<2048x10xf32>, vector<2x10xf32> -> vector<2x10xf32>
    %c0_6 = arith.constant 0 : index
    %c0_7 = arith.constant 0 : index
    %6 = vector.load %arg3[%c0_6, %c0_7] : memref<1x10xf32, #tpu.memory_space<vmem>>, vector<1x10xf32>
    %7 = vector.broadcast %6 : vector<1x10xf32> to vector<2x10xf32>
    %8 = arith.addf %5, %7 : vector<2x10xf32>
    %9 = arith.negf %8 : vector<2x10xf32>
    %10 = math.exp %9 : vector<2x10xf32>
    %cst_8 = arith.constant 1.000000e+00 : f32
    %11 = vector.broadcast %cst_8 : f32 to vector<2x10xf32>
    %12 = arith.addf %11, %10 : vector<2x10xf32>
    %13 = arith.divf %11, %12 : vector<2x10xf32>
    %c0_9 = arith.constant 0 : index
    %c0_10 = arith.constant 0 : index
    %14 = vector.load %arg4[%c0_9, %c0_10] : memref<2x10xf32, #tpu.memory_space<vmem>>, vector<2x10xf32>
    tpu.vector_store %arg4[%c0_9, %c0_10], %13 {strides = array<i32>} : memref<2x10xf32, #tpu.memory_space<vmem>>, vector<2x10xf32>,
    return
  }
  func.func @transform_0(%arg0: i32) -> (i32, i32, i32) {
    %c0_i32 = arith.constant 0 : i32
    %c0_i32_0 = arith.constant 0 : i32
    %c0_i32_1 = arith.constant 0 : i32
    return %arg0, %c0_i32, %c0_i32_0 : i32, i32, i32
  }
  func.func @transform_1(%arg0: i32) -> (i32, i32) {
    %c0_i32 = arith.constant 0 : i32
    %c0_i32_0 = arith.constant 0 : i32
    %c0_i32_1 = arith.constant 0 : i32
    return %c0_i32, %c0_i32_0 : i32, i32
  }
  func.func @transform_2(%arg0: i32) -> (i32, i32) {
    %c0_i32 = arith.constant 0 : i32
    %c0_i32_0 = arith.constant 0 : i32
    %c0_i32_1 = arith.constant 0 : i32
    return %c0_i32, %c0_i32_0 : i32, i32
  }
  func.func @transform_3(%arg0: i32) -> (i32, i32) {
    %c0_i32 = arith.constant 0 : i32
    %c0_i32_0 = arith.constant 0 : i32
    return %arg0, %c0_i32 : i32, i32
  }
}

</mosaic_0001>

<bundles_post_ra>
// kernel: tpu_custom_call.1
= control target key start
LH: loop header
LB: loop body
LE: loop exit
PB: predicated region body
PF: predicated region fallthrough
CT: control target
= control target key end

     0   :  { %vm527_vm0 = vcmask 400384   ;;  %s11159_s0 = inlined_call_operand.vmem [shape: f32[2,2048,49], index: 0, kind: input, shape index: {}]   ;;  %s11160_s1 = inlined_call_operand.vmem [shape: f32[2048,10], index: 1, kind: input, shape index: {}]   ;;  %s11161_s2 = inlined_call_operand.vmem [shape: f32[1,10], index: 2, kind: input, shape index: {}]   ;;  %s11162_s3 = inlined_call_operand.hbm [shape: f32[2,10], index: 3, kind: output, shape index: {}]  }
   0x1   :  { %v17_v0 = vld [vmem:[%s11159_s0 + $0x10] sm:$0xff]  ;;  %v15_v1 = vld [vmem:[%s11159_s0] sm:$0xff]  ;;  %v18_v2 = vld [vmem:[%s11159_s0 + $0x18] sm:$0xff] }
   0x2   :  { %v534_v3 = vsel %vm527_vm0, %v17_v0, 0.0  ;;  %v528_v4 = vsel %vm527_vm0, %v15_v1, 0.0  ;;  %v16_v5 = vld [vmem:[%s11159_s0 + $0x8] sm:$0xff]  ;;  %v537_v6 = vsel %vm527_vm0, %v18_v2, 0.0  ;;  %v19_v9 = vld [vmem:[%s11159_s0 + $0x20] sm:$0xff]  ;;  %v22_v12 = vld [vmem:[%s11159_s0 + $0x38] sm:$0xff] }
   0x3   :  { %535 = vadd.xlane.f32.xlu1 %v534_v3  ;;  %529 = vadd.xlane.f32.xlu0 %v528_v4  ;;  %v531_v7 = vsel %vm527_vm0, %v16_v5, 0.0  ;;  %v20_v8 = vld [vmem:[%s11159_s0 + $0x28] sm:$0xff]  ;;  %v540_v11 = vsel %vm527_vm0, %v19_v9, 0.0  ;;  %v21_v13 = vld [vmem:[%s11159_s0 + $0x30] sm:$0xff]  ;;  %v549_v14 = vsel %vm527_vm0, %v22_v12, 0.0  ;;  %v23_v17 = vld [vmem:[%s11159_s0 + $0x40] sm:$0xff] }
   0x4   :  { %v543_v10 = vsel %vm527_vm0, %v20_v8, 0.0  ;;  %v546_v15 = vsel %vm527_vm0, %v21_v13, 0.0  ;;  %v24_v16 = vld [vmem:[%s11159_s0 + $0x48] sm:$0xff]  ;;  %v552_v19 = vsel %vm527_vm0, %v23_v17, 0.0  ;;  %v26_v20 = vld [vmem:[%s11159_s0 + $0x58] sm:$0xff]  ;;  %v25_v21 = vld [vmem:[%s11159_s0 + $0x50] sm:$0xff] }
   0x5   :  { %v555_v18 = vsel %vm527_vm0, %v24_v16, 0.0  ;;  %v561_v22 = vsel %vm527_vm0, %v26_v20, 0.0  ;;  %v558_v23 = vsel %vm527_vm0, %v25_v21, 0.0  ;;  %v28_v24 = vld [vmem:[%s11159_s0 + $0x68] sm:$0xff]  ;;  %v27_v25 = vld [vmem:[%s11159_s0 + $0x60] sm:$0xff]  ;;  %v30_v28 = vld [vmem:[%s11159_s0 + $0x78] sm:$0xff] }
   0x6   :  { %v567_v26 = vsel %vm527_vm0, %v28_v24, 0.0  ;;  %v564_v27 = vsel %vm527_vm0, %v27_v25, 0.0  ;;  %v29_v29 = vld [vmem:[%s11159_s0 + $0x70] sm:$0xff]  ;;  %v573_v30 = vsel %vm527_vm0, %v30_v28, 0.0 }
   0x7   :  { %538 = vadd.xlane.f32.xlu1 %v537_v6  ;;  %532 = vadd.xlane.f32.xlu0 %v531_v7  ;;  %v570_v31 = vsel %vm527_vm0, %v29_v29, 0.0 }
   0xb   :  { %544 = vadd.xlane.f32.xlu1 %v543_v10  ;;  %541 = vadd.xlane.f32.xlu0 %v540_v11 }
   0xf   :  { %550 = vadd.xlane.f32.xlu1 %v549_v14  ;;  %547 = vadd.xlane.f32.xlu0 %v546_v15 }
  0x13   :  { %556 = vadd.xlane.f32.xlu1 %v555_v18  ;;  %553 = vadd.xlane.f32.xlu0 %v552_v19 }
  0x17   :  { %562 = vadd.xlane.f32.xlu1 %v561_v22  ;;  %559 = vadd.xlane.f32.xlu0 %v558_v23 }
  0x1b   :  { %568 = vadd.xlane.f32.xlu1 %v567_v26  ;;  %565 = vadd.xlane.f32.xlu0 %v564_v27 }
  0x1c   :  { %8 = vsyncpa [#allocation3], 0  ;;  %v32_v32 = vld [vmem:[%s11159_s0 + $0x88] sm:$0xff]  ;;  %v31_v33 = vld [vmem:[%s11159_s0 + $0x80] sm:$0xff]  ;;  %vm3362_vm1 = vcmask 130112   ;;  %vm3369_vm2 = vcmask 195712  }
  0x1d   :  { %v579_v34 = vsel %vm527_vm0, %v32_v32, 0.0  ;;  %v576_v35 = vsel %vm527_vm0, %v31_v33, 0.0  ;;  %v34_v36 = vld [vmem:[%s11159_s0 + $0x98] sm:$0xff]  ;;  %v33_v37 = vld [vmem:[%s11159_s0 + $0x90] sm:$0xff]  ;;  %v36_v40 = vld [vmem:[%s11159_s0 + $0xa8] sm:$0xff]  ;;  %vm3376_vm3 = vcmask 261312  }
  0x1e   :  { %v585_v38 = vsel %vm527_vm0, %v34_v36, 0.0  ;;  %v582_v39 = vsel %vm527_vm0, %v33_v37, 0.0  ;;  %v35_v41 = vld [vmem:[%s11159_s0 + $0xa0] sm:$0xff]  ;;  %v591_v42 = vsel %vm527_vm0, %v36_v40, 0.0  ;;  %v38_v44 = vld [vmem:[%s11159_s0 + $0xb8] sm:$0xff]  ;;  %v37_v45 = vld [vmem:[%s11159_s0 + $0xb0] sm:$0xff] }
  0x1f   :  { %574 = vadd.xlane.f32.xlu1 %v573_v30  ;;  %571 = vadd.xlane.f32.xlu0 %v570_v31  ;;  %v588_v43 = vsel %vm527_vm0, %v35_v41, 0.0  ;;  %v597_v46 = vsel %vm527_vm0, %v38_v44, 0.0  ;;  %v594_v47 = vsel %vm527_vm0, %v37_v45, 0.0  ;;  %v40_v48 = vld [vmem:[%s11159_s0 + $0xc8] sm:$0xff]  ;;  %v39_v49 = vld [vmem:[%s11159_s0 + $0xc0] sm:$0xff]  ;;  %v42_v52 = vld [vmem:[%s11159_s0 + $0xd8] sm:$0xff] }
  0x20   :  { %v603_v50 = vsel %vm527_vm0, %v40_v48, 0.0  ;;  %v600_v51 = vsel %vm527_vm0, %v39_v49, 0.0  ;;  %v41_v53 = vld [vmem:[%s11159_s0 + $0xd0] sm:$0xff]  ;;  %v609_v54 = vsel %vm527_vm0, %v42_v52, 0.0  ;;  %v44_v56 = vld [vmem:[%s11159_s0 + $0xe8] sm:$0xff]  ;;  %v43_v57 = vld [vmem:[%s11159_s0 + $0xe0] sm:$0xff] }
  0x21   :  { %v606_v55 = vsel %vm527_vm0, %v41_v53, 0.0  ;;  %v615_v58 = vsel %vm527_vm0, %v44_v56, 0.0  ;;  %v612_v59 = vsel %vm527_vm0, %v43_v57, 0.0  ;;  %v46_v60 = vld [vmem:[%s11159_s0 + $0xf8] sm:$0xff]  ;;  %v45_v61 = vld [vmem:[%s11159_s0 + $0xf0] sm:$0xff]  ;;  %v48_v0 = vld [vmem:[%s11159_s0 + $0x108] sm:$0xff] }
  0x22   :  { %v621_v62 = vsel %vm527_vm0, %v46_v60, 0.0  ;;  %v618_v63 = vsel %vm527_vm0, %v45_v61, 0.0  ;;  %v47_v1 = vld [vmem:[%s11159_s0 + $0x100] sm:$0xff]  ;;  %v627_v2 = vsel %vm527_vm0, %v48_v0, 0.0  ;;  %v50_v4 = vld [vmem:[%s11159_s0 + $0x118] sm:$0xff]  ;;  %v49_v5 = vld [vmem:[%s11159_s0 + $0x110] sm:$0xff] }
  0x23   :  { %580 = vadd.xlane.f32.xlu1 %v579_v34  ;;  %577 = vadd.xlane.f32.xlu0 %v576_v35  ;;  %v624_v3 = vsel %vm527_vm0, %v47_v1, 0.0  ;;  %v633_v6 = vsel %vm527_vm0, %v50_v4, 0.0  ;;  %v630_v7 = vsel %vm527_vm0, %v49_v5, 0.0  ;;  %v52_v8 = vld [vmem:[%s11159_s0 + $0x128] sm:$0xff]  ;;  %v51_v9 = vld [vmem:[%s11159_s0 + $0x120] sm:$0xff]  ;;  %v54_v12 = vld [vmem:[%s11159_s0 + $0x138] sm:$0xff] }
  0x24   :  { %v639_v10 = vsel %vm527_vm0, %v52_v8, 0.0  ;;  %v636_v11 = vsel %vm527_vm0, %v51_v9, 0.0  ;;  %v53_v13 = vld [vmem:[%s11159_s0 + $0x130] sm:$0xff]  ;;  %v645_v14 = vsel %vm527_vm0, %v54_v12, 0.0  ;;  %v56_v16 = vld [vmem:[%s11159_s0 + $0x148] sm:$0xff]  ;;  %v55_v17 = vld [vmem:[%s11159_s0 + $0x140] sm:$0xff]  ;;  %v3351_v8 = vlaneseq }
  0x25   :  { %v642_v15 = vsel %vm527_vm0, %v53_v13, 0.0  ;;  %v651_v18 = vsel %vm527_vm0, %v56_v16, 0.0  ;;  %v648_v19 = vsel %vm527_vm0, %v55_v17, 0.0  ;;  %v58_v20 = vld [vmem:[%s11159_s0 + $0x158] sm:$0xff]  ;;  %v57_v21 = vld [vmem:[%s11159_s0 + $0x150] sm:$0xff]  ;;  %v60_v24 = vld [vmem:[%s11159_s0 + $0x168] sm:$0xff] }
  0x26   :  { %v657_v22 = vsel %vm527_vm0, %v58_v20, 0.0  ;;  %v654_v23 = vsel %vm527_vm0, %v57_v21, 0.0  ;;  %v59_v25 = vld [vmem:[%s11159_s0 + $0x160] sm:$0xff]  ;;  %v663_v26 = vsel %vm527_vm0, %v60_v24, 0.0  ;;  %v62_v28 = vld [vmem:[%s11159_s0 + $0x178] sm:$0xff]  ;;  %v61_v29 = vld [vmem:[%s11159_s0 + $0x170] sm:$0xff] }
  0x27   :  { %586 = vadd.xlane.f32.xlu1 %v585_v38  ;;  %583 = vadd.xlane.f32.xlu0 %v582_v39  ;;  %v660_v27 = vsel %vm527_vm0, %v59_v25, 0.0  ;;  %v669_v30 = vsel %vm527_vm0, %v62_v28, 0.0  ;;  %v666_v31 = vsel %vm527_vm0, %v61_v29, 0.0  ;;  %v64_v32 = vld [vmem:[%s11159_s0 + $0x188] sm:$0xff]  ;;  %v63_v33 = vld [vmem:[%s11159_s0 + $0x180] sm:$0xff]  ;;  %v66_v36 = vld [vmem:[%s11159_s0 + $0x198] sm:$0xff] }
  0x28   :  { %v675_v34 = vsel %vm527_vm0, %v64_v32, 0.0  ;;  %v672_v35 = vsel %vm527_vm0, %v63_v33, 0.0  ;;  %v65_v37 = vld [vmem:[%s11159_s0 + $0x190] sm:$0xff]  ;;  %v681_v38 = vsel %vm527_vm0, %v66_v36, 0.0  ;;  %v68_v40 = vld [vmem:[%s11159_s0 + $0x1a8] sm:$0xff]  ;;  %v67_v41 = vld [vmem:[%s11159_s0 + $0x1a0] sm:$0xff] }
  0x29   :  { %v678_v39 = vsel %vm527_vm0, %v65_v37, 0.0  ;;  %v70_v44 = vld [vmem:[%s11159_s0 + $0x1b8] sm:$0xff]  ;;  %v69_v45 = vld [vmem:[%s11159_s0 + $0x1b0] sm:$0xff]  ;;  %v72_v48 = vld [vmem:[%s11159_s0 + $0x1c8] sm:$0xff]  ;;  %v7136_v13 = vand.u32 127, %v3351_v8  ;;  %v7144_v16 = vshrl.u32 %v3351_v8, 7 }
  0x2a   :  { %v71_v49 = vld [vmem:[%s11159_s0 + $0x1c0] sm:$0xff]  ;;  %v74_v52 = vld [vmem:[%s11159_s0 + $0x1d8] sm:$0xff]  ;;  %v73_v53 = vld [vmem:[%s11159_s0 + $0x1d0] sm:$0xff]  ;;  %vm3383_vm4 = vcmask 326912   ;;  %vm3390_vm5 = vcmask 392512   ;;  %vm3397_vm6 = vcmask 458112  }
  0x2b   :  { %592 = vadd.xlane.f32.xlu1 %v591_v42  ;;  %589 = vadd.xlane.f32.xlu0 %v588_v43  ;;  %v687_v42 = vsel %vm527_vm0, %v68_v40, 0.0  ;;  %v684_v43 = vsel %vm527_vm0, %v67_v41, 0.0  ;;  %v76_v56 = vld [vmem:[%s11159_s0 + $0x1e8] sm:$0xff]  ;;  %v75_v57 = vld [vmem:[%s11159_s0 + $0x1e0] sm:$0xff]  ;;  %v78_v60 = vld [vmem:[%s11159_s0 + $0x1f8] sm:$0xff]  ;;  %v3371_v17 = vadd.s32 4294967272, %v7136_v13  ;;  %v7161_v28 = vsub.s32 %v7136_v13, %v7144_v16 }
  0x2c   :  { %v77_v61 = vld [vmem:[%s11159_s0 + $0x1f0] sm:$0xff]  ;;  %v80_v0 = vld [vmem:[%s11159_s0 + $0x208] sm:$0xff]  ;;  %v79_v1 = vld [vmem:[%s11159_s0 + $0x200] sm:$0xff]  ;;  %vm3404_vm7 = vcmask 523712   ;;  %vm3411_vm8 = vcmask 589312   ;;  %vm11176_vm9 = vcmask 654912  }
  0x2d   :  { %v82_v4 = vld [vmem:[%s11159_s0 + $0x218] sm:$0xff]  ;;  %v81_v5 = vld [vmem:[%s11159_s0 + $0x210] sm:$0xff]  ;;  %v84_v9 = vld [vmem:[%s11159_s0 + $0x228] sm:$0xff]  ;;  %11180 = vst [vmem:[#allocation5_spill] sm:$0xff] %v7161_v28  ;;  %vm11164_vm10 = vcmask 720512   ;;  %vm11165_vm11 = vcmask 786112  }
  0x2e   :  { %v88_v24 = vld [vmem:[%s11159_s0 + $0x248] sm:$0xff]  ;;  %v87_v25 = vld [vmem:[%s11159_s0 + $0x240] sm:$0xff]  ;;  %v89_v41 = vld [vmem:[%s11159_s0 + $0x250] sm:$0xff]  ;;  %vm11163_vm12 = vcmask 851712   ;;  %vm3446_vm13 = vcmask 917312   ;;  %vm3453_vm14 = vcmask 982912  }
  0x2f   :  { %598 = vadd.xlane.f32.xlu1 %v597_v46  ;;  %595 = vadd.xlane.f32.xlu0 %v594_v47  ;;  %v693_v46 = vsel %vm527_vm0, %v70_v44, 0.0  ;;  %v690_v47 = vsel %vm527_vm0, %v69_v45, 0.0  ;;  %v747_v36 = vsel %vm527_vm0, %v88_v24, 0.0  ;;  %v744_v37 = vsel %vm527_vm0, %v87_v25, 0.0 }
  0x30   :  { %v3399_v44 = vadd.s32 4294967240, %v7136_v13  ;;  %v3392_v45 = vadd.s32 4294967248, %v7136_v13  ;;  %vm3460_vm15 = vcmask 1048512  }
  0x33   :  { %604 = vadd.xlane.f32.xlu1 %v603_v50  ;;  %601 = vadd.xlane.f32.xlu0 %v600_v51  ;;  %v699_v50 = vsel %vm527_vm0, %v72_v48, 0.0  ;;  %v696_v51 = vsel %vm527_vm0, %v71_v49, 0.0 }
  0x37   :  { %610 = vadd.xlane.f32.xlu1 %v609_v54  ;;  %607 = vadd.xlane.f32.xlu0 %v606_v55  ;;  %v705_v54 = vsel %vm527_vm0, %v74_v52, 0.0  ;;  %v702_v55 = vsel %vm527_vm0, %v73_v53, 0.0  ;;  %v750_v53 = vsel %vm527_vm0, %v89_v41, 0.0 }
  0x3b   :  { %616 = vadd.xlane.f32.xlu1 %v615_v58  ;;  %613 = vadd.xlane.f32.xlu0 %v612_v59  ;;  %v711_v58 = vsel %vm527_vm0, %v76_v56, 0.0  ;;  %v708_v59 = vsel %vm527_vm0, %v75_v57, 0.0 }
  0x3f   :  { %622 = vadd.xlane.f32.xlu1 %v621_v62  ;;  %619 = vadd.xlane.f32.xlu0 %v618_v63  ;;  %v717_v62 = vsel %vm527_vm0, %v78_v60, 0.0  ;;  %v714_v63 = vsel %vm527_vm0, %v77_v61, 0.0  ;;  %v7203_v60 = vsub.s32 %v3399_v44, %v7144_v16  ;;  %v7206_v61 = vsub.s32 %v3392_v45, %v7144_v16 }
  0x43   :  { %628 = vadd.xlane.f32.xlu1 %v627_v2  ;;  %625 = vadd.xlane.f32.xlu0 %v624_v3  ;;  %v723_v2 = vsel %vm527_vm0, %v80_v0, 0.0  ;;  %v720_v3 = vsel %vm527_vm0, %v79_v1, 0.0 }
  0x47   :  { %634 = vadd.xlane.f32.xlu1 %v633_v6  ;;  %631 = vadd.xlane.f32.xlu0 %v630_v7  ;;  %v729_v6 = vsel %vm527_vm0, %v82_v4, 0.0  ;;  %v726_v7 = vsel %vm527_vm0, %v81_v5, 0.0 }
  0x4b   :  { %640 = vadd.xlane.f32.xlu1 %v639_v10  ;;  %637 = vadd.xlane.f32.xlu0 %v636_v11  ;;  %v83_v10 = vld [vmem:[%s11159_s0 + $0x220] sm:$0xff]  ;;  %v735_v11 = vsel %vm527_vm0, %v84_v9, 0.0 }
  0x4c   :  { %v732_v12 = vsel %vm527_vm0, %v83_v10, 0.0 }
  0x4f   :  { %646 = vadd.xlane.f32.xlu1 %v645_v14  ;;  %643 = vadd.xlane.f32.xlu0 %v642_v15  ;;  %v86_v14 = vld [vmem:[%s11159_s0 + $0x238] sm:$0xff]  ;;  %v85_v15 = vld [vmem:[%s11159_s0 + $0x230] sm:$0xff] }
  0x53   :  { %652 = vadd.xlane.f32.xlu1 %v651_v18  ;;  %649 = vadd.xlane.f32.xlu0 %v648_v19  ;;  %v3357_v18 = vadd.s32 4294967288, %v7136_v13  ;;  %v3364_v19 = vadd.s32 4294967280, %v7136_v13 }
  0x55   :  { %v7170_v32 = vsub.s32 %v3364_v19, %v7144_v16 }
  0x57   :  { %658 = vadd.xlane.f32.xlu1 %v657_v22  ;;  %655 = vadd.xlane.f32.xlu0 %v654_v23  ;;  %v741_v22 = vsel %vm527_vm0, %v86_v14, 0.0  ;;  %v738_v23 = vsel %vm527_vm0, %v85_v15, 0.0  ;;  %11183 = vst [vmem:[#allocation8_spill] sm:$0xff] %v7170_v32  ;;  %v3427_v15 = vadd.s32 4294967208, %v7136_v13 }
  0x5b   :  { %664 = vadd.xlane.f32.xlu1 %v663_v26  ;;  %661 = vadd.xlane.f32.xlu0 %v660_v27  ;;  %v3385_v26 = vadd.s32 4294967256, %v7136_v13  ;;  %v3378_v27 = vadd.s32 4294967264, %v7136_v13 }
  0x5f   :  { %670 = vadd.xlane.f32.xlu1 %v669_v30  ;;  %667 = vadd.xlane.f32.xlu0 %v666_v31  ;;  %v7164_v30 = vsub.s32 %v3371_v17, %v7144_v16  ;;  %v7167_v31 = vsub.s32 %v3357_v18, %v7144_v16 }
  0x61   :  { %11181 = vst [vmem:[#allocation6_spill] sm:$0xff] %v7164_v30  ;;  %11182 = vst [vmem:[#allocation7_spill] sm:$0xff] %v7167_v31 }
  0x63   :  { %676 = vadd.xlane.f32.xlu1 %v675_v34  ;;  %673 = vadd.xlane.f32.xlu0 %v672_v35 }
  0x67   :  { %682 = vadd.xlane.f32.xlu1 %v681_v38  ;;  %679 = vadd.xlane.f32.xlu0 %v678_v39  ;;  %v90_v38 = vld [vmem:[%s11159_s0 + $0x258] sm:$0xff] }
  0x68   :  { %v753_v52 = vsel %vm527_vm0, %v90_v38, 0.0 }
  0x6b   :  { %688 = vadd.xlane.f32.xlu1 %v687_v42  ;;  %685 = vadd.xlane.f32.xlu0 %v684_v43  ;;  %v7181_v42 = vsub.s32 %v3385_v26, %v7144_v16  ;;  %v7184_v43 = vsub.s32 %v3378_v27, %v7144_v16 }
  0x6d   :  { %11184 = vst [vmem:[#allocation9_spill] sm:$0xff] %v7184_v43 }
  0x6f   :  { %694 = vadd.xlane.f32.xlu1 %v693_v46  ;;  %691 = vadd.xlane.f32.xlu0 %v690_v47 }
  0x73   :  { %700 = vadd.xlane.f32.xlu1 %v699_v50  ;;  %697 = vadd.xlane.f32.xlu0 %v696_v51 }
  0x77   :  { %706 = vadd.xlane.f32.xlu1 %v705_v54  ;;  %703 = vadd.xlane.f32.xlu0 %v702_v55  ;;  %v92_v54 = vld [vmem:[%s11159_s0 + $0x268] sm:$0xff] }
  0x78   :  { %v759_v5 = vsel %vm527_vm0, %v92_v54, 0.0  ;;  %v3448_v54 = vadd.s32 4294967184, %v7136_v13 }
  0x7b   :  { %712 = vadd.xlane.f32.xlu1 %v711_v58  ;;  %709 = vadd.xlane.f32.xlu0 %v708_v59  ;;  %v91_v58 = vld [vmem:[%s11159_s0 + $0x260] sm:$0xff] }
  0x7f   :  { %718 = vadd.xlane.f32.xlu1 %v717_v62  ;;  %715 = vadd.xlane.f32.xlu0 %v714_v63  ;;  %v3413_v62 = vadd.s32 4294967224, %v7136_v13 }
  0x81   :  { %v7224_v14 = vsub.s32 %v3413_v62, %v7144_v16 }
  0x83   :  { %724 = vadd.xlane.f32.xlu1 %v723_v2  ;;  %721 = vadd.xlane.f32.xlu0 %v720_v3  ;;  %v3406_v2 = vadd.s32 4294967232, %v7136_v13 }
  0x85   :  { %v7230_v19 = vsub.s32 %v3406_v2, %v7144_v16 }
  0x87   :  { %730 = vadd.xlane.f32.xlu1 %v729_v6  ;;  %727 = vadd.xlane.f32.xlu0 %v726_v7  ;;  %v756_v6 = vsel %vm527_vm0, %v91_v58, 0.0  ;;  %v94_v7 = vld [vmem:[%s11159_s0 + $0x278] sm:$0xff]  ;;  %v3455_v58 = vadd.s32 4294967176, %v7136_v13 }
  0x8b   :  { %736 = vadd.xlane.f32.xlu1 %v735_v11  ;;  %733 = vadd.xlane.f32.xlu0 %v732_v12  ;;  %v93_v11 = vld [vmem:[%s11159_s0 + $0x270] sm:$0xff] }
  0x8c   :  { %v536_v20 = vpop.xlane.xlu1 %535  ;;  %v530_v21 = vpop.xlane.xlu0 %529  ;;  %v762_v24 = vsel %vm527_vm0, %v93_v11, 0.0 }
  0x8d   :  { %v2064_v29 = vmul.f32 0.020408163, %v530_v21  ;;  %v2066_v33 = vmul.f32 0.020408163, %v536_v20  ;;  %v3420_v20 = vadd.s32 4294967216, %v7136_v13 }
  0x8f   :  { %742 = vadd.xlane.f32.xlu1 %v741_v22  ;;  %739 = vadd.xlane.f32.xlu0 %v738_v23  ;;  %v3356_v46 = vrot.slane %v2064_v29, %v7161_v28  ;;  %v3368_v49 = vrot.slane %v2066_v33, %v7170_v32  ;;  %v765_v23 = vsel %vm527_vm0, %v94_v7, 0.0  ;;  %v96_v29 = vld [vmem:[%s11159_s0 + $0x288] sm:$0xff]  ;;  %v95_v33 = vld [vmem:[%s11159_s0 + $0x280] sm:$0xff] }
  0x90   :  { %v539_v34 = vpop.xlane.xlu1 %538  ;;  %v533_v35 = vpop.xlane.xlu0 %532  ;;  %v771_v45 = vsel %vm527_vm0, %v96_v29, 0.0 }
  0x91   :  { %v2067_v39 = vmul.f32 0.020408163, %v539_v34  ;;  %v2065_v40 = vmul.f32 0.020408163, %v533_v35  ;;  %v7244_v35 = vsub.s32 %v3427_v15, %v7144_v16 }
  0x93   :  { %v3375_v47 = vrot.slane %v2067_v39, %v7164_v30  ;;  %v3361_v48 = vrot.slane %v2065_v40, %v7167_v31  ;;  %748 = vadd.xlane.f32.xlu1 %v747_v36  ;;  %745 = vadd.xlane.f32.xlu0 %v744_v37  ;;  %v3441_v36 = vadd.s32 4294967192, %v7136_v13  ;;  %v7250_v39 = vsub.s32 %v3420_v20, %v7144_v16 }
  0x94   :  { %v545_v50 = vpop.xlane.xlu1 %544  ;;  %v542_v51 = vpop.xlane.xlu0 %541  ;;  %v3434_v40 = vadd.s32 4294967200, %v7136_v13 }
  0x95   :  { %v3363_v55 = vsel %vm3362_vm1, %v3361_v48, %v3356_v46  ;;  %v2069_v56 = vmul.f32 0.020408163, %v545_v50  ;;  %v2068_v57 = vmul.f32 0.020408163, %v542_v51  ;;  %v768_v46 = vsel %vm527_vm0, %v95_v33, 0.0  ;;  %v98_v50 = vld [vmem:[%s11159_s0 + $0x298] sm:$0xff] }
  0x96   :  { %v3370_v59 = vsel %vm3369_vm2, %v3368_v49, %v3363_v55  ;;  %v97_v51 = vld [vmem:[%s11159_s0 + $0x290] sm:$0xff] }
  0x97   :  { %v3389_v63 = vrot.slane %v2069_v56, %v7181_v42  ;;  %v3377_v0 = vsel %vm3376_vm3, %v3375_v47, %v3370_v59  ;;  %v3382_v1 = vrot.slane %v2068_v57, %v7184_v43  ;;  %754 = vadd.xlane.f32.xlu1 %v753_v52  ;;  %751 = vadd.xlane.f32.xlu0 %v750_v53 }
  0x98   :  { %v551_v3 = vpop.xlane.xlu1 %550  ;;  %v548_v4 = vpop.xlane.xlu0 %547  ;;  %v7264_v53 = vsub.s32 %v3441_v36, %v7144_v16  ;;  %v7270_v57 = vsub.s32 %v3434_v40, %v7144_v16  ;;  %v104_v36 = vld [vmem:[%s11159_s0 + $0x2c8] sm:$0xff] }
  0x99   :  { %v3384_v8 = vsel %vm3383_vm4, %v3382_v1, %v3377_v0  ;;  %v2071_v9 = vmul.f32 0.020408163, %v551_v3  ;;  %v2070_v10 = vmul.f32 0.020408163, %v548_v4  ;;  %v774_v0 = vsel %vm527_vm0, %v97_v51, 0.0  ;;  %v100_v4 = vld [vmem:[%s11159_s0 + $0x2a8] sm:$0xff] }
  0x9a   :  { %v3391_v12 = vsel %vm3390_vm5, %v3389_v63, %v3384_v8  ;;  %v777_v63 = vsel %vm527_vm0, %v98_v50, 0.0 }
  0x9b   :  { %v3403_v17 = vrot.slane %v2071_v9, %v7203_v60  ;;  %v3396_v18 = vrot.slane %v2070_v10, %v7206_v61  ;;  %760 = vadd.xlane.f32.xlu1 %v759_v5  ;;  %757 = vadd.xlane.f32.xlu0 %v756_v6  ;;  %v99_v5 = vld [vmem:[%s11159_s0 + $0x2a0] sm:$0xff]  ;;  %v7284_v6 = vsub.s32 %v3448_v54, %v7144_v16  ;;  %v105_v54 = vld [vmem:[%s11159_s0 + $0x2d0] sm:$0xff] }
  0x9c   :  { %v557_v21 = vpop.xlane.xlu1 %556  ;;  %v554_v22 = vpop.xlane.xlu0 %553  ;;  %v7289_v9 = vsub.s32 %v3455_v58, %v7144_v16  ;;  %v780_v15 = vsel %vm527_vm0, %v99_v5, 0.0  ;;  %v101_v16 = vld [vmem:[%s11159_s0 + $0x2b0] sm:$0xff] }
  0x9d   :  { %v3398_v25 = vsel %vm3397_vm6, %v3396_v18, %v3391_v12  ;;  %v2073_v26 = vmul.f32 0.020408163, %v557_v21  ;;  %v2072_v27 = vmul.f32 0.020408163, %v554_v22  ;;  %v783_v12 = vsel %vm527_vm0, %v100_v4, 0.0  ;;  %v102_v21 = vld [vmem:[%s11159_s0 + $0x2b8] sm:$0xff] }
  0x9e   :  { %v3405_v34 = vsel %vm3404_vm7, %v3403_v17, %v3398_v25  ;;  %v786_v29 = vsel %vm527_vm0, %v101_v16, 0.0  ;;  %v107_v4 = vld [vmem:[%s11159_s0 + $0x2e0] sm:$0xff] }
  0x9f   :  { %v3417_v37 = vrot.slane %v2073_v26, %v7224_v14  ;;  %v3410_v38 = vrot.slane %v2072_v27, %v7230_v19  ;;  %766 = vadd.xlane.f32.xlu1 %v765_v23  ;;  %763 = vadd.xlane.f32.xlu0 %v762_v24  ;;  %v789_v27 = vsel %vm527_vm0, %v102_v21, 0.0  ;;  %v109_v21 = vld [vmem:[%s11159_s0 + $0x2f0] sm:$0xff] }
  0xa0   :  { %v563_v41 = vpop.xlane.xlu1 %562  ;;  %v560_v44 = vpop.xlane.xlu0 %559 }
  0xa1   :  { %v3412_v47 = vsel %vm3411_vm8, %v3410_v38, %v3405_v34  ;;  %v2075_v48 = vmul.f32 0.020408163, %v563_v41  ;;  %v2074_v49 = vmul.f32 0.020408163, %v560_v44 }
  0xa2   :  { %v3419_v52 = vsel %vm11176_vm9, %v3417_v37, %v3412_v47  ;;  %v103_v37 = vld [vmem:[%s11159_s0 + $0x2c0] sm:$0xff]  ;;  %v795_v47 = vsel %vm527_vm0, %v104_v36, 0.0  ;;  %v112_v36 = vld [vmem:[%s11159_s0 + $0x308] sm:$0xff] }
  0xa3   :  { %v3431_v55 = vrot.slane %v2075_v48, %v7244_v35  ;;  %v3424_v56 = vrot.slane %v2074_v49, %v7250_v39  ;;  %772 = vadd.xlane.f32.xlu1 %v771_v45  ;;  %769 = vadd.xlane.f32.xlu0 %v768_v46  ;;  %v792_v48 = vsel %vm527_vm0, %v103_v37, 0.0  ;;  %v111_v37 = vld [vmem:[%s11159_s0 + $0x300] sm:$0xff] }
  0xa4   :  { %v569_v59 = vpop.xlane.xlu1 %568  ;;  %v566_v62 = vpop.xlane.xlu0 %565 }
  0xa5   :  { %v3426_v1 = vsel %vm11164_vm10, %v3424_v56, %v3419_v52  ;;  %v2077_v2 = vmul.f32 0.020408163, %v569_v59  ;;  %v2076_v3 = vmul.f32 0.020408163, %v566_v62  ;;  %v106_v52 = vld [vmem:[%s11159_s0 + $0x2d8] sm:$0xff] }
  0xa6   :  { %v3433_v13 = vsel %vm11165_vm11, %v3431_v55, %v3426_v1  ;;  %v801_v62 = vsel %vm527_vm0, %v106_v52, 0.0  ;;  %v114_v52 = vld [vmem:[%s11159_s0 + $0x318] sm:$0xff] }
  0xa7   :  { %v3445_v7 = vrot.slane %v2077_v2, %v7264_v53  ;;  %v3438_v8 = vrot.slane %v2076_v3, %v7270_v57  ;;  %778 = vadd.xlane.f32.xlu1 %v777_v63  ;;  %775 = vadd.xlane.f32.xlu0 %v774_v0  ;;  %v798_v63 = vsel %vm527_vm0, %v105_v54, 0.0  ;;  %v108_v3 = vld [vmem:[%s11159_s0 + $0x2e8] sm:$0xff]  ;;  %v113_v54 = vld [vmem:[%s11159_s0 + $0x310] sm:$0xff] }
  0xa8   :  { %v575_v10 = vpop.xlane.xlu1 %574  ;;  %v572_v11 = vpop.xlane.xlu0 %571 }
  0xa9   :  { %v3440_v17 = vsel %vm11163_vm12, %v3438_v8, %v3433_v13  ;;  %v2079_v18 = vmul.f32 0.020408163, %v575_v10  ;;  %v2078_v20 = vmul.f32 0.020408163, %v572_v11  ;;  %v807_v11 = vsel %vm527_vm0, %v108_v3, 0.0 }
  0xaa   :  { %v3447_v22 = vsel %vm3446_vm13, %v3445_v7, %v3440_v17 }
  0xab   :  { %v3459_v23 = vrot.slane %v2079_v18, %v7289_v9  ;;  %v3452_v24 = vrot.slane %v2078_v20, %v7284_v6  ;;  %784 = vadd.xlane.f32.xlu1 %v783_v12  ;;  %781 = vadd.xlane.f32.xlu0 %v780_v15  ;;  %v804_v12 = vsel %vm527_vm0, %v107_v4, 0.0  ;;  %v110_v20 = vld [vmem:[%s11159_s0 + $0x2f8] sm:$0xff]  ;;  %v116_v4 = vld [vmem:[%s11159_s0 + $0x328] sm:$0xff] }
  0xac   :  { %v581_v25 = vpop.xlane.xlu1 %580  ;;  %v578_v26 = vpop.xlane.xlu0 %577 }
  0xad   :  { %v2081_v33 = vmul.f32 0.020408163, %v581_v25  ;;  %v2080_v34 = vmul.f32 0.020408163, %v578_v26  ;;  %v3454_v38 = vsel %vm3453_vm14, %v3452_v24, %v3447_v22  ;;  %v813_v26 = vsel %vm527_vm0, %v110_v20, 0.0 }
  0xae   :  { %v7313_v40 = vsel %vm3460_vm15, %v3459_v23, %v3454_v38 }
  0xaf   :  { %v3469_v41 = vrot.slane %v2081_v33, %v7167_v31  ;;  %v3465_v44 = vrot.slane %v2080_v34, %v7161_v28  ;;  %790 = vadd.xlane.f32.xlu1 %v789_v27  ;;  %787 = vadd.xlane.f32.xlu0 %v786_v29  ;;  %v810_v27 = vsel %vm527_vm0, %v109_v21, 0.0  ;;  %v118_v21 = vld [vmem:[%s11159_s0 + $0x338] sm:$0xff] }
  0xb0   :  { %v587_v45 = vpop.xlane.xlu1 %586  ;;  %v584_v46 = vpop.xlane.xlu0 %583 }
  0xb1   :  { %v3470_v49 = vsel %vm3362_vm1, %v3469_v41, %v3465_v44  ;;  %v2083_v50 = vmul.f32 0.020408163, %v587_v45  ;;  %v2082_v51 = vmul.f32 0.020408163, %v584_v46 }
  0xb3   :  { %v3479_v55 = vrot.slane %v2083_v50, %v7164_v30  ;;  %v3474_v56 = vrot.slane %v2082_v51, %v7170_v32  ;;  %796 = vadd.xlane.f32.xlu1 %v795_v47  ;;  %793 = vadd.xlane.f32.xlu0 %v792_v48  ;;  %v819_v47 = vsel %vm527_vm0, %v112_v36, 0.0  ;;  %v816_v48 = vsel %vm527_vm0, %v111_v37, 0.0  ;;  %v120_v36 = vld [vmem:[%s11159_s0 + $0x348] sm:$0xff]  ;;  %v119_v37 = vld [vmem:[%s11159_s0 + $0x340] sm:$0xff] }
  0xb4   :  { %v593_v58 = vpop.xlane.xlu1 %592  ;;  %v590_v59 = vpop.xlane.xlu0 %589 }
  0xb5   :  { %v3475_v0 = vsel %vm3369_vm2, %v3474_v56, %v3470_v49  ;;  %v2085_v1 = vmul.f32 0.020408163, %v593_v58  ;;  %v2084_v2 = vmul.f32 0.020408163, %v590_v59 }
  0xb6   :  { %v3480_v5 = vsel %vm3376_vm3, %v3479_v55, %v3475_v0  ;;  %v822_v0 = vsel %vm527_vm0, %v113_v54, 0.0  ;;  %v122_v54 = vld [vmem:[%s11159_s0 + $0x358] sm:$0xff] }
  0xb7   :  { %v3489_v13 = vrot.slane %v2085_v1, %v7181_v42  ;;  %v3484_v7 = vrot.slane %v2084_v2, %v7184_v43  ;;  %802 = vadd.xlane.f32.xlu1 %v801_v62  ;;  %799 = vadd.xlane.f32.xlu0 %v798_v63  ;;  %v825_v63 = vsel %vm527_vm0, %v114_v52, 0.0 }
  0xb8   :  { %v599_v8 = vpop.xlane.xlu1 %598  ;;  %v596_v10 = vpop.xlane.xlu0 %595 }
  0xb9   :  { %v3485_v15 = vsel %vm3383_vm4, %v3484_v7, %v3480_v5  ;;  %v2087_v17 = vmul.f32 0.020408163, %v599_v8  ;;  %v2086_v18 = vmul.f32 0.020408163, %v596_v10  ;;  %v115_v5 = vld [vmem:[%s11159_s0 + $0x320] sm:$0xff] }
  0xba   :  { %v3490_v16 = vsel %vm3390_vm5, %v3489_v13, %v3485_v15  ;;  %v828_v15 = vsel %vm527_vm0, %v115_v5, 0.0  ;;  %v123_v5 = vld [vmem:[%s11159_s0 + $0x360] sm:$0xff] }
  0xbb   :  { %v3499_v22 = vrot.slane %v2087_v17, %v7203_v60  ;;  %v3494_v23 = vrot.slane %v2086_v18, %v7206_v61  ;;  %808 = vadd.xlane.f32.xlu1 %v807_v11  ;;  %805 = vadd.xlane.f32.xlu0 %v804_v12  ;;  %v831_v12 = vsel %vm527_vm0, %v116_v4, 0.0  ;;  %v124_v4 = vld [vmem:[%s11159_s0 + $0x368] sm:$0xff] }
  0xbc   :  { %v605_v24 = vpop.xlane.xlu1 %604  ;;  %v602_v25 = vpop.xlane.xlu0 %601 }
  0xbd   :  { %v3495_v29 = vsel %vm3397_vm6, %v3494_v23, %v3490_v16  ;;  %v2089_v33 = vmul.f32 0.020408163, %v605_v24  ;;  %v2088_v34 = vmul.f32 0.020408163, %v602_v25  ;;  %v117_v16 = vld [vmem:[%s11159_s0 + $0x330] sm:$0xff] }
  0xbe   :  { %v3500_v38 = vsel %vm3404_vm7, %v3499_v22, %v3495_v29  ;;  %v834_v29 = vsel %vm527_vm0, %v117_v16, 0.0  ;;  %v125_v16 = vld [vmem:[%s11159_s0 + $0x370] sm:$0xff] }
  0xbf   :  { %v3509_v41 = vrot.slane %v2089_v33, %v7224_v14  ;;  %v3504_v44 = vrot.slane %v2088_v34, %v7230_v19  ;;  %814 = vadd.xlane.f32.xlu1 %v813_v26  ;;  %811 = vadd.xlane.f32.xlu0 %v810_v27  ;;  %v837_v27 = vsel %vm527_vm0, %v118_v21, 0.0  ;;  %v126_v21 = vld [vmem:[%s11159_s0 + $0x378] sm:$0xff] }
  0xc0   :  { %v611_v45 = vpop.xlane.xlu1 %610  ;;  %v608_v46 = vpop.xlane.xlu0 %607 }
  0xc1   :  { %v3505_v49 = vsel %vm3411_vm8, %v3504_v44, %v3500_v38  ;;  %v2091_v50 = vmul.f32 0.020408163, %v611_v45  ;;  %v2090_v51 = vmul.f32 0.020408163, %v608_v46 }
  0xc2   :  { %v3510_v55 = vsel %vm11176_vm9, %v3509_v41, %v3505_v49  ;;  %v840_v49 = vsel %vm527_vm0, %v119_v37, 0.0  ;;  %v128_v37 = vld [vmem:[%s11159_s0 + $0x388] sm:$0xff] }
  0xc3   :  { %v3519_v56 = vrot.slane %v2091_v50, %v7244_v35  ;;  %v3514_v58 = vrot.slane %v2090_v51, %v7250_v39  ;;  %820 = vadd.xlane.f32.xlu1 %v819_v47  ;;  %817 = vadd.xlane.f32.xlu0 %v816_v48  ;;  %v843_v48 = vsel %vm527_vm0, %v120_v36, 0.0 }
  0xc4   :  { %v617_v59 = vpop.xlane.xlu1 %616  ;;  %v614_v62 = vpop.xlane.xlu0 %613 }
  0xc5   :  { %v3515_v1 = vsel %vm11164_vm10, %v3514_v58, %v3510_v55  ;;  %v2093_v2 = vmul.f32 0.020408163, %v617_v59  ;;  %v2092_v3 = vmul.f32 0.020408163, %v614_v62  ;;  %v121_v55 = vld [vmem:[%s11159_s0 + $0x350] sm:$0xff] }
  0xc6   :  { %v3520_v13 = vsel %vm11165_vm11, %v3519_v56, %v3515_v1 }
  0xc7   :  { %v3529_v7 = vrot.slane %v2093_v2, %v7264_v53  ;;  %v3524_v8 = vrot.slane %v2092_v3, %v7270_v57  ;;  %826 = vadd.xlane.f32.xlu1 %v825_v63  ;;  %823 = vadd.xlane.f32.xlu0 %v822_v0  ;;  %v849_v63 = vsel %vm527_vm0, %v122_v54, 0.0  ;;  %v846_v0 = vsel %vm527_vm0, %v121_v55, 0.0  ;;  %v130_v55 = vld [vmem:[%s11159_s0 + $0x398] sm:$0xff] }
  0xc8   :  { %v623_v10 = vpop.xlane.xlu1 %622  ;;  %v620_v11 = vpop.xlane.xlu0 %619 }
  0xc9   :  { %v3525_v17 = vsel %vm11163_vm12, %v3524_v8, %v3520_v13  ;;  %v2095_v18 = vmul.f32 0.020408163, %v623_v10  ;;  %v2094_v20 = vmul.f32 0.020408163, %v620_v11 }
  0xca   :  { %v3530_v22 = vsel %vm3446_vm13, %v3529_v7, %v3525_v17 }
  0xcb   :  { %v3539_v23 = vrot.slane %v2095_v18, %v7289_v9  ;;  %v3534_v24 = vrot.slane %v2094_v20, %v7284_v6  ;;  %832 = vadd.xlane.f32.xlu1 %v831_v12  ;;  %829 = vadd.xlane.f32.xlu0 %v828_v15  ;;  %v855_v12 = vsel %vm527_vm0, %v124_v4, 0.0  ;;  %v852_v15 = vsel %vm527_vm0, %v123_v5, 0.0 }
  0xcc   :  { %v629_v25 = vpop.xlane.xlu1 %628  ;;  %v626_v26 = vpop.xlane.xlu0 %625 }
  0xcd   :  { %v2097_v33 = vmul.f32 0.020408163, %v629_v25  ;;  %v2096_v34 = vmul.f32 0.020408163, %v626_v26  ;;  %v3535_v38 = vsel %vm3453_vm14, %v3534_v24, %v3530_v22 }
  0xce   :  { %v7410_v41 = vsel %vm3460_vm15, %v3539_v23, %v3535_v38  ;;  %v127_v38 = vld [vmem:[%s11159_s0 + $0x380] sm:$0xff] }
  0xcf   :  { %v3548_v44 = vrot.slane %v2097_v33, %v7167_v31  ;;  %v3544_v45 = vrot.slane %v2096_v34, %v7161_v28  ;;  %838 = vadd.xlane.f32.xlu1 %v837_v27  ;;  %835 = vadd.xlane.f32.xlu0 %v834_v29  ;;  %v861_v27 = vsel %vm527_vm0, %v126_v21, 0.0  ;;  %v858_v29 = vsel %vm527_vm0, %v125_v16, 0.0 }
  0xd0   :  { %v635_v46 = vpop.xlane.xlu1 %634  ;;  %v632_v47 = vpop.xlane.xlu0 %631 }
  0xd1   :  { %v3549_v50 = vsel %vm3362_vm1, %v3548_v44, %v3544_v45  ;;  %v2099_v51 = vmul.f32 0.020408163, %v635_v46  ;;  %v2098_v52 = vmul.f32 0.020408163, %v632_v47 }
  0xd3   :  { %v3558_v56 = vrot.slane %v2099_v51, %v7164_v30  ;;  %v3553_v58 = vrot.slane %v2098_v52, %v7170_v32  ;;  %844 = vadd.xlane.f32.xlu1 %v843_v48  ;;  %841 = vadd.xlane.f32.xlu0 %v840_v49  ;;  %v867_v49 = vsel %vm527_vm0, %v128_v37, 0.0 }
  0xd4   :  { %v641_v59 = vpop.xlane.xlu1 %640  ;;  %v638_v62 = vpop.xlane.xlu0 %637 }
  0xd5   :  { %v3554_v1 = vsel %vm3369_vm2, %v3553_v58, %v3549_v50  ;;  %v2101_v2 = vmul.f32 0.020408163, %v641_v59  ;;  %v2100_v3 = vmul.f32 0.020408163, %v638_v62  ;;  %v864_v50 = vsel %vm527_vm0, %v127_v38, 0.0  ;;  %v136_v38 = vld [vmem:[%s11159_s0 + $0x3c8] sm:$0xff] }
  0xd6   :  { %v3559_v13 = vsel %vm3376_vm3, %v3558_v56, %v3554_v1  ;;  %v129_v56 = vld [vmem:[%s11159_s0 + $0x390] sm:$0xff]  ;;  %v873_v1 = vsel %vm527_vm0, %v130_v55, 0.0 }
  0xd7   :  { %v3568_v7 = vrot.slane %v2101_v2, %v7181_v42  ;;  %v3563_v8 = vrot.slane %v2100_v3, %v7184_v43  ;;  %850 = vadd.xlane.f32.xlu1 %v849_v63  ;;  %847 = vadd.xlane.f32.xlu0 %v846_v0  ;;  %v870_v2 = vsel %vm527_vm0, %v129_v56, 0.0 }
  0xd8   :  { %v647_v10 = vpop.xlane.xlu1 %646  ;;  %v644_v11 = vpop.xlane.xlu0 %643 }
  0xd9   :  { %v3564_v17 = vsel %vm3383_vm4, %v3563_v8, %v3559_v13  ;;  %v2103_v18 = vmul.f32 0.020408163, %v647_v10  ;;  %v2102_v20 = vmul.f32 0.020408163, %v644_v11  ;;  %v132_v13 = vld [vmem:[%s11159_s0 + $0x3a8] sm:$0xff] }
  0xda   :  { %v3569_v22 = vsel %vm3390_vm5, %v3568_v7, %v3564_v17  ;;  %v131_v7 = vld [vmem:[%s11159_s0 + $0x3a0] sm:$0xff]  ;;  %v879_v17 = vsel %vm527_vm0, %v132_v13, 0.0 }
  0xdb   :  { %v3578_v23 = vrot.slane %v2103_v18, %v7203_v60  ;;  %v3573_v24 = vrot.slane %v2102_v20, %v7206_v61  ;;  %856 = vadd.xlane.f32.xlu1 %v855_v12  ;;  %853 = vadd.xlane.f32.xlu0 %v852_v15  ;;  %v876_v18 = vsel %vm527_vm0, %v131_v7, 0.0  ;;  %v140_v7 = vld [vmem:[%s11159_s0 + $0x3e8] sm:$0xff] }
  0xdc   :  { %v653_v25 = vpop.xlane.xlu1 %652  ;;  %v650_v26 = vpop.xlane.xlu0 %649 }
  0xdd   :  { %v3574_v33 = vsel %vm3397_vm6, %v3573_v24, %v3569_v22  ;;  %v2105_v34 = vmul.f32 0.020408163, %v653_v25  ;;  %v2104_v36 = vmul.f32 0.020408163, %v650_v26  ;;  %v134_v22 = vld [vmem:[%s11159_s0 + $0x3b8] sm:$0xff] }
  0xde   :  { %v3579_v44 = vsel %vm3404_vm7, %v3578_v23, %v3574_v33  ;;  %v133_v23 = vld [vmem:[%s11159_s0 + $0x3b0] sm:$0xff]  ;;  %v885_v33 = vsel %vm527_vm0, %v134_v22, 0.0 }
  0xdf   :  { %v3588_v45 = vrot.slane %v2105_v34, %v7224_v14  ;;  %v3583_v46 = vrot.slane %v2104_v36, %v7230_v19  ;;  %862 = vadd.xlane.f32.xlu1 %v861_v27  ;;  %859 = vadd.xlane.f32.xlu0 %v858_v29  ;;  %v882_v34 = vsel %vm527_vm0, %v133_v23, 0.0  ;;  %v142_v23 = vld [vmem:[%s11159_s0 + $0x3f8] sm:$0xff] }
  0xe0   :  { %v659_v47 = vpop.xlane.xlu1 %658  ;;  %v656_v48 = vpop.xlane.xlu0 %655 }
  0xe1   :  { %v3584_v51 = vsel %vm3411_vm8, %v3583_v46, %v3579_v44  ;;  %v2107_v52 = vmul.f32 0.020408163, %v659_v47  ;;  %v2106_v54 = vmul.f32 0.020408163, %v656_v48  ;;  %v135_v44 = vld [vmem:[%s11159_s0 + $0x3c0] sm:$0xff] }
  0xe2   :  { %v3589_v58 = vsel %vm11176_vm9, %v3588_v45, %v3584_v51  ;;  %v891_v51 = vsel %vm527_vm0, %v136_v38, 0.0 }
  0xe3   :  { %v3598_v59 = vrot.slane %v2107_v52, %v7244_v35  ;;  %v3593_v62 = vrot.slane %v2106_v54, %v7250_v39  ;;  %868 = vadd.xlane.f32.xlu1 %v867_v49  ;;  %865 = vadd.xlane.f32.xlu0 %v864_v50  ;;  %v888_v52 = vsel %vm527_vm0, %v135_v44, 0.0 }
  0xe4   :  { %v665_v63 = vpop.xlane.xlu1 %664  ;;  %v662_v0 = vpop.xlane.xlu0 %661 }
  0xe5   :  { %v3594_v3 = vsel %vm11164_vm10, %v3593_v62, %v3589_v58  ;;  %v2109_v4 = vmul.f32 0.020408163, %v665_v63  ;;  %v2108_v5 = vmul.f32 0.020408163, %v662_v0  ;;  %v138_v58 = vld [vmem:[%s11159_s0 + $0x3d8] sm:$0xff] }
  0xe6   :  { %v3599_v8 = vsel %vm11165_vm11, %v3598_v59, %v3594_v3  ;;  %v137_v59 = vld [vmem:[%s11159_s0 + $0x3d0] sm:$0xff] }
  0xe7   :  { %v3608_v10 = vrot.slane %v2109_v4, %v7264_v53  ;;  %v3603_v11 = vrot.slane %v2108_v5, %v7270_v57  ;;  %874 = vadd.xlane.f32.xlu1 %v873_v1  ;;  %871 = vadd.xlane.f32.xlu0 %v870_v2  ;;  %v897_v2 = vsel %vm527_vm0, %v138_v58, 0.0  ;;  %v894_v3 = vsel %vm527_vm0, %v137_v59, 0.0 }
  0xe8   :  { %v671_v12 = vpop.xlane.xlu1 %670  ;;  %v668_v15 = vpop.xlane.xlu0 %667 }
  0xe9   :  { %v3604_v20 = vsel %vm11163_vm12, %v3603_v11, %v3599_v8  ;;  %v2111_v21 = vmul.f32 0.020408163, %v671_v12  ;;  %v2110_v16 = vmul.f32 0.020408163, %v668_v15  ;;  %v139_v8 = vld [vmem:[%s11159_s0 + $0x3e0] sm:$0xff] }
  0xea   :  { %v3609_v24 = vsel %vm3446_vm13, %v3608_v10, %v3604_v20  ;;  %v900_v20 = vsel %vm527_vm0, %v139_v8, 0.0 }
  0xeb   :  { %v3618_v25 = vrot.slane %v2111_v21, %v7289_v9  ;;  %v3613_v26 = vrot.slane %v2110_v16, %v7284_v6  ;;  %880 = vadd.xlane.f32.xlu1 %v879_v17  ;;  %877 = vadd.xlane.f32.xlu0 %v876_v18  ;;  %v903_v18 = vsel %vm527_vm0, %v140_v7, 0.0 }
  0xec   :  { %v677_v27 = vpop.xlane.xlu1 %676  ;;  %v674_v29 = vpop.xlane.xlu0 %673 }
  0xed   :  { %v2113_v36 = vmul.f32 0.020408163, %v677_v27  ;;  %v2112_v37 = vmul.f32 0.020408163, %v674_v29  ;;  %v3614_v45 = vsel %vm3453_vm14, %v3613_v26, %v3609_v24  ;;  %v141_v24 = vld [vmem:[%s11159_s0 + $0x3f0] sm:$0xff] }
  0xee   :  { %v7507_v46 = vsel %vm3460_vm15, %v3618_v25, %v3614_v45  ;;  %v144_v45 = vld [vmem:[%s11159_s0 + $0x408] sm:$0xff] }
  0xef   :  { %v3627_v47 = vrot.slane %v2113_v36, %v7167_v31  ;;  %v3623_v48 = vrot.slane %v2112_v37, %v7161_v28  ;;  %886 = vadd.xlane.f32.xlu1 %v885_v33  ;;  %883 = vadd.xlane.f32.xlu0 %v882_v34  ;;  %v909_v34 = vsel %vm527_vm0, %v142_v23, 0.0  ;;  %v906_v36 = vsel %vm527_vm0, %v141_v24, 0.0 }
  0xf0   :  { %v683_v49 = vpop.xlane.xlu1 %682  ;;  %v680_v50 = vpop.xlane.xlu0 %679 }
  0xf1   :  { %v3628_v54 = vsel %vm3362_vm1, %v3627_v47, %v3623_v48  ;;  %v2115_v55 = vmul.f32 0.020408163, %v683_v49  ;;  %v2114_v56 = vmul.f32 0.020408163, %v680_v50  ;;  %v143_v47 = vld [vmem:[%s11159_s0 + $0x400] sm:$0xff] }
  0xf3   :  { %v3637_v62 = vrot.slane %v2115_v55, %v7164_v30  ;;  %v3632_v63 = vrot.slane %v2114_v56, %v7170_v32  ;;  %892 = vadd.xlane.f32.xlu1 %v891_v51  ;;  %889 = vadd.xlane.f32.xlu0 %v888_v52  ;;  %v912_v55 = vsel %vm527_vm0, %v143_v47, 0.0 }
  0xf4   :  { %v689_v0 = vpop.xlane.xlu1 %688  ;;  %v686_v1 = vpop.xlane.xlu0 %685 }
  0xf5   :  { %v3633_v4 = vsel %vm3369_vm2, %v3632_v63, %v3628_v54  ;;  %v2117_v5 = vmul.f32 0.020408163, %v689_v0  ;;  %v2116_v13 = vmul.f32 0.020408163, %v686_v1  ;;  %v915_v54 = vsel %vm527_vm0, %v144_v45, 0.0  ;;  %v145_v63 = vld [vmem:[%s11159_s0 + $0x410] sm:$0xff] }
  0xf6   :  { %v3638_v10 = vsel %vm3376_vm3, %v3637_v62, %v3633_v4  ;;  %v146_v62 = vld [vmem:[%s11159_s0 + $0x418] sm:$0xff] }
  0xf7   :  { %v3647_v11 = vrot.slane %v2117_v5, %v7181_v42  ;;  %v3642_v12 = vrot.slane %v2116_v13, %v7184_v43  ;;  %898 = vadd.xlane.f32.xlu1 %v897_v2  ;;  %895 = vadd.xlane.f32.xlu0 %v894_v3  ;;  %v921_v5 = vsel %vm527_vm0, %v146_v62, 0.0  ;;  %v918_v13 = vsel %vm527_vm0, %v145_v63, 0.0 }
  0xf8   :  { %v695_v15 = vpop.xlane.xlu1 %694  ;;  %v692_v17 = vpop.xlane.xlu0 %691 }
  0xf9   :  { %v3643_v21 = vsel %vm3383_vm4, %v3642_v12, %v3638_v10  ;;  %v2119_v16 = vmul.f32 0.020408163, %v695_v15  ;;  %v2118_v22 = vmul.f32 0.020408163, %v692_v17  ;;  %v147_v12 = vld [vmem:[%s11159_s0 + $0x420] sm:$0xff] }
  0xfa   :  { %v3648_v25 = vsel %vm3390_vm5, %v3647_v11, %v3643_v21  ;;  %v148_v11 = vld [vmem:[%s11159_s0 + $0x428] sm:$0xff] }
  0xfb   :  { %v3657_v26 = vrot.slane %v2119_v16, %v7203_v60  ;;  %v3652_v27 = vrot.slane %v2118_v22, %v7206_v61  ;;  %904 = vadd.xlane.f32.xlu1 %v903_v18  ;;  %901 = vadd.xlane.f32.xlu0 %v900_v20  ;;  %v927_v16 = vsel %vm527_vm0, %v148_v11, 0.0  ;;  %v924_v22 = vsel %vm527_vm0, %v147_v12, 0.0 }
  0xfc   :  { %v701_v29 = vpop.xlane.xlu1 %700  ;;  %v698_v33 = vpop.xlane.xlu0 %697 }
  0xfd   :  { %v3653_v37 = vsel %vm3397_vm6, %v3652_v27, %v3648_v25  ;;  %v2121_v38 = vmul.f32 0.020408163, %v701_v29  ;;  %v2120_v44 = vmul.f32 0.020408163, %v698_v33  ;;  %v149_v27 = vld [vmem:[%s11159_s0 + $0x430] sm:$0xff] }
  0xfe   :  { %v3658_v48 = vsel %vm3404_vm7, %v3657_v26, %v3653_v37  ;;  %v150_v26 = vld [vmem:[%s11159_s0 + $0x438] sm:$0xff] }
  0xff   :  { %v3667_v49 = vrot.slane %v2121_v38, %v7224_v14  ;;  %v3662_v50 = vrot.slane %v2120_v44, %v7230_v19  ;;  %910 = vadd.xlane.f32.xlu1 %v909_v34  ;;  %907 = vadd.xlane.f32.xlu0 %v906_v36  ;;  %v933_v38 = vsel %vm527_vm0, %v150_v26, 0.0  ;;  %v930_v44 = vsel %vm527_vm0, %v149_v27, 0.0 }
 0x100   :  { %v707_v51 = vpop.xlane.xlu1 %706  ;;  %v704_v52 = vpop.xlane.xlu0 %703 }
 0x101   :  { %v3663_v56 = vsel %vm3411_vm8, %v3662_v50, %v3658_v48  ;;  %v2123_v58 = vmul.f32 0.020408163, %v707_v51  ;;  %v2122_v59 = vmul.f32 0.020408163, %v704_v52  ;;  %v152_v48 = vld [vmem:[%s11159_s0 + $0x448] sm:$0xff] }
 0x102   :  { %v3668_v0 = vsel %vm11176_vm9, %v3667_v49, %v3663_v56  ;;  %v151_v49 = vld [vmem:[%s11159_s0 + $0x440] sm:$0xff] }
 0x103   :  { %v3677_v1 = vrot.slane %v2123_v58, %v7244_v35  ;;  %v3672_v2 = vrot.slane %v2122_v59, %v7250_v39  ;;  %916 = vadd.xlane.f32.xlu1 %v915_v54  ;;  %913 = vadd.xlane.f32.xlu0 %v912_v55  ;;  %v939_v58 = vsel %vm527_vm0, %v152_v48, 0.0  ;;  %v936_v59 = vsel %vm527_vm0, %v151_v49, 0.0 }
 0x104   :  { %v713_v3 = vpop.xlane.xlu1 %712  ;;  %v710_v4 = vpop.xlane.xlu0 %709 }
 0x105   :  { %v3673_v7 = vsel %vm11164_vm10, %v3672_v2, %v3668_v0  ;;  %v2125_v8 = vmul.f32 0.020408163, %v713_v3  ;;  %v2124_v10 = vmul.f32 0.020408163, %v710_v4  ;;  %v153_v2 = vld [vmem:[%s11159_s0 + $0x450] sm:$0xff] }
 0x106   :  { %v3678_v15 = vsel %vm11165_vm11, %v3677_v1, %v3673_v7  ;;  %v154_v1 = vld [vmem:[%s11159_s0 + $0x458] sm:$0xff] }
 0x107   :  { %v3687_v17 = vrot.slane %v2125_v8, %v7264_v53  ;;  %v3682_v18 = vrot.slane %v2124_v10, %v7270_v57  ;;  %922 = vadd.xlane.f32.xlu1 %v921_v5  ;;  %919 = vadd.xlane.f32.xlu0 %v918_v13  ;;  %v945_v7 = vsel %vm527_vm0, %v154_v1, 0.0  ;;  %v942_v8 = vsel %vm527_vm0, %v153_v2, 0.0 }
 0x108   :  { %v719_v20 = vpop.xlane.xlu1 %718  ;;  %v716_v21 = vpop.xlane.xlu0 %715 }
 0x109   :  { %v3683_v23 = vsel %vm11163_vm12, %v3682_v18, %v3678_v15  ;;  %v2127_v24 = vmul.f32 0.020408163, %v719_v20  ;;  %v2126_v25 = vmul.f32 0.020408163, %v716_v21  ;;  %v156_v15 = vld [vmem:[%s11159_s0 + $0x468] sm:$0xff] }
 0x10a   :  { %v3688_v29 = vsel %vm3446_vm13, %v3687_v17, %v3683_v23  ;;  %v155_v17 = vld [vmem:[%s11159_s0 + $0x460] sm:$0xff]  ;;  %v951_v23 = vsel %vm527_vm0, %v156_v15, 0.0 }
 0x10b   :  { %v3697_v33 = vrot.slane %v2127_v24, %v7289_v9  ;;  %v3692_v34 = vrot.slane %v2126_v25, %v7284_v6  ;;  %928 = vadd.xlane.f32.xlu1 %v927_v16  ;;  %925 = vadd.xlane.f32.xlu0 %v924_v22  ;;  %v948_v24 = vsel %vm527_vm0, %v155_v17, 0.0 }
 0x10c   :  { %v725_v36 = vpop.xlane.xlu1 %724  ;;  %v722_v37 = vpop.xlane.xlu0 %721 }
 0x10d   :  { %v2129_v45 = vmul.f32 0.020408163, %v725_v36  ;;  %v2128_v47 = vmul.f32 0.020408163, %v722_v37  ;;  %v3693_v50 = vsel %vm3453_vm14, %v3692_v34, %v3688_v29  ;;  %v158_v29 = vld [vmem:[%s11159_s0 + $0x478] sm:$0xff] }
 0x10e   :  { %v7604_v51 = vsel %vm3460_vm15, %v3697_v33, %v3693_v50  ;;  %v157_v33 = vld [vmem:[%s11159_s0 + $0x470] sm:$0xff] }
 0x10f   :  { %v3706_v52 = vrot.slane %v2129_v45, %v7167_v31  ;;  %v3702_v54 = vrot.slane %v2128_v47, %v7161_v28  ;;  %934 = vadd.xlane.f32.xlu1 %v933_v38  ;;  %931 = vadd.xlane.f32.xlu0 %v930_v44  ;;  %v957_v45 = vsel %vm527_vm0, %v158_v29, 0.0  ;;  %v954_v47 = vsel %vm527_vm0, %v157_v33, 0.0 }
 0x110   :  { %v731_v55 = vpop.xlane.xlu1 %730  ;;  %v728_v56 = vpop.xlane.xlu0 %727 }
 0x111   :  { %v3707_v62 = vsel %vm3362_vm1, %v3706_v52, %v3702_v54  ;;  %v2131_v63 = vmul.f32 0.020408163, %v731_v55  ;;  %v2130_v0 = vmul.f32 0.020408163, %v728_v56  ;;  %v160_v52 = vld [vmem:[%s11159_s0 + $0x488] sm:$0xff]  ;;  %v159_v54 = vld [vmem:[%s11159_s0 + $0x480] sm:$0xff] }
 0x113   :  { %v3716_v3 = vrot.slane %v2131_v63, %v7164_v30  ;;  %v3711_v4 = vrot.slane %v2130_v0, %v7170_v32  ;;  %940 = vadd.xlane.f32.xlu1 %v939_v58  ;;  %937 = vadd.xlane.f32.xlu0 %v936_v59  ;;  %v963_v63 = vsel %vm527_vm0, %v160_v52, 0.0  ;;  %v960_v0 = vsel %vm527_vm0, %v159_v54, 0.0 }
 0x114   :  { %v737_v5 = vpop.xlane.xlu1 %736  ;;  %v734_v13 = vpop.xlane.xlu0 %733 }
 0x115   :  { %v3712_v10 = vsel %vm3369_vm2, %v3711_v4, %v3707_v62  ;;  %v2133_v11 = vmul.f32 0.020408163, %v737_v5  ;;  %v2132_v12 = vmul.f32 0.020408163, %v734_v13  ;;  %v162_v4 = vld [vmem:[%s11159_s0 + $0x498] sm:$0xff]  ;;  %v161_v5 = vld [vmem:[%s11159_s0 + $0x490] sm:$0xff] }
 0x116   :  { %v3717_v18 = vsel %vm3376_vm3, %v3716_v3, %v3712_v10  ;;  %v966_v15 = vsel %vm527_vm0, %v161_v5, 0.0 }
 0x117   :  { %v3726_v20 = vrot.slane %v2133_v11, %v7181_v42  ;;  %v3721_v21 = vrot.slane %v2132_v12, %v7184_v43  ;;  %946 = vadd.xlane.f32.xlu1 %v945_v7  ;;  %943 = vadd.xlane.f32.xlu0 %v942_v8  ;;  %v969_v12 = vsel %vm527_vm0, %v162_v4, 0.0 }
 0x118   :  { %v743_v16 = vpop.xlane.xlu1 %742  ;;  %v740_v22 = vpop.xlane.xlu0 %739 }
 0x119   :  { %v3722_v25 = vsel %vm3383_vm4, %v3721_v21, %v3717_v18  ;;  %v2135_v26 = vmul.f32 0.020408163, %v743_v16  ;;  %v2134_v27 = vmul.f32 0.020408163, %v740_v22  ;;  %v164_v21 = vld [vmem:[%s11159_s0 + $0x4a8] sm:$0xff]  ;;  %v163_v16 = vld [vmem:[%s11159_s0 + $0x4a0] sm:$0xff] }
 0x11a   :  { %v3727_v34 = vsel %vm3390_vm5, %v3726_v20, %v3722_v25  ;;  %v972_v29 = vsel %vm527_vm0, %v163_v16, 0.0 }
 0x11b   :  { %v3736_v36 = vrot.slane %v2135_v26, %v7203_v60  ;;  %v3731_v37 = vrot.slane %v2134_v27, %v7206_v61  ;;  %952 = vadd.xlane.f32.xlu1 %v951_v23  ;;  %949 = vadd.xlane.f32.xlu0 %v948_v24  ;;  %v975_v27 = vsel %vm527_vm0, %v164_v21, 0.0 }
 0x11c   :  { %v749_v38 = vpop.xlane.xlu1 %748  ;;  %v746_v44 = vpop.xlane.xlu0 %745 }
 0x11d   :  { %v3732_v48 = vsel %vm3397_vm6, %v3731_v37, %v3727_v34  ;;  %v2137_v49 = vmul.f32 0.020408163, %v749_v38  ;;  %v2136_v50 = vmul.f32 0.020408163, %v746_v44  ;;  %v166_v37 = vld [vmem:[%s11159_s0 + $0x4b8] sm:$0xff]  ;;  %v165_v38 = vld [vmem:[%s11159_s0 + $0x4b0] sm:$0xff] }
 0x11e   :  { %v3737_v55 = vsel %vm3404_vm7, %v3736_v36, %v3732_v48  ;;  %v978_v52 = vsel %vm527_vm0, %v165_v38, 0.0 }
 0x11f   :  { %v3746_v56 = vrot.slane %v2137_v49, %v7224_v14  ;;  %v3741_v58 = vrot.slane %v2136_v50, %v7230_v19  ;;  %958 = vadd.xlane.f32.xlu1 %v957_v45  ;;  %955 = vadd.xlane.f32.xlu0 %v954_v47  ;;  %v981_v50 = vsel %vm527_vm0, %v166_v37, 0.0 }
 0x120   :  { %v755_v59 = vpop.xlane.xlu1 %754  ;;  %v752_v62 = vpop.xlane.xlu0 %751 }
 0x121   :  { %v3742_v1 = vsel %vm3411_vm8, %v3741_v58, %v3737_v55  ;;  %v2139_v2 = vmul.f32 0.020408163, %v755_v59  ;;  %v2138_v3 = vmul.f32 0.020408163, %v752_v62  ;;  %v167_v58 = vld [vmem:[%s11159_s0 + $0x4c0] sm:$0xff] }
 0x122   :  { %v3747_v13 = vsel %vm11176_vm9, %v3746_v56, %v3742_v1  ;;  %v168_v56 = vld [vmem:[%s11159_s0 + $0x4c8] sm:$0xff]  ;;  %v984_v4 = vsel %vm527_vm0, %v167_v58, 0.0 }
 0x123   :  { %v3756_v7 = vrot.slane %v2139_v2, %v7244_v35  ;;  %v3751_v8 = vrot.slane %v2138_v3, %v7250_v39  ;;  %964 = vadd.xlane.f32.xlu1 %v963_v63  ;;  %961 = vadd.xlane.f32.xlu0 %v960_v0  ;;  %v987_v3 = vsel %vm527_vm0, %v168_v56, 0.0 }
 0x124   :  { %v761_v10 = vpop.xlane.xlu1 %760  ;;  %v758_v11 = vpop.xlane.xlu0 %757 }
 0x125   :  { %v3752_v17 = vsel %vm11164_vm10, %v3751_v8, %v3747_v13  ;;  %v2141_v18 = vmul.f32 0.020408163, %v761_v10  ;;  %v2140_v20 = vmul.f32 0.020408163, %v758_v11  ;;  %v170_v8 = vld [vmem:[%s11159_s0 + $0x4d8] sm:$0xff]  ;;  %v169_v10 = vld [vmem:[%s11159_s0 + $0x4d0] sm:$0xff] }
 0x126   :  { %v3757_v22 = vsel %vm11165_vm11, %v3756_v7, %v3752_v17 }
 0x127   :  { %v3766_v23 = vrot.slane %v2141_v18, %v7264_v53  ;;  %v3761_v24 = vrot.slane %v2140_v20, %v7270_v57  ;;  %970 = vadd.xlane.f32.xlu1 %v969_v12  ;;  %967 = vadd.xlane.f32.xlu0 %v966_v15  ;;  %v993_v18 = vsel %vm527_vm0, %v170_v8, 0.0  ;;  %v990_v20 = vsel %vm527_vm0, %v169_v10, 0.0 }
 0x128   :  { %v767_v25 = vpop.xlane.xlu1 %766  ;;  %v764_v26 = vpop.xlane.xlu0 %763 }
 0x129   :  { %v3762_v33 = vsel %vm11163_vm12, %v3761_v24, %v3757_v22  ;;  %v2143_v34 = vmul.f32 0.020408163, %v767_v25  ;;  %v2142_v36 = vmul.f32 0.020408163, %v764_v26  ;;  %v171_v24 = vld [vmem:[%s11159_s0 + $0x4e0] sm:$0xff] }
 0x12a   :  { %v3767_v44 = vsel %vm3446_vm13, %v3766_v23, %v3762_v33  ;;  %v172_v23 = vld [vmem:[%s11159_s0 + $0x4e8] sm:$0xff] }
 0x12b   :  { %v3776_v45 = vrot.slane %v2143_v34, %v7289_v9  ;;  %v3771_v47 = vrot.slane %v2142_v36, %v7284_v6  ;;  %976 = vadd.xlane.f32.xlu1 %v975_v27  ;;  %973 = vadd.xlane.f32.xlu0 %v972_v29  ;;  %v999_v34 = vsel %vm527_vm0, %v172_v23, 0.0  ;;  %v996_v36 = vsel %vm527_vm0, %v171_v24, 0.0 }
 0x12c   :  { %v773_v48 = vpop.xlane.xlu1 %772  ;;  %v770_v49 = vpop.xlane.xlu0 %769 }
 0x12d   :  { %v2145_v54 = vmul.f32 0.020408163, %v773_v48  ;;  %v2144_v55 = vmul.f32 0.020408163, %v770_v49  ;;  %v3772_v59 = vsel %vm3453_vm14, %v3771_v47, %v3767_v44  ;;  %v173_v47 = vld [vmem:[%s11159_s0 + $0x4f0] sm:$0xff] }
 0x12e   :  { %v7701_v62 = vsel %vm3460_vm15, %v3776_v45, %v3772_v59  ;;  %v174_v45 = vld [vmem:[%s11159_s0 + $0x4f8] sm:$0xff]  ;;  %v1002_v56 = vsel %vm527_vm0, %v173_v47, 0.0 }
 0x12f   :  { %11185 = vst [vmem:[#allocation10_spill] sm:$0xff] %v7701_v62  ;;  %v3785_v63 = vrot.slane %v2145_v54, %v7167_v31  ;;  %v3781_v0 = vrot.slane %v2144_v55, %v7161_v28  ;;  %982 = vadd.xlane.f32.xlu1 %v981_v50  ;;  %979 = vadd.xlane.f32.xlu0 %v978_v52  ;;  %v1005_v55 = vsel %vm527_vm0, %v174_v45, 0.0 }
 0x130   :  { %v779_v1 = vpop.xlane.xlu1 %778  ;;  %v776_v2 = vpop.xlane.xlu0 %775 }
 0x131   :  { %v3786_v5 = vsel %vm3362_vm1, %v3785_v63, %v3781_v0  ;;  %v2147_v13 = vmul.f32 0.020408163, %v779_v1  ;;  %v2146_v7 = vmul.f32 0.020408163, %v776_v2  ;;  %v176_v0 = vld [vmem:[%s11159_s0 + $0x508] sm:$0xff]  ;;  %v175_v1 = vld [vmem:[%s11159_s0 + $0x500] sm:$0xff] }
 0x132   :  { %v1008_v8 = vsel %vm527_vm0, %v175_v1, 0.0 }
 0x133   :  { %v3795_v11 = vrot.slane %v2147_v13, %v7164_v30  ;;  %v3790_v12 = vrot.slane %v2146_v7, %v7170_v32  ;;  %988 = vadd.xlane.f32.xlu1 %v987_v3  ;;  %985 = vadd.xlane.f32.xlu0 %v984_v4  ;;  %v1011_v7 = vsel %vm527_vm0, %v176_v0, 0.0 }
 0x134   :  { %v785_v15 = vpop.xlane.xlu1 %784  ;;  %v782_v17 = vpop.xlane.xlu0 %781 }
 0x135   :  { %v3791_v21 = vsel %vm3369_vm2, %v3790_v12, %v3786_v5  ;;  %v2149_v16 = vmul.f32 0.020408163, %v785_v15  ;;  %v2148_v22 = vmul.f32 0.020408163, %v782_v17  ;;  %v178_v15 = vld [vmem:[%s11159_s0 + $0x518] sm:$0xff]  ;;  %v177_v17 = vld [vmem:[%s11159_s0 + $0x510] sm:$0xff] }
 0x136   :  { %v3796_v25 = vsel %vm3376_vm3, %v3795_v11, %v3791_v21  ;;  %v1017_v23 = vsel %vm527_vm0, %v178_v15, 0.0  ;;  %v1014_v24 = vsel %vm527_vm0, %v177_v17, 0.0 }
 0x137   :  { %v3805_v26 = vrot.slane %v2149_v16, %v7181_v42  ;;  %v3800_v27 = vrot.slane %v2148_v22, %v7184_v43  ;;  %994 = vadd.xlane.f32.xlu1 %v993_v18  ;;  %991 = vadd.xlane.f32.xlu0 %v990_v20 }
 0x138   :  { %v791_v29 = vpop.xlane.xlu1 %790  ;;  %v788_v33 = vpop.xlane.xlu0 %787 }
 0x139   :  { %v3801_v37 = vsel %vm3383_vm4, %v3800_v27, %v3796_v25  ;;  %v2151_v38 = vmul.f32 0.020408163, %v791_v29  ;;  %v2150_v44 = vmul.f32 0.020408163, %v788_v33  ;;  %v180_v29 = vld [vmem:[%s11159_s0 + $0x528] sm:$0xff]  ;;  %v179_v33 = vld [vmem:[%s11159_s0 + $0x520] sm:$0xff] }
 0x13a   :  { %v3806_v48 = vsel %vm3390_vm5, %v3805_v26, %v3801_v37  ;;  %v1023_v45 = vsel %vm527_vm0, %v180_v29, 0.0  ;;  %v1020_v47 = vsel %vm527_vm0, %v179_v33, 0.0 }
 0x13b   :  { %v3815_v49 = vrot.slane %v2151_v38, %v7203_v60  ;;  %v3810_v50 = vrot.slane %v2150_v44, %v7206_v61  ;;  %1000 = vadd.xlane.f32.xlu1 %v999_v34  ;;  %997 = vadd.xlane.f32.xlu0 %v996_v36 }
 0x13c   :  { %v797_v52 = vpop.xlane.xlu1 %796  ;;  %v794_v54 = vpop.xlane.xlu0 %793 }
 0x13d   :  { %v3811_v58 = vsel %vm3397_vm6, %v3810_v50, %v3806_v48  ;;  %v2153_v59 = vmul.f32 0.020408163, %v797_v52  ;;  %v2152_v63 = vmul.f32 0.020408163, %v794_v54  ;;  %v182_v52 = vld [vmem:[%s11159_s0 + $0x538] sm:$0xff]  ;;  %v181_v54 = vld [vmem:[%s11159_s0 + $0x530] sm:$0xff] }
 0x13e   :  { %v3816_v2 = vsel %vm3404_vm7, %v3815_v49, %v3811_v58  ;;  %v1029_v0 = vsel %vm527_vm0, %v182_v52, 0.0  ;;  %v1026_v1 = vsel %vm527_vm0, %v181_v54, 0.0 }
 0x13f   :  { %v3825_v3 = vrot.slane %v2153_v59, %v7224_v14  ;;  %v3820_v4 = vrot.slane %v2152_v63, %v7230_v19  ;;  %1006 = vadd.xlane.f32.xlu1 %v1005_v55  ;;  %1003 = vadd.xlane.f32.xlu0 %v1002_v56 }
 0x140   :  { %v803_v5 = vpop.xlane.xlu1 %802  ;;  %v800_v13 = vpop.xlane.xlu0 %799 }
 0x141   :  { %v3821_v10 = vsel %vm3411_vm8, %v3820_v4, %v3816_v2  ;;  %v2155_v11 = vmul.f32 0.020408163, %v803_v5  ;;  %v2154_v12 = vmul.f32 0.020408163, %v800_v13  ;;  %v184_v4 = vld [vmem:[%s11159_s0 + $0x548] sm:$0xff]  ;;  %v183_v5 = vld [vmem:[%s11159_s0 + $0x540] sm:$0xff] }
 0x142   :  { %v3826_v18 = vsel %vm11176_vm9, %v3825_v3, %v3821_v10  ;;  %v1035_v15 = vsel %vm527_vm0, %v184_v4, 0.0  ;;  %v1032_v17 = vsel %vm527_vm0, %v183_v5, 0.0 }
 0x143   :  { %v3835_v20 = vrot.slane %v2155_v11, %v7244_v35  ;;  %v3830_v21 = vrot.slane %v2154_v12, %v7250_v39  ;;  %1012 = vadd.xlane.f32.xlu1 %v1011_v7  ;;  %1009 = vadd.xlane.f32.xlu0 %v1008_v8 }
 0x144   :  { %v809_v16 = vpop.xlane.xlu1 %808  ;;  %v806_v22 = vpop.xlane.xlu0 %805 }
 0x145   :  { %v3831_v25 = vsel %vm11164_vm10, %v3830_v21, %v3826_v18  ;;  %v2157_v26 = vmul.f32 0.020408163, %v809_v16  ;;  %v2156_v27 = vmul.f32 0.020408163, %v806_v22  ;;  %v186_v16 = vld [vmem:[%s11159_s0 + $0x558] sm:$0xff]  ;;  %v185_v22 = vld [vmem:[%s11159_s0 + $0x550] sm:$0xff] }
 0x146   :  { %v3836_v34 = vsel %vm11165_vm11, %v3835_v20, %v3831_v25  ;;  %v1038_v29 = vsel %vm527_vm0, %v185_v22, 0.0 }
 0x147   :  { %v3845_v36 = vrot.slane %v2157_v26, %v7264_v53  ;;  %v3840_v37 = vrot.slane %v2156_v27, %v7270_v57  ;;  %1018 = vadd.xlane.f32.xlu1 %v1017_v23  ;;  %1015 = vadd.xlane.f32.xlu0 %v1014_v24  ;;  %v1041_v27 = vsel %vm527_vm0, %v186_v16, 0.0 }
 0x148   :  { %v815_v38 = vpop.xlane.xlu1 %814  ;;  %v812_v44 = vpop.xlane.xlu0 %811 }
 0x149   :  { %v3841_v48 = vsel %vm11163_vm12, %v3840_v37, %v3836_v34  ;;  %v2159_v49 = vmul.f32 0.020408163, %v815_v38  ;;  %v2158_v50 = vmul.f32 0.020408163, %v812_v44  ;;  %v188_v37 = vld [vmem:[%s11159_s0 + $0x568] sm:$0xff]  ;;  %v187_v38 = vld [vmem:[%s11159_s0 + $0x560] sm:$0xff] }
 0x14a   :  { %v3846_v55 = vsel %vm3446_vm13, %v3845_v36, %v3841_v48  ;;  %v1044_v52 = vsel %vm527_vm0, %v187_v38, 0.0 }
 0x14b   :  { %v3855_v56 = vrot.slane %v2159_v49, %v7289_v9  ;;  %v3850_v58 = vrot.slane %v2158_v50, %v7284_v6  ;;  %1024 = vadd.xlane.f32.xlu1 %v1023_v45  ;;  %1021 = vadd.xlane.f32.xlu0 %v1020_v47  ;;  %v1047_v50 = vsel %vm527_vm0, %v188_v37, 0.0 }
 0x14c   :  { %v821_v59 = vpop.xlane.xlu1 %820  ;;  %v818_v63 = vpop.xlane.xlu0 %817 }
 0x14d   :  { %v2161_v2 = vmul.f32 0.020408163, %v821_v59  ;;  %v2160_v3 = vmul.f32 0.020408163, %v818_v63  ;;  %v3851_v13 = vsel %vm3453_vm14, %v3850_v58, %v3846_v55  ;;  %v190_v58 = vld [vmem:[%s11159_s0 + $0x578] sm:$0xff]  ;;  %v189_v59 = vld [vmem:[%s11159_s0 + $0x570] sm:$0xff] }
 0x14e   :  { %v7798_v7 = vsel %vm3460_vm15, %v3855_v56, %v3851_v13  ;;  %v1053_v4 = vsel %vm527_vm0, %v190_v58, 0.0  ;;  %v1050_v5 = vsel %vm527_vm0, %v189_v59, 0.0 }
 0x14f   :  { %v3864_v8 = vrot.slane %v2161_v2, %v7167_v31  ;;  %v3860_v10 = vrot.slane %v2160_v3, %v7161_v28  ;;  %1030 = vadd.xlane.f32.xlu1 %v1029_v0  ;;  %1027 = vadd.xlane.f32.xlu0 %v1026_v1 }
 0x150   :  { %v827_v11 = vpop.xlane.xlu1 %826  ;;  %v824_v12 = vpop.xlane.xlu0 %823 }
 0x151   :  { %v3865_v18 = vsel %vm3362_vm1, %v3864_v8, %v3860_v10  ;;  %v2163_v20 = vmul.f32 0.020408163, %v827_v11  ;;  %v2162_v21 = vmul.f32 0.020408163, %v824_v12  ;;  %v192_v11 = vld [vmem:[%s11159_s0 + $0x588] sm:$0xff]  ;;  %v191_v12 = vld [vmem:[%s11159_s0 + $0x580] sm:$0xff] }
 0x152   :  { %v1059_v16 = vsel %vm527_vm0, %v192_v11, 0.0  ;;  %v1056_v22 = vsel %vm527_vm0, %v191_v12, 0.0 }
 0x153   :  { %v3874_v23 = vrot.slane %v2163_v20, %v7164_v30  ;;  %v3869_v24 = vrot.slane %v2162_v21, %v7170_v32  ;;  %1036 = vadd.xlane.f32.xlu1 %v1035_v15  ;;  %1033 = vadd.xlane.f32.xlu0 %v1032_v17 }
 0x154   :  { %v833_v25 = vpop.xlane.xlu1 %832  ;;  %v830_v26 = vpop.xlane.xlu0 %829 }
 0x155   :  { %v3870_v33 = vsel %vm3369_vm2, %v3869_v24, %v3865_v18  ;;  %v2165_v34 = vmul.f32 0.020408163, %v833_v25  ;;  %v2164_v36 = vmul.f32 0.020408163, %v830_v26  ;;  %v194_v26 = vld [vmem:[%s11159_s0 + $0x598] sm:$0xff] }
 0x156   :  { %v3875_v44 = vsel %vm3376_vm3, %v3874_v23, %v3870_v33  ;;  %v1065_v38 = vsel %vm527_vm0, %v194_v26, 0.0 }
 0x157   :  { %v3884_v45 = vrot.slane %v2165_v34, %v7181_v42  ;;  %v3879_v47 = vrot.slane %v2164_v36, %v7184_v43  ;;  %1042 = vadd.xlane.f32.xlu1 %v1041_v27  ;;  %1039 = vadd.xlane.f32.xlu0 %v1038_v29  ;;  %v193_v27 = vld [vmem:[%s11159_s0 + $0x590] sm:$0xff] }
 0x158   :  { %v839_v48 = vpop.xlane.xlu1 %838  ;;  %v836_v49 = vpop.xlane.xlu0 %835 }
 0x159   :  { %v3880_v54 = vsel %vm3383_vm4, %v3879_v47, %v3875_v44  ;;  %v2167_v55 = vmul.f32 0.020408163, %v839_v48  ;;  %v2166_v56 = vmul.f32 0.020408163, %v836_v49  ;;  %v1062_v44 = vsel %vm527_vm0, %v193_v27, 0.0  ;;  %v196_v49 = vld [vmem:[%s11159_s0 + $0x5a8] sm:$0xff] }
 0x15a   :  { %v3885_v63 = vsel %vm3390_vm5, %v3884_v45, %v3880_v54  ;;  %v1071_v59 = vsel %vm527_vm0, %v196_v49, 0.0 }
 0x15b   :  { %v3894_v0 = vrot.slane %v2167_v55, %v7203_v60  ;;  %v3889_v1 = vrot.slane %v2166_v56, %v7206_v61  ;;  %1048 = vadd.xlane.f32.xlu1 %v1047_v50  ;;  %1045 = vadd.xlane.f32.xlu0 %v1044_v52  ;;  %v195_v50 = vld [vmem:[%s11159_s0 + $0x5a0] sm:$0xff] }
 0x15c   :  { %v845_v2 = vpop.xlane.xlu1 %844  ;;  %v842_v3 = vpop.xlane.xlu0 %841 }
 0x15d   :  { %v3890_v13 = vsel %vm3397_vm6, %v3889_v1, %v3885_v63  ;;  %v2169_v8 = vmul.f32 0.020408163, %v845_v2  ;;  %v2168_v10 = vmul.f32 0.020408163, %v842_v3  ;;  %v1068_v63 = vsel %vm527_vm0, %v195_v50, 0.0  ;;  %v198_v3 = vld [vmem:[%s11159_s0 + $0x5b8] sm:$0xff] }
 0x15e   :  { %v3895_v15 = vsel %vm3404_vm7, %v3894_v0, %v3890_v13  ;;  %v1077_v12 = vsel %vm527_vm0, %v198_v3, 0.0 }
 0x15f   :  { %v3904_v17 = vrot.slane %v2169_v8, %v7224_v14  ;;  %v3899_v18 = vrot.slane %v2168_v10, %v7230_v19  ;;  %1054 = vadd.xlane.f32.xlu1 %v1053_v4  ;;  %1051 = vadd.xlane.f32.xlu0 %v1050_v5  ;;  %v197_v4 = vld [vmem:[%s11159_s0 + $0x5b0] sm:$0xff] }
 0x160   :  { %v851_v20 = vpop.xlane.xlu1 %850  ;;  %v848_v21 = vpop.xlane.xlu0 %847 }
 0x161   :  { %v3900_v23 = vsel %vm3411_vm8, %v3899_v18, %v3895_v15  ;;  %v2171_v24 = vmul.f32 0.020408163, %v851_v20  ;;  %v2170_v25 = vmul.f32 0.020408163, %v848_v21  ;;  %v1074_v15 = vsel %vm527_vm0, %v197_v4, 0.0  ;;  %v200_v20 = vld [vmem:[%s11159_s0 + $0x5c8] sm:$0xff] }
 0x162   :  { %v3905_v29 = vsel %vm11176_vm9, %v3904_v17, %v3900_v23  ;;  %v199_v21 = vld [vmem:[%s11159_s0 + $0x5c0] sm:$0xff]  ;;  %v1083_v27 = vsel %vm527_vm0, %v200_v20, 0.0 }
 0x163   :  { %v3914_v33 = vrot.slane %v2171_v24, %v7244_v35  ;;  %v3909_v34 = vrot.slane %v2170_v25, %v7250_v39  ;;  %1060 = vadd.xlane.f32.xlu1 %v1059_v16  ;;  %1057 = vadd.xlane.f32.xlu0 %v1056_v22 }
 0x164   :  { %v857_v36 = vpop.xlane.xlu1 %856  ;;  %v854_v37 = vpop.xlane.xlu0 %853 }
 0x165   :  { %v3910_v45 = vsel %vm11164_vm10, %v3909_v34, %v3905_v29  ;;  %v2173_v47 = vmul.f32 0.020408163, %v857_v36  ;;  %v2172_v48 = vmul.f32 0.020408163, %v854_v37  ;;  %v1080_v29 = vsel %vm527_vm0, %v199_v21, 0.0  ;;  %v202_v37 = vld [vmem:[%s11159_s0 + $0x5d8] sm:$0xff] }
 0x166   :  { %v3915_v52 = vsel %vm11165_vm11, %v3914_v33, %v3910_v45  ;;  %v1089_v49 = vsel %vm527_vm0, %v202_v37, 0.0 }
 0x167   :  { %v3924_v54 = vrot.slane %v2173_v47, %v7264_v53  ;;  %v3919_v55 = vrot.slane %v2172_v48, %v7270_v57  ;;  %1066 = vadd.xlane.f32.xlu1 %v1065_v38  ;;  %1063 = vadd.xlane.f32.xlu0 %v1062_v44  ;;  %v201_v38 = vld [vmem:[%s11159_s0 + $0x5d0] sm:$0xff] }
 0x168   :  { %v863_v56 = vpop.xlane.xlu1 %862  ;;  %v860_v58 = vpop.xlane.xlu0 %859  ;;  %v1086_v50 = vsel %vm527_vm0, %v201_v38, 0.0 }
 0x169   :  { %v3920_v0 = vsel %vm11163_vm12, %v3919_v55, %v3915_v52  ;;  %v2175_v1 = vmul.f32 0.020408163, %v863_v56  ;;  %v2174_v2 = vmul.f32 0.020408163, %v860_v58  ;;  %v204_v56 = vld [vmem:[%s11159_s0 + $0x5e8] sm:$0xff]  ;;  %v203_v58 = vld [vmem:[%s11159_s0 + $0x5e0] sm:$0xff] }
 0x16a   :  { %v3925_v5 = vsel %vm3446_vm13, %v3924_v54, %v3920_v0  ;;  %v1095_v3 = vsel %vm527_vm0, %v204_v56, 0.0  ;;  %v1092_v4 = vsel %vm527_vm0, %v203_v58, 0.0 }
 0x16b   :  { %v3934_v13 = vrot.slane %v2175_v1, %v7289_v9  ;;  %v3929_v8 = vrot.slane %v2174_v2, %v7284_v6  ;;  %1072 = vadd.xlane.f32.xlu1 %v1071_v59  ;;  %1069 = vadd.xlane.f32.xlu0 %v1068_v63 }
 0x16c   :  { %v869_v10 = vpop.xlane.xlu1 %868  ;;  %v866_v11 = vpop.xlane.xlu0 %865 }
 0x16d   :  { %v2177_v17 = vmul.f32 0.020408163, %v869_v10  ;;  %v2176_v18 = vmul.f32 0.020408163, %v866_v11  ;;  %v3930_v16 = vsel %vm3453_vm14, %v3929_v8, %v3925_v5  ;;  %v206_v10 = vld [vmem:[%s11159_s0 + $0x5f8] sm:$0xff]  ;;  %v205_v11 = vld [vmem:[%s11159_s0 + $0x5f0] sm:$0xff] }
 0x16e   :  { %v7895_v22 = vsel %vm3460_vm15, %v3934_v13, %v3930_v16  ;;  %v1101_v21 = vsel %vm527_vm0, %v206_v10, 0.0  ;;  %v1098_v16 = vsel %vm527_vm0, %v205_v11, 0.0 }
 0x16f   :  { %11186 = vst [vmem:[#allocation11_spill] sm:$0xff] %v7895_v22  ;;  %v3943_v23 = vrot.slane %v2177_v17, %v7167_v31  ;;  %v3939_v24 = vrot.slane %v2176_v18, %v7161_v28  ;;  %1078 = vadd.xlane.f32.xlu1 %v1077_v12  ;;  %1075 = vadd.xlane.f32.xlu0 %v1074_v15 }
 0x170   :  { %v875_v25 = vpop.xlane.xlu1 %874  ;;  %v872_v26 = vpop.xlane.xlu0 %871 }
 0x171   :  { %v3944_v33 = vsel %vm3362_vm1, %v3943_v23, %v3939_v24  ;;  %v2179_v34 = vmul.f32 0.020408163, %v875_v25  ;;  %v2178_v36 = vmul.f32 0.020408163, %v872_v26  ;;  %v208_v26 = vld [vmem:[%s11159_s0 + $0x608] sm:$0xff] }
 0x172   :  { %v1107_v38 = vsel %vm527_vm0, %v208_v26, 0.0 }
 0x173   :  { %v3953_v44 = vrot.slane %v2179_v34, %v7164_v30  ;;  %v3948_v45 = vrot.slane %v2178_v36, %v7170_v32  ;;  %1084 = vadd.xlane.f32.xlu1 %v1083_v27  ;;  %1081 = vadd.xlane.f32.xlu0 %v1080_v29  ;;  %v207_v27 = vld [vmem:[%s11159_s0 + $0x600] sm:$0xff] }
 0x174   :  { %v881_v47 = vpop.xlane.xlu1 %880  ;;  %v878_v48 = vpop.xlane.xlu0 %877 }
 0x175   :  { %v3949_v52 = vsel %vm3369_vm2, %v3948_v45, %v3944_v33  ;;  %v2181_v54 = vmul.f32 0.020408163, %v881_v47  ;;  %v2180_v55 = vmul.f32 0.020408163, %v878_v48 }
 0x176   :  { %v3954_v59 = vsel %vm3376_vm3, %v3953_v44, %v3949_v52  ;;  %v1104_v44 = vsel %vm527_vm0, %v207_v27, 0.0 }
 0x177   :  { %v3963_v63 = vrot.slane %v2181_v54, %v7181_v42  ;;  %v3958_v0 = vrot.slane %v2180_v55, %v7184_v43  ;;  %1090 = vadd.xlane.f32.xlu1 %v1089_v49  ;;  %1087 = vadd.xlane.f32.xlu0 %v1086_v50  ;;  %v210_v49 = vld [vmem:[%s11159_s0 + $0x618] sm:$0xff]  ;;  %v209_v50 = vld [vmem:[%s11159_s0 + $0x610] sm:$0xff] }
 0x178   :  { %v887_v1 = vpop.xlane.xlu1 %886  ;;  %v884_v2 = vpop.xlane.xlu0 %883 }
 0x179   :  { %v3959_v5 = vsel %vm3383_vm4, %v3958_v0, %v3954_v59  ;;  %v2183_v13 = vmul.f32 0.020408163, %v887_v1  ;;  %v2182_v8 = vmul.f32 0.020408163, %v884_v2  ;;  %v1113_v59 = vsel %vm527_vm0, %v210_v49, 0.0 }
 0x17a   :  { %v3964_v12 = vsel %vm3390_vm5, %v3963_v63, %v3959_v5  ;;  %v1110_v63 = vsel %vm527_vm0, %v209_v50, 0.0 }
 0x17b   :  { %v3973_v15 = vrot.slane %v2183_v13, %v7203_v60  ;;  %v3968_v17 = vrot.slane %v2182_v8, %v7206_v61  ;;  %1096 = vadd.xlane.f32.xlu1 %v1095_v3  ;;  %1093 = vadd.xlane.f32.xlu0 %v1092_v4  ;;  %v212_v3 = vld [vmem:[%s11159_s0 + $0x628] sm:$0xff]  ;;  %v211_v4 = vld [vmem:[%s11159_s0 + $0x620] sm:$0xff] }
 0x17c   :  { %v893_v18 = vpop.xlane.xlu1 %892  ;;  %v890_v20 = vpop.xlane.xlu0 %889 }
 0x17d   :  { %v3969_v23 = vsel %vm3397_vm6, %v3968_v17, %v3964_v12  ;;  %v2185_v24 = vmul.f32 0.020408163, %v893_v18  ;;  %v2184_v25 = vmul.f32 0.020408163, %v890_v20  ;;  %v1119_v12 = vsel %vm527_vm0, %v212_v3, 0.0 }
 0x17e   :  { %v3974_v29 = vsel %vm3404_vm7, %v3973_v15, %v3969_v23  ;;  %v1116_v15 = vsel %vm527_vm0, %v211_v4, 0.0 }
 0x17f   :  { %v3983_v33 = vrot.slane %v2185_v24, %v7224_v14  ;;  %v3978_v34 = vrot.slane %v2184_v25, %v7230_v19  ;;  %1102 = vadd.xlane.f32.xlu1 %v1101_v21  ;;  %1099 = vadd.xlane.f32.xlu0 %v1098_v16  ;;  %v214_v21 = vld [vmem:[%s11159_s0 + $0x638] sm:$0xff]  ;;  %v213_v16 = vld [vmem:[%s11159_s0 + $0x630] sm:$0xff] }
 0x180   :  { %v899_v36 = vpop.xlane.xlu1 %898  ;;  %v896_v37 = vpop.xlane.xlu0 %895 }
 0x181   :  { %v3979_v45 = vsel %vm3411_vm8, %v3978_v34, %v3974_v29  ;;  %v2187_v47 = vmul.f32 0.020408163, %v899_v36  ;;  %v2186_v48 = vmul.f32 0.020408163, %v896_v37  ;;  %v1125_v29 = vsel %vm527_vm0, %v214_v21, 0.0  ;;  %v216_v37 = vld [vmem:[%s11159_s0 + $0x648] sm:$0xff] }
 0x182   :  { %v3984_v52 = vsel %vm11176_vm9, %v3983_v33, %v3979_v45  ;;  %v1122_v33 = vsel %vm527_vm0, %v213_v16, 0.0 }
 0x183   :  { %v3993_v54 = vrot.slane %v2187_v47, %v7244_v35  ;;  %v3988_v55 = vrot.slane %v2186_v48, %v7250_v39  ;;  %1108 = vadd.xlane.f32.xlu1 %v1107_v38  ;;  %1105 = vadd.xlane.f32.xlu0 %v1104_v44  ;;  %v215_v38 = vld [vmem:[%s11159_s0 + $0x640] sm:$0xff] }
 0x184   :  { %v905_v56 = vpop.xlane.xlu1 %904  ;;  %v902_v58 = vpop.xlane.xlu0 %901 }
 0x185   :  { %v3989_v0 = vsel %vm11164_vm10, %v3988_v55, %v3984_v52  ;;  %v2189_v1 = vmul.f32 0.020408163, %v905_v56  ;;  %v2188_v2 = vmul.f32 0.020408163, %v902_v58  ;;  %v1131_v52 = vsel %vm527_vm0, %v216_v37, 0.0 }
 0x186   :  { %v3994_v5 = vsel %vm11165_vm11, %v3993_v54, %v3989_v0  ;;  %v1128_v54 = vsel %vm527_vm0, %v215_v38, 0.0 }
 0x187   :  { %v4003_v13 = vrot.slane %v2189_v1, %v7264_v53  ;;  %v3998_v8 = vrot.slane %v2188_v2, %v7270_v57  ;;  %1114 = vadd.xlane.f32.xlu1 %v1113_v59  ;;  %1111 = vadd.xlane.f32.xlu0 %v1110_v63  ;;  %v218_v59 = vld [vmem:[%s11159_s0 + $0x658] sm:$0xff]  ;;  %v217_v63 = vld [vmem:[%s11159_s0 + $0x650] sm:$0xff] }
 0x188   :  { %v911_v10 = vpop.xlane.xlu1 %910  ;;  %v908_v11 = vpop.xlane.xlu0 %907  ;;  %v1137_v4 = vsel %vm527_vm0, %v218_v59, 0.0 }
 0x189   :  { %v3999_v17 = vsel %vm11163_vm12, %v3998_v8, %v3994_v5  ;;  %v2191_v18 = vmul.f32 0.020408163, %v911_v10  ;;  %v2190_v20 = vmul.f32 0.020408163, %v908_v11  ;;  %v1134_v5 = vsel %vm527_vm0, %v217_v63, 0.0  ;;  %v220_v11 = vld [vmem:[%s11159_s0 + $0x668] sm:$0xff] }
 0x18a   :  { %v4004_v23 = vsel %vm3446_vm13, %v4003_v13, %v3999_v17  ;;  %v1143_v16 = vsel %vm527_vm0, %v220_v11, 0.0 }
 0x18b   :  { %v4013_v24 = vrot.slane %v2191_v18, %v7289_v9  ;;  %v4008_v25 = vrot.slane %v2190_v20, %v7284_v6  ;;  %1120 = vadd.xlane.f32.xlu1 %v1119_v12  ;;  %1117 = vadd.xlane.f32.xlu0 %v1116_v15  ;;  %v219_v12 = vld [vmem:[%s11159_s0 + $0x660] sm:$0xff] }
 0x18c   :  { %v917_v26 = vpop.xlane.xlu1 %916  ;;  %v914_v27 = vpop.xlane.xlu0 %913 }
 0x18d   :  { %v2193_v34 = vmul.f32 0.020408163, %v917_v26  ;;  %v2192_v36 = vmul.f32 0.020408163, %v914_v27  ;;  %v4009_v44 = vsel %vm3453_vm14, %v4008_v25, %v4004_v23  ;;  %v1140_v23 = vsel %vm527_vm0, %v219_v12, 0.0  ;;  %v222_v27 = vld [vmem:[%s11159_s0 + $0x678] sm:$0xff] }
 0x18e   :  { %v7992_v45 = vsel %vm3460_vm15, %v4013_v24, %v4009_v44  ;;  %v1149_v44 = vsel %vm527_vm0, %v222_v27, 0.0 }
 0x18f   :  { %11187 = vst [vmem:[#allocation12_spill] sm:$0xff] %v7992_v45  ;;  %v4022_v47 = vrot.slane %v2193_v34, %v7167_v31  ;;  %v4018_v48 = vrot.slane %v2192_v36, %v7161_v28  ;;  %1126 = vadd.xlane.f32.xlu1 %v1125_v29  ;;  %1123 = vadd.xlane.f32.xlu0 %v1122_v33  ;;  %v221_v29 = vld [vmem:[%s11159_s0 + $0x670] sm:$0xff] }
 0x190   :  { %v923_v49 = vpop.xlane.xlu1 %922  ;;  %v920_v50 = vpop.xlane.xlu0 %919 }
 0x191   :  { %v4023_v55 = vsel %vm3362_vm1, %v4022_v47, %v4018_v48  ;;  %v2195_v56 = vmul.f32 0.020408163, %v923_v49  ;;  %v2194_v58 = vmul.f32 0.020408163, %v920_v50  ;;  %v1146_v47 = vsel %vm527_vm0, %v221_v29, 0.0 }
 0x193   :  { %v4032_v0 = vrot.slane %v2195_v56, %v7164_v30  ;;  %v4027_v1 = vrot.slane %v2194_v58, %v7170_v32  ;;  %1132 = vadd.xlane.f32.xlu1 %v1131_v52  ;;  %1129 = vadd.xlane.f32.xlu0 %v1128_v54  ;;  %v224_v52 = vld [vmem:[%s11159_s0 + $0x688] sm:$0xff]  ;;  %v223_v54 = vld [vmem:[%s11159_s0 + $0x680] sm:$0xff] }
 0x194   :  { %v929_v2 = vpop.xlane.xlu1 %928  ;;  %v926_v3 = vpop.xlane.xlu0 %925 }
 0x195   :  { %v4028_v13 = vsel %vm3369_vm2, %v4027_v1, %v4023_v55  ;;  %v2197_v8 = vmul.f32 0.020408163, %v929_v2  ;;  %v2196_v10 = vmul.f32 0.020408163, %v926_v3  ;;  %v1152_v1 = vsel %vm527_vm0, %v223_v54, 0.0 }
 0x196   :  { %v4033_v15 = vsel %vm3376_vm3, %v4032_v0, %v4028_v13  ;;  %v1155_v0 = vsel %vm527_vm0, %v224_v52, 0.0  ;;  %v225_v13 = vld [vmem:[%s11159_s0 + $0x690] sm:$0xff] }
 0x197   :  { %v4042_v17 = vrot.slane %v2197_v8, %v7181_v42  ;;  %v4037_v18 = vrot.slane %v2196_v10, %v7184_v43  ;;  %1138 = vadd.xlane.f32.xlu1 %v1137_v4  ;;  %1135 = vadd.xlane.f32.xlu0 %v1134_v5  ;;  %v226_v5 = vld [vmem:[%s11159_s0 + $0x698] sm:$0xff] }
 0x198   :  { %v935_v20 = vpop.xlane.xlu1 %934  ;;  %v932_v21 = vpop.xlane.xlu0 %931 }
 0x199   :  { %v4038_v24 = vsel %vm3383_vm4, %v4037_v18, %v4033_v15  ;;  %v2199_v25 = vmul.f32 0.020408163, %v935_v20  ;;  %v2198_v26 = vmul.f32 0.020408163, %v932_v21  ;;  %v1158_v18 = vsel %vm527_vm0, %v225_v13, 0.0 }
 0x19a   :  { %v4043_v33 = vsel %vm3390_vm5, %v4042_v17, %v4038_v24  ;;  %v1161_v17 = vsel %vm527_vm0, %v226_v5, 0.0  ;;  %v227_v24 = vld [vmem:[%s11159_s0 + $0x6a0] sm:$0xff] }
 0x19b   :  { %v4052_v34 = vrot.slane %v2199_v25, %v7203_v60  ;;  %v4047_v36 = vrot.slane %v2198_v26, %v7206_v61  ;;  %1144 = vadd.xlane.f32.xlu1 %v1143_v16  ;;  %1141 = vadd.xlane.f32.xlu0 %v1140_v23  ;;  %v228_v23 = vld [vmem:[%s11159_s0 + $0x6a8] sm:$0xff] }
 0x19c   :  { %v941_v37 = vpop.xlane.xlu1 %940  ;;  %v938_v38 = vpop.xlane.xlu0 %937 }
 0x19d   :  { %v4048_v48 = vsel %vm3397_vm6, %v4047_v36, %v4043_v33  ;;  %v2201_v49 = vmul.f32 0.020408163, %v941_v37  ;;  %v2200_v50 = vmul.f32 0.020408163, %v938_v38  ;;  %v1164_v36 = vsel %vm527_vm0, %v227_v24, 0.0 }
 0x19e   :  { %v4053_v55 = vsel %vm3404_vm7, %v4052_v34, %v4048_v48  ;;  %v1167_v34 = vsel %vm527_vm0, %v228_v23, 0.0  ;;  %v229_v48 = vld [vmem:[%s11159_s0 + $0x6b0] sm:$0xff] }
 0x19f   :  { %v4062_v56 = vrot.slane %v2201_v49, %v7224_v14  ;;  %v4057_v58 = vrot.slane %v2200_v50, %v7230_v19  ;;  %1150 = vadd.xlane.f32.xlu1 %v1149_v44  ;;  %1147 = vadd.xlane.f32.xlu0 %v1146_v47  ;;  %v230_v47 = vld [vmem:[%s11159_s0 + $0x6b8] sm:$0xff] }
 0x1a0   :  { %v947_v59 = vpop.xlane.xlu1 %946  ;;  %v944_v63 = vpop.xlane.xlu0 %943 }
 0x1a1   :  { %v4058_v2 = vsel %vm3411_vm8, %v4057_v58, %v4053_v55  ;;  %v2203_v3 = vmul.f32 0.020408163, %v947_v59  ;;  %v2202_v4 = vmul.f32 0.020408163, %v944_v63  ;;  %v1170_v58 = vsel %vm527_vm0, %v229_v48, 0.0 }
 0x1a2   :  { %v4063_v8 = vsel %vm11176_vm9, %v4062_v56, %v4058_v2  ;;  %v1173_v56 = vsel %vm527_vm0, %v230_v47, 0.0 }
 0x1a3   :  { %v4072_v10 = vrot.slane %v2203_v3, %v7244_v35  ;;  %v4067_v11 = vrot.slane %v2202_v4, %v7250_v39  ;;  %1156 = vadd.xlane.f32.xlu1 %v1155_v0  ;;  %1153 = vadd.xlane.f32.xlu0 %v1152_v1  ;;  %v232_v0 = vld [vmem:[%s11159_s0 + $0x6c8] sm:$0xff]  ;;  %v231_v1 = vld [vmem:[%s11159_s0 + $0x6c0] sm:$0xff] }
 0x1a4   :  { %v953_v12 = vpop.xlane.xlu1 %952  ;;  %v950_v15 = vpop.xlane.xlu0 %949 }
 0x1a5   :  { %v4068_v20 = vsel %vm11164_vm10, %v4067_v11, %v4063_v8  ;;  %v2205_v21 = vmul.f32 0.020408163, %v953_v12  ;;  %v2204_v16 = vmul.f32 0.020408163, %v950_v15  ;;  %v1176_v11 = vsel %vm527_vm0, %v231_v1, 0.0 }
 0x1a6   :  { %v4073_v25 = vsel %vm11165_vm11, %v4072_v10, %v4068_v20  ;;  %v1179_v10 = vsel %vm527_vm0, %v232_v0, 0.0  ;;  %v233_v20 = vld [vmem:[%s11159_s0 + $0x6d0] sm:$0xff] }
 0x1a7   :  { %v4082_v26 = vrot.slane %v2205_v21, %v7264_v53  ;;  %v4077_v27 = vrot.slane %v2204_v16, %v7270_v57  ;;  %1162 = vadd.xlane.f32.xlu1 %v1161_v17  ;;  %1159 = vadd.xlane.f32.xlu0 %v1158_v18  ;;  %v234_v18 = vld [vmem:[%s11159_s0 + $0x6d8] sm:$0xff] }
 0x1a8   :  { %v959_v29 = vpop.xlane.xlu1 %958  ;;  %v956_v33 = vpop.xlane.xlu0 %955 }
 0x1a9   :  { %v4078_v37 = vsel %vm11163_vm12, %v4077_v27, %v4073_v25  ;;  %v2207_v38 = vmul.f32 0.020408163, %v959_v29  ;;  %v2206_v44 = vmul.f32 0.020408163, %v956_v33  ;;  %v1185_v25 = vsel %vm527_vm0, %v234_v18, 0.0 }
 0x1aa   :  { %v4083_v49 = vsel %vm3446_vm13, %v4082_v26, %v4078_v37  ;;  %v1182_v26 = vsel %vm527_vm0, %v233_v20, 0.0 }
 0x1ab   :  { %v4092_v50 = vrot.slane %v2207_v38, %v7289_v9  ;;  %v4087_v52 = vrot.slane %v2206_v44, %v7284_v6  ;;  %1168 = vadd.xlane.f32.xlu1 %v1167_v34  ;;  %1165 = vadd.xlane.f32.xlu0 %v1164_v36  ;;  %v236_v34 = vld [vmem:[%s11159_s0 + $0x6e8] sm:$0xff]  ;;  %v235_v36 = vld [vmem:[%s11159_s0 + $0x6e0] sm:$0xff] }
 0x1ac   :  { %v965_v54 = vpop.xlane.xlu1 %964  ;;  %v962_v55 = vpop.xlane.xlu0 %961 }
 0x1ad   :  { %v2209_v59 = vmul.f32 0.020408163, %v965_v54  ;;  %v2208_v63 = vmul.f32 0.020408163, %v962_v55  ;;  %v4088_v2 = vsel %vm3453_vm14, %v4087_v52, %v4083_v49  ;;  %v1191_v49 = vsel %vm527_vm0, %v236_v34, 0.0 }
 0x1ae   :  { %v8089_v3 = vsel %vm3460_vm15, %v4092_v50, %v4088_v2  ;;  %v1188_v50 = vsel %vm527_vm0, %v235_v36, 0.0 }
 0x1af   :  { %11188 = vst [vmem:[#allocation13_spill] sm:$0xff] %v8089_v3  ;;  %v4101_v4 = vrot.slane %v2209_v59, %v7167_v31  ;;  %v4097_v5 = vrot.slane %v2208_v63, %v7161_v28  ;;  %1174 = vadd.xlane.f32.xlu1 %v1173_v56  ;;  %1171 = vadd.xlane.f32.xlu0 %v1170_v58  ;;  %v238_v56 = vld [vmem:[%s11159_s0 + $0x6f8] sm:$0xff]  ;;  %v237_v58 = vld [vmem:[%s11159_s0 + $0x6f0] sm:$0xff] }
 0x1b0   :  { %v971_v13 = vpop.xlane.xlu1 %970  ;;  %v968_v8 = vpop.xlane.xlu0 %967 }
 0x1b1   :  { %v4102_v12 = vsel %vm3362_vm1, %v4101_v4, %v4097_v5  ;;  %v2211_v15 = vmul.f32 0.020408163, %v971_v13  ;;  %v2210_v17 = vmul.f32 0.020408163, %v968_v8  ;;  %v1197_v4 = vsel %vm527_vm0, %v238_v56, 0.0 }
 0x1b2   :  { %v1194_v5 = vsel %vm527_vm0, %v237_v58, 0.0 }
 0x1b3   :  { %v4111_v21 = vrot.slane %v2211_v15, %v7164_v30  ;;  %v4106_v16 = vrot.slane %v2210_v17, %v7170_v32  ;;  %1180 = vadd.xlane.f32.xlu1 %v1179_v10  ;;  %1177 = vadd.xlane.f32.xlu0 %v1176_v11  ;;  %v240_v11 = vld [vmem:[%s11159_s0 + $0x708] sm:$0xff] }
 0x1b4   :  { %v977_v23 = vpop.xlane.xlu1 %976  ;;  %v974_v24 = vpop.xlane.xlu0 %973 }
 0x1b5   :  { %v4107_v27 = vsel %vm3369_vm2, %v4106_v16, %v4102_v12  ;;  %v2213_v29 = vmul.f32 0.020408163, %v977_v23  ;;  %v2212_v33 = vmul.f32 0.020408163, %v974_v24  ;;  %v239_v12 = vld [vmem:[%s11159_s0 + $0x700] sm:$0xff]  ;;  %v1203_v16 = vsel %vm527_vm0, %v240_v11, 0.0 }
 0x1b6   :  { %v4112_v37 = vsel %vm3376_vm3, %v4111_v21, %v4107_v27  ;;  %v1200_v23 = vsel %vm527_vm0, %v239_v12, 0.0  ;;  %v242_v27 = vld [vmem:[%s11159_s0 + $0x718] sm:$0xff] }
 0x1b7   :  { %v4121_v38 = vrot.slane %v2213_v29, %v7181_v42  ;;  %v4116_v44 = vrot.slane %v2212_v33, %v7184_v43  ;;  %1186 = vadd.xlane.f32.xlu1 %v1185_v25  ;;  %1183 = vadd.xlane.f32.xlu0 %v1182_v26  ;;  %v241_v29 = vld [vmem:[%s11159_s0 + $0x710] sm:$0xff] }
 0x1b8   :  { %v983_v47 = vpop.xlane.xlu1 %982  ;;  %v980_v48 = vpop.xlane.xlu0 %979 }
 0x1b9   :  { %v4117_v52 = vsel %vm3383_vm4, %v4116_v44, %v4112_v37  ;;  %v2215_v54 = vmul.f32 0.020408163, %v983_v47  ;;  %v2214_v55 = vmul.f32 0.020408163, %v980_v48  ;;  %v1209_v44 = vsel %vm527_vm0, %v242_v27, 0.0 }
 0x1ba   :  { %v4122_v59 = vsel %vm3390_vm5, %v4121_v38, %v4117_v52  ;;  %v1206_v47 = vsel %vm527_vm0, %v241_v29, 0.0  ;;  %v244_v52 = vld [vmem:[%s11159_s0 + $0x728] sm:$0xff] }
 0x1bb   :  { %v4131_v63 = vrot.slane %v2215_v54, %v7203_v60  ;;  %v4126_v0 = vrot.slane %v2214_v55, %v7206_v61  ;;  %1192 = vadd.xlane.f32.xlu1 %v1191_v49  ;;  %1189 = vadd.xlane.f32.xlu0 %v1188_v50  ;;  %v243_v54 = vld [vmem:[%s11159_s0 + $0x720] sm:$0xff] }
 0x1bc   :  { %v989_v1 = vpop.xlane.xlu1 %988  ;;  %v986_v2 = vpop.xlane.xlu0 %985 }
 0x1bd   :  { %v4127_v13 = vsel %vm3397_vm6, %v4126_v0, %v4122_v59  ;;  %v2217_v8 = vmul.f32 0.020408163, %v989_v1  ;;  %v2216_v10 = vmul.f32 0.020408163, %v986_v2  ;;  %v1215_v0 = vsel %vm527_vm0, %v244_v52, 0.0 }
 0x1be   :  { %v4132_v15 = vsel %vm3404_vm7, %v4131_v63, %v4127_v13  ;;  %v1212_v1 = vsel %vm527_vm0, %v243_v54, 0.0  ;;  %v246_v13 = vld [vmem:[%s11159_s0 + $0x738] sm:$0xff] }
 0x1bf   :  { %v4141_v17 = vrot.slane %v2217_v8, %v7224_v14  ;;  %v4136_v18 = vrot.slane %v2216_v10, %v7230_v19  ;;  %1198 = vadd.xlane.f32.xlu1 %v1197_v4  ;;  %1195 = vadd.xlane.f32.xlu0 %v1194_v5  ;;  %v245_v8 = vld [vmem:[%s11159_s0 + $0x730] sm:$0xff] }
 0x1c0   :  { %v995_v20 = vpop.xlane.xlu1 %994  ;;  %v992_v21 = vpop.xlane.xlu0 %991 }
 0x1c1   :  { %v4137_v24 = vsel %vm3411_vm8, %v4136_v18, %v4132_v15  ;;  %v2219_v25 = vmul.f32 0.020408163, %v995_v20  ;;  %v2218_v26 = vmul.f32 0.020408163, %v992_v21  ;;  %v1221_v18 = vsel %vm527_vm0, %v246_v13, 0.0 }
 0x1c2   :  { %v4142_v33 = vsel %vm11176_vm9, %v4141_v17, %v4137_v24  ;;  %v1218_v20 = vsel %vm527_vm0, %v245_v8, 0.0  ;;  %v247_v24 = vld [vmem:[%s11159_s0 + $0x740] sm:$0xff] }
 0x1c3   :  { %v4151_v34 = vrot.slane %v2219_v25, %v7244_v35  ;;  %v4146_v36 = vrot.slane %v2218_v26, %v7250_v39  ;;  %1204 = vadd.xlane.f32.xlu1 %v1203_v16  ;;  %1201 = vadd.xlane.f32.xlu0 %v1200_v23  ;;  %v248_v23 = vld [vmem:[%s11159_s0 + $0x748] sm:$0xff] }
 0x1c4   :  { %v1001_v37 = vpop.xlane.xlu1 %1000  ;;  %v998_v38 = vpop.xlane.xlu0 %997 }
 0x1c5   :  { %v4147_v48 = vsel %vm11164_vm10, %v4146_v36, %v4142_v33  ;;  %v2221_v49 = vmul.f32 0.020408163, %v1001_v37  ;;  %v2220_v50 = vmul.f32 0.020408163, %v998_v38  ;;  %v1227_v36 = vsel %vm527_vm0, %v248_v23, 0.0 }
 0x1c6   :  { %v4152_v55 = vsel %vm11165_vm11, %v4151_v34, %v4147_v48  ;;  %v1224_v37 = vsel %vm527_vm0, %v247_v24, 0.0  ;;  %v250_v48 = vld [vmem:[%s11159_s0 + $0x758] sm:$0xff] }
 0x1c7   :  { %v4161_v56 = vrot.slane %v2221_v49, %v7264_v53  ;;  %v4156_v58 = vrot.slane %v2220_v50, %v7270_v57  ;;  %1210 = vadd.xlane.f32.xlu1 %v1209_v44  ;;  %1207 = vadd.xlane.f32.xlu0 %v1206_v47  ;;  %v249_v49 = vld [vmem:[%s11159_s0 + $0x750] sm:$0xff] }
 0x1c8   :  { %v1007_v59 = vpop.xlane.xlu1 %1006  ;;  %v1004_v63 = vpop.xlane.xlu0 %1003 }
 0x1c9   :  { %v4157_v2 = vsel %vm11163_vm12, %v4156_v58, %v4152_v55  ;;  %v2223_v4 = vmul.f32 0.020408163, %v1007_v59  ;;  %v2222_v5 = vmul.f32 0.020408163, %v1004_v63  ;;  %v1230_v58 = vsel %vm527_vm0, %v249_v49, 0.0 }
 0x1ca   :  { %v4162_v10 = vsel %vm3446_vm13, %v4161_v56, %v4157_v2  ;;  %v1233_v56 = vsel %vm527_vm0, %v250_v48, 0.0  ;;  %v251_v2 = vld [vmem:[%s11159_s0 + $0x760] sm:$0xff] }
 0x1cb   :  { %v4171_v11 = vrot.slane %v2223_v4, %v7289_v9  ;;  %v4166_v12 = vrot.slane %v2222_v5, %v7284_v6  ;;  %1216 = vadd.xlane.f32.xlu1 %v1215_v0  ;;  %1213 = vadd.xlane.f32.xlu0 %v1212_v1  ;;  %v252_v1 = vld [vmem:[%s11159_s0 + $0x768] sm:$0xff] }
 0x1cc   :  { %v1013_v15 = vpop.xlane.xlu1 %1012  ;;  %v1010_v17 = vpop.xlane.xlu0 %1009 }
 0x1cd   :  { %v2225_v21 = vmul.f32 0.020408163, %v1013_v15  ;;  %v2224_v16 = vmul.f32 0.020408163, %v1010_v17  ;;  %v4167_v25 = vsel %vm3453_vm14, %v4166_v12, %v4162_v10  ;;  %v1236_v12 = vsel %vm527_vm0, %v251_v2, 0.0 }
 0x1ce   :  { %v8186_v26 = vsel %vm3460_vm15, %v4171_v11, %v4167_v25  ;;  %v1239_v11 = vsel %vm527_vm0, %v252_v1, 0.0 }
 0x1cf   :  { %11189 = vst [vmem:[#allocation14_spill] sm:$0xff] %v8186_v26  ;;  %v4180_v27 = vrot.slane %v2225_v21, %v7167_v31  ;;  %v4176_v29 = vrot.slane %v2224_v16, %v7161_v28  ;;  %1222 = vadd.xlane.f32.xlu1 %v1221_v18  ;;  %1219 = vadd.xlane.f32.xlu0 %v1218_v20  ;;  %v254_v20 = vld [vmem:[%s11159_s0 + $0x778] sm:$0xff]  ;;  %v253_v21 = vld [vmem:[%s11159_s0 + $0x770] sm:$0xff] }
 0x1d0   :  { %v1019_v33 = vpop.xlane.xlu1 %1018  ;;  %v1016_v34 = vpop.xlane.xlu0 %1015  ;;  %v446_v26 = vld [vmem:[%s11159_s0 + $0xd78] sm:$0xff] }
 0x1d1   :  { %v4181_v38 = vsel %vm3362_vm1, %v4180_v27, %v4176_v29  ;;  %v2227_v44 = vmul.f32 0.020408163, %v1019_v33  ;;  %v2226_v47 = vmul.f32 0.020408163, %v1016_v34  ;;  %v1245_v29 = vsel %vm527_vm0, %v254_v20, 0.0 }
 0x1d2   :  { %v1242_v33 = vsel %vm527_vm0, %v253_v21, 0.0 }
 0x1d3   :  { %v4190_v50 = vrot.slane %v2227_v44, %v7164_v30  ;;  %v4185_v52 = vrot.slane %v2226_v47, %v7170_v32  ;;  %1228 = vadd.xlane.f32.xlu1 %v1227_v36  ;;  %1225 = vadd.xlane.f32.xlu0 %v1224_v37  ;;  %v255_v44 = vld [vmem:[%s11159_s0 + $0x780] sm:$0xff] }
 0x1d4   :  { %v1025_v54 = vpop.xlane.xlu1 %1024  ;;  %v1022_v55 = vpop.xlane.xlu0 %1021 }
 0x1d5   :  { %v4186_v59 = vsel %vm3369_vm2, %v4185_v52, %v4181_v38  ;;  %v2229_v63 = vmul.f32 0.020408163, %v1025_v54  ;;  %v2228_v0 = vmul.f32 0.020408163, %v1022_v55  ;;  %v256_v38 = vld [vmem:[%s11159_s0 + $0x788] sm:$0xff]  ;;  %v1248_v55 = vsel %vm527_vm0, %v255_v44, 0.0 }
 0x1d6   :  { %v4191_v4 = vsel %vm3376_vm3, %v4190_v50, %v4186_v59  ;;  %v1251_v54 = vsel %vm527_vm0, %v256_v38, 0.0 }
 0x1d7   :  { %v4200_v5 = vrot.slane %v2229_v63, %v7181_v42  ;;  %v4195_v13 = vrot.slane %v2228_v0, %v7184_v43  ;;  %1234 = vadd.xlane.f32.xlu1 %v1233_v56  ;;  %1231 = vadd.xlane.f32.xlu0 %v1230_v58  ;;  %v258_v63 = vld [vmem:[%s11159_s0 + $0x798] sm:$0xff]  ;;  %v257_v0 = vld [vmem:[%s11159_s0 + $0x790] sm:$0xff] }
 0x1d8   :  { %v1031_v8 = vpop.xlane.xlu1 %1030  ;;  %v1028_v10 = vpop.xlane.xlu0 %1027 }
 0x1d9   :  { %v4196_v15 = vsel %vm3383_vm4, %v4195_v13, %v4191_v4  ;;  %v2231_v17 = vmul.f32 0.020408163, %v1031_v8  ;;  %v2230_v18 = vmul.f32 0.020408163, %v1028_v10  ;;  %v1257_v8 = vsel %vm527_vm0, %v258_v63, 0.0 }
 0x1da   :  { %v4201_v16 = vsel %vm3390_vm5, %v4200_v5, %v4196_v15  ;;  %v1254_v10 = vsel %vm527_vm0, %v257_v0, 0.0 }
 0x1db   :  { %v4210_v23 = vrot.slane %v2231_v17, %v7203_v60  ;;  %v4205_v24 = vrot.slane %v2230_v18, %v7206_v61  ;;  %1240 = vadd.xlane.f32.xlu1 %v1239_v11  ;;  %1237 = vadd.xlane.f32.xlu0 %v1236_v12  ;;  %v260_v17 = vld [vmem:[%s11159_s0 + $0x7a8] sm:$0xff]  ;;  %v259_v18 = vld [vmem:[%s11159_s0 + $0x7a0] sm:$0xff] }
 0x1dc   :  { %v1037_v25 = vpop.xlane.xlu1 %1036  ;;  %v1034_v27 = vpop.xlane.xlu0 %1033 }
 0x1dd   :  { %v4206_v34 = vsel %vm3397_vm6, %v4205_v24, %v4201_v16  ;;  %v2233_v36 = vmul.f32 0.020408163, %v1037_v25  ;;  %v2232_v37 = vmul.f32 0.020408163, %v1034_v27  ;;  %v1263_v25 = vsel %vm527_vm0, %v260_v17, 0.0 }
 0x1de   :  { %v4211_v47 = vsel %vm3404_vm7, %v4210_v23, %v4206_v34  ;;  %v1260_v27 = vsel %vm527_vm0, %v259_v18, 0.0 }
 0x1df   :  { %v4220_v48 = vrot.slane %v2233_v36, %v7224_v14  ;;  %v4215_v49 = vrot.slane %v2232_v37, %v7230_v19  ;;  %1246 = vadd.xlane.f32.xlu1 %v1245_v29  ;;  %1243 = vadd.xlane.f32.xlu0 %v1242_v33  ;;  %v262_v36 = vld [vmem:[%s11159_s0 + $0x7b8] sm:$0xff]  ;;  %v261_v37 = vld [vmem:[%s11159_s0 + $0x7b0] sm:$0xff] }
 0x1e0   :  { %v1043_v50 = vpop.xlane.xlu1 %1042  ;;  %v1040_v52 = vpop.xlane.xlu0 %1039 }
 0x1e1   :  { %v4216_v56 = vsel %vm3411_vm8, %v4215_v49, %v4211_v47  ;;  %v2235_v58 = vmul.f32 0.020408163, %v1043_v50  ;;  %v2234_v59 = vmul.f32 0.020408163, %v1040_v52  ;;  %v1269_v50 = vsel %vm527_vm0, %v262_v36, 0.0 }
 0x1e2   :  { %v4221_v1 = vsel %vm11176_vm9, %v4220_v48, %v4216_v56  ;;  %v1266_v52 = vsel %vm527_vm0, %v261_v37, 0.0  ;;  %v264_v56 = vld [vmem:[%s11159_s0 + $0x7c8] sm:$0xff] }
 0x1e3   :  { %v4230_v2 = vrot.slane %v2235_v58, %v7244_v35  ;;  %v4225_v4 = vrot.slane %v2234_v59, %v7250_v39  ;;  %1252 = vadd.xlane.f32.xlu1 %v1251_v54  ;;  %1249 = vadd.xlane.f32.xlu0 %v1248_v55  ;;  %v263_v58 = vld [vmem:[%s11159_s0 + $0x7c0] sm:$0xff] }
 0x1e4   :  { %v1049_v5 = vpop.xlane.xlu1 %1048  ;;  %v1046_v13 = vpop.xlane.xlu0 %1045 }
 0x1e5   :  { %v4226_v11 = vsel %vm11164_vm10, %v4225_v4, %v4221_v1  ;;  %v2237_v12 = vmul.f32 0.020408163, %v1049_v5  ;;  %v2236_v15 = vmul.f32 0.020408163, %v1046_v13  ;;  %v1275_v5 = vsel %vm527_vm0, %v264_v56, 0.0 }
 0x1e6   :  { %v4231_v20 = vsel %vm11165_vm11, %v4230_v2, %v4226_v11  ;;  %v1272_v13 = vsel %vm527_vm0, %v263_v58, 0.0 }
 0x1e7   :  { %v4240_v21 = vrot.slane %v2237_v12, %v7264_v53  ;;  %v4235_v16 = vrot.slane %v2236_v15, %v7270_v57  ;;  %1258 = vadd.xlane.f32.xlu1 %v1257_v8  ;;  %1255 = vadd.xlane.f32.xlu0 %v1254_v10  ;;  %v266_v12 = vld [vmem:[%s11159_s0 + $0x7d8] sm:$0xff]  ;;  %v265_v15 = vld [vmem:[%s11159_s0 + $0x7d0] sm:$0xff] }
 0x1e8   :  { %v1055_v23 = vpop.xlane.xlu1 %1054  ;;  %v1052_v24 = vpop.xlane.xlu0 %1051 }
 0x1e9   :  { %v4236_v29 = vsel %vm11163_vm12, %v4235_v16, %v4231_v20  ;;  %v2239_v33 = vmul.f32 0.020408163, %v1055_v23  ;;  %v2238_v34 = vmul.f32 0.020408163, %v1052_v24  ;;  %v1281_v16 = vsel %vm527_vm0, %v266_v12, 0.0 }
 0x1ea   :  { %v4241_v38 = vsel %vm3446_vm13, %v4240_v21, %v4236_v29  ;;  %v1278_v23 = vsel %vm527_vm0, %v265_v15, 0.0  ;;  %v268_v29 = vld [vmem:[%s11159_s0 + $0x7e8] sm:$0xff] }
 0x1eb   :  { %v4250_v44 = vrot.slane %v2239_v33, %v7289_v9  ;;  %v4245_v47 = vrot.slane %v2238_v34, %v7284_v6  ;;  %1264 = vadd.xlane.f32.xlu1 %v1263_v25  ;;  %1261 = vadd.xlane.f32.xlu0 %v1260_v27  ;;  %v267_v33 = vld [vmem:[%s11159_s0 + $0x7e0] sm:$0xff] }
 0x1ec   :  { %v1061_v48 = vpop.xlane.xlu1 %1060  ;;  %v1058_v49 = vpop.xlane.xlu0 %1057 }
 0x1ed   :  { %v2241_v54 = vmul.f32 0.020408163, %v1061_v48  ;;  %v2240_v55 = vmul.f32 0.020408163, %v1058_v49  ;;  %v4246_v59 = vsel %vm3453_vm14, %v4245_v47, %v4241_v38  ;;  %v1287_v47 = vsel %vm527_vm0, %v268_v29, 0.0  ;;  %v273_v29 = vld [vmem:[%s11159_s0 + $0x810] sm:$0xff] }
 0x1ee   :  { %v8283_v63 = vsel %vm3460_vm15, %v4250_v44, %v4246_v59  ;;  %v1284_v48 = vsel %vm527_vm0, %v267_v33, 0.0 }
 0x1ef   :  { %11190 = vst [vmem:[#allocation15_spill] sm:$0xff] %v8283_v63  ;;  %v4259_v0 = vrot.slane %v2241_v54, %v7167_v31  ;;  %v4255_v1 = vrot.slane %v2240_v55, %v7161_v28  ;;  %1270 = vadd.xlane.f32.xlu1 %v1269_v50  ;;  %1267 = vadd.xlane.f32.xlu0 %v1266_v52  ;;  %v270_v54 = vld [vmem:[%s11159_s0 + $0x7f8] sm:$0xff]  ;;  %v269_v55 = vld [vmem:[%s11159_s0 + $0x7f0] sm:$0xff] }
 0x1f0   :  { %v1067_v2 = vpop.xlane.xlu1 %1066  ;;  %v1064_v4 = vpop.xlane.xlu0 %1063 }
 0x1f1   :  { %v4260_v8 = vsel %vm3362_vm1, %v4259_v0, %v4255_v1  ;;  %v2243_v10 = vmul.f32 0.020408163, %v1067_v2  ;;  %v2242_v11 = vmul.f32 0.020408163, %v1064_v4  ;;  %v1293_v2 = vsel %vm527_vm0, %v270_v54, 0.0  ;;  %v275_v54 = vld [vmem:[%s11159_s0 + $0x820] sm:$0xff] }
 0x1f2   :  { %v1290_v4 = vsel %vm527_vm0, %v269_v55, 0.0 }
 0x1f3   :  { %v4269_v17 = vrot.slane %v2243_v10, %v7164_v30  ;;  %v4264_v18 = vrot.slane %v2242_v11, %v7170_v32  ;;  %1276 = vadd.xlane.f32.xlu1 %v1275_v5  ;;  %1273 = vadd.xlane.f32.xlu0 %v1272_v13  ;;  %v272_v10 = vld [vmem:[%s11159_s0 + $0x808] sm:$0xff]  ;;  %v271_v11 = vld [vmem:[%s11159_s0 + $0x800] sm:$0xff] }
 0x1f4   :  { %v1073_v20 = vpop.xlane.xlu1 %1072  ;;  %v1070_v21 = vpop.xlane.xlu0 %1069 }
 0x1f5   :  { %v4265_v24 = vsel %vm3369_vm2, %v4264_v18, %v4260_v8  ;;  %v2245_v25 = vmul.f32 0.020408163, %v1073_v20  ;;  %v2244_v27 = vmul.f32 0.020408163, %v1070_v21  ;;  %v1299_v21 = vsel %vm527_vm0, %v272_v10, 0.0  ;;  %v277_v10 = vld [vmem:[%s11159_s0 + $0x830] sm:$0xff] }
 0x1f6   :  { %v4270_v34 = vsel %vm3376_vm3, %v4269_v17, %v4265_v24 }
 0x1f7   :  { %v4279_v36 = vrot.slane %v2245_v25, %v7181_v42  ;;  %v4274_v37 = vrot.slane %v2244_v27, %v7184_v43  ;;  %1282 = vadd.xlane.f32.xlu1 %v1281_v16  ;;  %1279 = vadd.xlane.f32.xlu0 %v1278_v23  ;;  %v1296_v16 = vsel %vm527_vm0, %v271_v11, 0.0  ;;  %v274_v27 = vld [vmem:[%s11159_s0 + $0x818] sm:$0xff] }
 0x1f8   :  { %v1079_v38 = vpop.xlane.xlu1 %1078  ;;  %v1076_v44 = vpop.xlane.xlu0 %1075 }
 0x1f9   :  { %v4275_v49 = vsel %vm3383_vm4, %v4274_v37, %v4270_v34  ;;  %v2247_v50 = vmul.f32 0.020408163, %v1079_v38  ;;  %v2246_v52 = vmul.f32 0.020408163, %v1076_v44  ;;  %v1305_v44 = vsel %vm527_vm0, %v274_v27, 0.0 }
 0x1fa   :  { %v4280_v56 = vsel %vm3390_vm5, %v4279_v36, %v4275_v49 }
 0x1fb   :  { %v4289_v58 = vrot.slane %v2247_v50, %v7203_v60  ;;  %v4284_v59 = vrot.slane %v2246_v52, %v7206_v61  ;;  %1288 = vadd.xlane.f32.xlu1 %v1287_v47  ;;  %1285 = vadd.xlane.f32.xlu0 %v1284_v48  ;;  %v1302_v47 = vsel %vm527_vm0, %v273_v29, 0.0  ;;  %v276_v52 = vld [vmem:[%s11159_s0 + $0x828] sm:$0xff] }
 0x1fc   :  { %v1085_v0 = vpop.xlane.xlu1 %1084  ;;  %v1082_v1 = vpop.xlane.xlu0 %1081 }
 0x1fd   :  { %v4285_v5 = vsel %vm3397_vm6, %v4284_v59, %v4280_v56  ;;  %v2249_v13 = vmul.f32 0.020408163, %v1085_v0  ;;  %v2248_v8 = vmul.f32 0.020408163, %v1082_v1  ;;  %v1311_v1 = vsel %vm527_vm0, %v276_v52, 0.0  ;;  %v281_v52 = vld [vmem:[%s11159_s0 + $0x850] sm:$0xff] }
 0x1fe   :  { %v4290_v12 = vsel %vm3404_vm7, %v4289_v58, %v4285_v5 }
 0x1ff   :  { %v4299_v15 = vrot.slane %v2249_v13, %v7224_v14  ;;  %v4294_v17 = vrot.slane %v2248_v8, %v7230_v19  ;;  %1294 = vadd.xlane.f32.xlu1 %v1293_v2  ;;  %1291 = vadd.xlane.f32.xlu0 %v1290_v4  ;;  %v1308_v2 = vsel %vm527_vm0, %v275_v54, 0.0  ;;  %v278_v8 = vld [vmem:[%s11159_s0 + $0x838] sm:$0xff] }
 0x200   :  { %v1091_v18 = vpop.xlane.xlu1 %1090  ;;  %v1088_v20 = vpop.xlane.xlu0 %1087 }
 0x201   :  { %v4295_v23 = vsel %vm3411_vm8, %v4294_v17, %v4290_v12  ;;  %v2251_v24 = vmul.f32 0.020408163, %v1091_v18  ;;  %v2250_v25 = vmul.f32 0.020408163, %v1088_v20  ;;  %v1317_v20 = vsel %vm527_vm0, %v278_v8, 0.0 }
 0x202   :  { %v4300_v33 = vsel %vm11176_vm9, %v4299_v15, %v4295_v23 }
 0x203   :  { %v4309_v34 = vrot.slane %v2251_v24, %v7244_v35  ;;  %v4304_v36 = vrot.slane %v2250_v25, %v7250_v39  ;;  %1300 = vadd.xlane.f32.xlu1 %v1299_v21  ;;  %1297 = vadd.xlane.f32.xlu0 %v1296_v16  ;;  %v1314_v21 = vsel %vm527_vm0, %v277_v10, 0.0  ;;  %v280_v24 = vld [vmem:[%s11159_s0 + $0x848] sm:$0xff]  ;;  %v279_v25 = vld [vmem:[%s11159_s0 + $0x840] sm:$0xff] }
 0x204   :  { %v1097_v37 = vpop.xlane.xlu1 %1096  ;;  %v1094_v38 = vpop.xlane.xlu0 %1093 }
 0x205   :  { %v4305_v48 = vsel %vm11164_vm10, %v4304_v36, %v4300_v33  ;;  %v2253_v49 = vmul.f32 0.020408163, %v1097_v37  ;;  %v2252_v50 = vmul.f32 0.020408163, %v1094_v38  ;;  %v1323_v38 = vsel %vm527_vm0, %v280_v24, 0.0  ;;  %v285_v24 = vld [vmem:[%s11159_s0 + $0x870] sm:$0xff] }
 0x206   :  { %v4310_v55 = vsel %vm11165_vm11, %v4309_v34, %v4305_v48 }
 0x207   :  { %v4319_v56 = vrot.slane %v2253_v49, %v7264_v53  ;;  %v4314_v58 = vrot.slane %v2252_v50, %v7270_v57  ;;  %1306 = vadd.xlane.f32.xlu1 %v1305_v44  ;;  %1303 = vadd.xlane.f32.xlu0 %v1302_v47  ;;  %v1320_v44 = vsel %vm527_vm0, %v279_v25, 0.0  ;;  %v282_v50 = vld [vmem:[%s11159_s0 + $0x858] sm:$0xff] }
 0x208   :  { %v1103_v59 = vpop.xlane.xlu1 %1102  ;;  %v1100_v0 = vpop.xlane.xlu0 %1099 }
 0x209   :  { %v4315_v4 = vsel %vm11163_vm12, %v4314_v58, %v4310_v55  ;;  %v2255_v5 = vmul.f32 0.020408163, %v1103_v59  ;;  %v2254_v13 = vmul.f32 0.020408163, %v1100_v0  ;;  %v1329_v59 = vsel %vm527_vm0, %v282_v50, 0.0  ;;  %v287_v50 = vld [vmem:[%s11159_s0 + $0x880] sm:$0xff] }
 0x20a   :  { %v4320_v11 = vsel %vm3446_vm13, %v4319_v56, %v4315_v4  ;;  %v1326_v0 = vsel %vm527_vm0, %v281_v52, 0.0 }
 0x20b   :  { %v4329_v12 = vrot.slane %v2255_v5, %v7289_v9  ;;  %v4324_v15 = vrot.slane %v2254_v13, %v7284_v6  ;;  %1312 = vadd.xlane.f32.xlu1 %v1311_v1  ;;  %1309 = vadd.xlane.f32.xlu0 %v1308_v2  ;;  %v284_v5 = vld [vmem:[%s11159_s0 + $0x868] sm:$0xff]  ;;  %v283_v13 = vld [vmem:[%s11159_s0 + $0x860] sm:$0xff] }
 0x20c   :  { %v1109_v17 = vpop.xlane.xlu1 %1108  ;;  %v1106_v18 = vpop.xlane.xlu0 %1105 }
 0x20d   :  { %v2257_v16 = vmul.f32 0.020408163, %v1109_v17  ;;  %v2256_v23 = vmul.f32 0.020408163, %v1106_v18  ;;  %v4325_v27 = vsel %vm3453_vm14, %v4324_v15, %v4320_v11  ;;  %v1335_v17 = vsel %vm527_vm0, %v284_v5, 0.0  ;;  %v290_v5 = vld [vmem:[%s11159_s0 + $0x898] sm:$0xff] }
 0x20e   :  { %v8380_v29 = vsel %vm3460_vm15, %v4329_v12, %v4325_v27  ;;  %v1332_v18 = vsel %vm527_vm0, %v283_v13, 0.0  ;;  %v289_v13 = vld [vmem:[%s11159_s0 + $0x890] sm:$0xff] }
 0x20f   :  { %11191 = vst [vmem:[#allocation16_spill] sm:$0xff] %v8380_v29  ;;  %v4338_v33 = vrot.slane %v2257_v16, %v7167_v31  ;;  %v4334_v34 = vrot.slane %v2256_v23, %v7161_v28  ;;  %1318 = vadd.xlane.f32.xlu1 %v1317_v20  ;;  %1315 = vadd.xlane.f32.xlu0 %v1314_v21  ;;  %v286_v23 = vld [vmem:[%s11159_s0 + $0x878] sm:$0xff] }
 0x210   :  { %v1115_v36 = vpop.xlane.xlu1 %1114  ;;  %v1112_v37 = vpop.xlane.xlu0 %1111 }
 0x211   :  { %v4339_v47 = vsel %vm3362_vm1, %v4338_v33, %v4334_v34  ;;  %v2259_v48 = vmul.f32 0.020408163, %v1115_v36  ;;  %v2258_v49 = vmul.f32 0.020408163, %v1112_v37  ;;  %v1341_v37 = vsel %vm527_vm0, %v286_v23, 0.0  ;;  %v292_v23 = vld [vmem:[%s11159_s0 + $0x8a8] sm:$0xff] }
 0x213   :  { %v4348_v54 = vrot.slane %v2259_v48, %v7164_v30  ;;  %v4343_v55 = vrot.slane %v2258_v49, %v7170_v32  ;;  %1324 = vadd.xlane.f32.xlu1 %v1323_v38  ;;  %1321 = vadd.xlane.f32.xlu0 %v1320_v44  ;;  %v1338_v38 = vsel %vm527_vm0, %v285_v24, 0.0  ;;  %v288_v49 = vld [vmem:[%s11159_s0 + $0x888] sm:$0xff]  ;;  %v291_v24 = vld [vmem:[%s11159_s0 + $0x8a0] sm:$0xff] }
 0x214   :  { %v1121_v56 = vpop.xlane.xlu1 %1120  ;;  %v1118_v58 = vpop.xlane.xlu0 %1117 }
 0x215   :  { %v4344_v1 = vsel %vm3369_vm2, %v4343_v55, %v4339_v47  ;;  %v2261_v2 = vmul.f32 0.020408163, %v1121_v56  ;;  %v2260_v4 = vmul.f32 0.020408163, %v1118_v58 }
 0x216   :  { %v4349_v8 = vsel %vm3376_vm3, %v4348_v54, %v4344_v1 }
 0x217   :  { %v4358_v10 = vrot.slane %v2261_v2, %v7181_v42  ;;  %v4353_v11 = vrot.slane %v2260_v4, %v7184_v43  ;;  %1330 = vadd.xlane.f32.xlu1 %v1329_v59  ;;  %1327 = vadd.xlane.f32.xlu0 %v1326_v0  ;;  %v1347_v59 = vsel %vm527_vm0, %v288_v49, 0.0  ;;  %v1344_v0 = vsel %vm527_vm0, %v287_v50, 0.0  ;;  %v294_v49 = vld [vmem:[%s11159_s0 + $0x8b8] sm:$0xff]  ;;  %v293_v50 = vld [vmem:[%s11159_s0 + $0x8b0] sm:$0xff] }
 0x218   :  { %v1127_v12 = vpop.xlane.xlu1 %1126  ;;  %v1124_v15 = vpop.xlane.xlu0 %1123 }
 0x219   :  { %v4354_v20 = vsel %vm3383_vm4, %v4353_v11, %v4349_v8  ;;  %v2263_v21 = vmul.f32 0.020408163, %v1127_v12  ;;  %v2262_v16 = vmul.f32 0.020408163, %v1124_v15 }
 0x21a   :  { %v4359_v25 = vsel %vm3390_vm5, %v4358_v10, %v4354_v20 }
 0x21b   :  { %v4368_v27 = vrot.slane %v2263_v21, %v7203_v60  ;;  %v4363_v33 = vrot.slane %v2262_v16, %v7206_v61  ;;  %1336 = vadd.xlane.f32.xlu1 %v1335_v17  ;;  %1333 = vadd.xlane.f32.xlu0 %v1332_v18  ;;  %v1353_v17 = vsel %vm527_vm0, %v290_v5, 0.0  ;;  %v1350_v18 = vsel %vm527_vm0, %v289_v13, 0.0  ;;  %v295_v5 = vld [vmem:[%s11159_s0 + $0x8c0] sm:$0xff] }
 0x21c   :  { %v1133_v34 = vpop.xlane.xlu1 %1132  ;;  %v1130_v36 = vpop.xlane.xlu0 %1129 }
 0x21d   :  { %v4364_v44 = vsel %vm3397_vm6, %v4363_v33, %v4359_v25  ;;  %v2265_v47 = vmul.f32 0.020408163, %v1133_v34  ;;  %v2264_v48 = vmul.f32 0.020408163, %v1130_v36 }
 0x21e   :  { %v4369_v52 = vsel %vm3404_vm7, %v4368_v27, %v4364_v44 }
 0x21f   :  { %v4378_v54 = vrot.slane %v2265_v47, %v7224_v14  ;;  %v4373_v55 = vrot.slane %v2264_v48, %v7230_v19  ;;  %1342 = vadd.xlane.f32.xlu1 %v1341_v37  ;;  %1339 = vadd.xlane.f32.xlu0 %v1338_v38  ;;  %v1359_v37 = vsel %vm527_vm0, %v292_v23, 0.0  ;;  %v1356_v38 = vsel %vm527_vm0, %v291_v24, 0.0 }
 0x220   :  { %v1139_v56 = vpop.xlane.xlu1 %1138  ;;  %v1136_v58 = vpop.xlane.xlu0 %1135 }
 0x221   :  { %v4374_v1 = vsel %vm3411_vm8, %v4373_v55, %v4369_v52  ;;  %v2267_v2 = vmul.f32 0.020408163, %v1139_v56  ;;  %v2266_v4 = vmul.f32 0.020408163, %v1136_v58 }
 0x222   :  { %v4379_v8 = vsel %vm11176_vm9, %v4378_v54, %v4374_v1 }
 0x223   :  { %v4388_v10 = vrot.slane %v2267_v2, %v7244_v35  ;;  %v4383_v11 = vrot.slane %v2266_v4, %v7250_v39  ;;  %1348 = vadd.xlane.f32.xlu1 %v1347_v59  ;;  %1345 = vadd.xlane.f32.xlu0 %v1344_v0  ;;  %v1365_v59 = vsel %vm527_vm0, %v294_v49, 0.0  ;;  %v1362_v0 = vsel %vm527_vm0, %v293_v50, 0.0  ;;  %v296_v4 = vld [vmem:[%s11159_s0 + $0x8c8] sm:$0xff] }
 0x224   :  { %v1145_v12 = vpop.xlane.xlu1 %1144  ;;  %v1142_v15 = vpop.xlane.xlu0 %1141  ;;  %v300_v49 = vld [vmem:[%s11159_s0 + $0x8e8] sm:$0xff] }
 0x225   :  { %v4384_v20 = vsel %vm11164_vm10, %v4383_v11, %v4379_v8  ;;  %v2269_v21 = vmul.f32 0.020408163, %v1145_v12  ;;  %v2268_v16 = vmul.f32 0.020408163, %v1142_v15  ;;  %v2605_v50 = vld [vmem:[%s11160_s1 + $0xe8] sm:$0xff] }
 0x226   :  { %v4389_v25 = vsel %vm11165_vm11, %v4388_v10, %v4384_v20  ;;  %v298_v20 = vld [vmem:[%s11159_s0 + $0x8d8] sm:$0xff] }
 0x227   :  { %v4398_v27 = vrot.slane %v2269_v21, %v7264_v53  ;;  %v4393_v33 = vrot.slane %v2268_v16, %v7270_v57  ;;  %1354 = vadd.xlane.f32.xlu1 %v1353_v17  ;;  %1351 = vadd.xlane.f32.xlu0 %v1350_v18  ;;  %v1371_v17 = vsel %vm527_vm0, %v296_v4, 0.0  ;;  %v1368_v18 = vsel %vm527_vm0, %v295_v5, 0.0  ;;  %v2607_v21 = vld [vmem:[%s11160_s1 + $0xf8] sm:$0xff]  ;;  %v2588_v4 = vld [vmem:[%s11160_s1 + $0x60] sm:$0xff] }
 0x228   :  { %v1151_v34 = vpop.xlane.xlu1 %1150  ;;  %v1148_v36 = vpop.xlane.xlu0 %1147  ;;  %6528 = vmatprep.subr.mxu0 %v2607_v21  ;;  %v2603_v21 = vld [vmem:[%s11160_s1 + $0xd8] sm:$0xff] }
 0x229   :  { %v4394_v44 = vsel %vm11163_vm12, %v4393_v33, %v4389_v25  ;;  %v2271_v47 = vmul.f32 0.020408163, %v1151_v34  ;;  %v2270_v48 = vmul.f32 0.020408163, %v1148_v36  ;;  %v297_v25 = vld [vmem:[%s11159_s0 + $0x8d0] sm:$0xff] }
 0x22a   :  { %v4399_v52 = vsel %vm3446_vm13, %v4398_v27, %v4394_v44  ;;  %v2591_v27 = vld [vmem:[%s11160_s1 + $0x78] sm:$0xff]  ;;  %v2606_v33 = vld [vmem:[%s11160_s1 + $0xf0] sm:$0xff] }
 0x22b   :  { %v4408_v54 = vrot.slane %v2271_v47, %v7289_v9  ;;  %v4403_v55 = vrot.slane %v2270_v48, %v7284_v6  ;;  %1360 = vadd.xlane.f32.xlu1 %v1359_v37  ;;  %1357 = vadd.xlane.f32.xlu0 %v1356_v38  ;;  %v2590_v37 = vld [vmem:[%s11160_s1 + $0x70] sm:$0xff]  ;;  %v1377_v47 = vsel %vm527_vm0, %v298_v20, 0.0  ;;  %v1374_v48 = vsel %vm527_vm0, %v297_v25, 0.0 }
 0x22c   :  { %v1157_v56 = vpop.xlane.xlu1 %1156  ;;  %v1154_v58 = vpop.xlane.xlu0 %1153  ;;  %6529 = vmatpush3.msra.mxu0 %v2591_v27  ;;  %v301_v20 = vld [vmem:[%s11159_s0 + $0x8f0] sm:$0xff] }
 0x22d   :  { %v2273_v1 = vmul.f32 0.020408163, %v1157_v56  ;;  %v2272_v2 = vmul.f32 0.020408163, %v1154_v58  ;;  %v4404_v13 = vsel %vm3453_vm14, %v4403_v55, %v4399_v52  ;;  %6530 = vmatprep.subr.mxu0 %v2606_v33  ;;  %v299_v56 = vld [vmem:[%s11159_s0 + $0x8e0] sm:$0xff]  ;;  %v2589_v58 = vld [vmem:[%s11160_s1 + $0x68] sm:$0xff] }
 0x22e   :  { %v8477_v8 = vsel %vm3460_vm15, %v4408_v54, %v4404_v13  ;;  %6531 = vmatpush3.msra.mxu0 %v2590_v37  ;;  %v2602_v27 = vld [vmem:[%s11160_s1 + $0xd0] sm:$0xff]  ;;  %v1386_v37 = vsel %vm527_vm0, %v301_v20, 0.0 }
 0x22f   :  { %11192 = vst [vmem:[#allocation17_spill] sm:$0xff] %v8477_v8  ;;  %v4417_v10 = vrot.slane %v2273_v1, %v7167_v31  ;;  %v4413_v11 = vrot.slane %v2272_v2, %v7161_v28  ;;  %1366 = vadd.xlane.f32.xlu1 %v1365_v59  ;;  %1363 = vadd.xlane.f32.xlu0 %v1362_v0  ;;  %v2604_v0 = vld [vmem:[%s11160_s1 + $0xe0] sm:$0xff] }
 0x230   :  { %v1163_v12 = vpop.xlane.xlu1 %1162  ;;  %v1160_v15 = vpop.xlane.xlu0 %1159  ;;  %6532 = vmatprep.subr.mxu0 %v2605_v50  ;;  %v2586_v50 = vld [vmem:[%s11160_s1 + $0x50] sm:$0xff] }
 0x231   :  { %v4418_v16 = vsel %vm3362_vm1, %v4417_v10, %v4413_v11  ;;  %v2275_v23 = vmul.f32 0.020408163, %v1163_v12  ;;  %v2274_v24 = vmul.f32 0.020408163, %v1160_v15  ;;  %v1383_v10 = vsel %vm527_vm0, %v300_v49, 0.0  ;;  %v302_v12 = vld [vmem:[%s11159_s0 + $0x8f8] sm:$0xff]  ;;  %6533 = vmatpush3.msra.mxu0 %v2589_v58 }
 0x232   :  { %v1380_v11 = vsel %vm527_vm0, %v299_v56, 0.0  ;;  %6534 = vmatprep.subr.mxu0 %v2604_v0  ;;  %v303_v49 = vld [vmem:[%s11159_s0 + $0x900] sm:$0xff]  ;;  %v2585_v58 = vld [vmem:[%s11160_s1 + $0x48] sm:$0xff] }
 0x233   :  { %v4427_v34 = vrot.slane %v2275_v23, %v7164_v30  ;;  %v4422_v36 = vrot.slane %v2274_v24, %v7170_v32  ;;  %1372 = vadd.xlane.f32.xlu1 %v1371_v17  ;;  %1369 = vadd.xlane.f32.xlu0 %v1368_v18  ;;  %v2587_v23 = vld [vmem:[%s11160_s1 + $0x58] sm:$0xff] }
 0x234   :  { %v1169_v38 = vpop.xlane.xlu1 %1168  ;;  %v1166_v44 = vpop.xlane.xlu0 %1165  ;;  %6535 = vmatpush3.msra.mxu0 %v2588_v4  ;;  %v306_v4 = vld [vmem:[%s11159_s0 + $0x918] sm:$0xff] }
 0x235   :  { %v4423_v52 = vsel %vm3369_vm2, %v4422_v36, %v4418_v16  ;;  %v2277_v54 = vmul.f32 0.020408163, %v1169_v38  ;;  %v2276_v55 = vmul.f32 0.020408163, %v1166_v44  ;;  %v1389_v36 = vsel %vm527_vm0, %v302_v12, 0.0  ;;  %v304_v38 = vld [vmem:[%s11159_s0 + $0x908] sm:$0xff]  ;;  %6536 = vmatprep.subr.mxu0 %v2603_v21 }
 0x236   :  { %v4428_v59 = vsel %vm3376_vm3, %v4427_v34, %v4423_v52  ;;  %6537 = vmatpush3.msra.mxu0 %v2587_v23  ;;  %v2600_v12 = vld [vmem:[%s11160_s1 + $0xc0] sm:$0xff]  ;;  %v2599_v21 = vld [vmem:[%s11160_s1 + $0xb8] sm:$0xff] }
 0x237   :  { %v4437_v1 = vrot.slane %v2277_v54, %v7181_v42  ;;  %v4432_v2 = vrot.slane %v2276_v55, %v7184_v43  ;;  %1378 = vadd.xlane.f32.xlu1 %v1377_v47  ;;  %1375 = vadd.xlane.f32.xlu0 %v1374_v48  ;;  %v2601_v54 = vld [vmem:[%s11160_s1 + $0xc8] sm:$0xff] }
 0x238   :  { %v1175_v5 = vpop.xlane.xlu1 %1174  ;;  %v1172_v13 = vpop.xlane.xlu0 %1171  ;;  %6538 = vmatprep.subr.mxu0 %v2602_v27  ;;  %v308_v27 = vld [vmem:[%s11159_s0 + $0x928] sm:$0xff] }
 0x239   :  { %v4433_v15 = vsel %vm3383_vm4, %v4432_v2, %v4428_v59  ;;  %v2279_v17 = vmul.f32 0.020408163, %v1175_v5  ;;  %v2278_v18 = vmul.f32 0.020408163, %v1172_v13  ;;  %v1392_v2 = vsel %vm527_vm0, %v303_v49, 0.0  ;;  %6539 = vmatpush3.msra.mxu0 %v2586_v50  ;;  %v2582_v50 = vld [vmem:[%s11160_s1 + $0x30] sm:$0xff] }
 0x23a   :  { %v4438_v16 = vsel %vm3390_vm5, %v4437_v1, %v4433_v15  ;;  %v1395_v1 = vsel %vm527_vm0, %v304_v38, 0.0  ;;  %6540 = vmatprep.subr.mxu0 %v2601_v54  ;;  %v2583_v38 = vld [vmem:[%s11160_s1 + $0x38] sm:$0xff] }
 0x23b   :  { %v4447_v24 = vrot.slane %v2279_v17, %v7203_v60  ;;  %v4442_v25 = vrot.slane %v2278_v18, %v7206_v61  ;;  %1384 = vadd.xlane.f32.xlu1 %v1383_v10  ;;  %1381 = vadd.xlane.f32.xlu0 %v1380_v11  ;;  %v305_v11 = vld [vmem:[%s11159_s0 + $0x910] sm:$0xff]  ;;  %v2584_v17 = vld [vmem:[%s11160_s1 + $0x40] sm:$0xff] }
 0x23c   :  { %v1181_v33 = vpop.xlane.xlu1 %1180  ;;  %v1178_v34 = vpop.xlane.xlu0 %1177  ;;  %6541 = vmatpush3.msra.mxu0 %v2585_v58  ;;  %v310_v58 = vld [vmem:[%s11159_s0 + $0x938] sm:$0xff] }
 0x23d   :  { %v4443_v44 = vsel %vm3397_vm6, %v4442_v25, %v4438_v16  ;;  %v2281_v47 = vmul.f32 0.020408163, %v1181_v33  ;;  %v2280_v48 = vmul.f32 0.020408163, %v1178_v34  ;;  %v1398_v25 = vsel %vm527_vm0, %v305_v11, 0.0  ;;  %6542 = vmatprep.subr.mxu0 %v2600_v12  ;;  %v2596_v12 = vld [vmem:[%s11160_s1 + $0xa0] sm:$0xff] }
 0x23e   :  { %v4448_v52 = vsel %vm3404_vm7, %v4447_v24, %v4443_v44  ;;  %v1401_v24 = vsel %vm527_vm0, %v306_v4, 0.0  ;;  %6543 = vmatpush3.msra.mxu0 %v2584_v17  ;;  %v2597_v4 = vld [vmem:[%s11160_s1 + $0xa8] sm:$0xff] }
 0x23f   :  { %v4457_v55 = vrot.slane %v2281_v47, %v7224_v14  ;;  %v4452_v56 = vrot.slane %v2280_v48, %v7230_v19  ;;  %1390 = vadd.xlane.f32.xlu1 %v1389_v36  ;;  %1387 = vadd.xlane.f32.xlu0 %v1386_v37  ;;  %v307_v37 = vld [vmem:[%s11159_s0 + $0x920] sm:$0xff]  ;;  %v2598_v47 = vld [vmem:[%s11160_s1 + $0xb0] sm:$0xff] }
 0x240   :  { %v1187_v59 = vpop.xlane.xlu1 %1186  ;;  %v1184_v0 = vpop.xlane.xlu0 %1183  ;;  %6544 = vmatprep.subr.mxu0 %v2599_v21  ;;  %v312_v21 = vld [vmem:[%s11159_s0 + $0x948] sm:$0xff] }
 0x241   :  { %v4453_v5 = vsel %vm3411_vm8, %v4452_v56, %v4448_v52  ;;  %v2283_v13 = vmul.f32 0.020408163, %v1187_v59  ;;  %v2282_v10 = vmul.f32 0.020408163, %v1184_v0  ;;  %v1404_v56 = vsel %vm527_vm0, %v307_v37, 0.0  ;;  %6545 = vmatpush3.msra.mxu0 %v2583_v38  ;;  %v2579_v38 = vld [vmem:[%s11160_s1 + $0x18] sm:$0xff] }
 0x242   :  { %v4458_v15 = vsel %vm11176_vm9, %v4457_v55, %v4453_v5  ;;  %v1407_v55 = vsel %vm527_vm0, %v308_v27, 0.0  ;;  %6546 = vmatprep.subr.mxu0 %v2598_v47  ;;  %v2581_v5 = vld [vmem:[%s11160_s1 + $0x28] sm:$0xff] }
 0x243   :  { %v4467_v18 = vrot.slane %v2283_v13, %v7244_v35  ;;  %v4462_v20 = vrot.slane %v2282_v10, %v7250_v39  ;;  %1396 = vadd.xlane.f32.xlu1 %v1395_v1  ;;  %1393 = vadd.xlane.f32.xlu0 %v1392_v2  ;;  %v309_v2 = vld [vmem:[%s11159_s0 + $0x930] sm:$0xff] }
 0x244   :  { %v1193_v16 = vpop.xlane.xlu1 %1192  ;;  %v1190_v23 = vpop.xlane.xlu0 %1189  ;;  %6547 = vmatpush3.msra.mxu0 %v2582_v50  ;;  %v314_v50 = vld [vmem:[%s11159_s0 + $0x958] sm:$0xff] }
 0x245   :  { %v4463_v33 = vsel %vm11164_vm10, %v4462_v20, %v4458_v15  ;;  %v2285_v34 = vmul.f32 0.020408163, %v1193_v16  ;;  %v2284_v36 = vmul.f32 0.020408163, %v1190_v23  ;;  %v1410_v20 = vsel %vm527_vm0, %v309_v2, 0.0  ;;  %6548 = vmatprep.subr.mxu0 %v2597_v4  ;;  %v2593_v2 = vld [vmem:[%s11160_s1 + $0x88] sm:$0xff] }
 0x246   :  { %v4468_v44 = vsel %vm11165_vm11, %v4467_v18, %v4463_v33  ;;  %v1413_v18 = vsel %vm527_vm0, %v310_v58, 0.0  ;;  %6549 = vmatpush3.msra.mxu0 %v2581_v5  ;;  %v2595_v33 = vld [vmem:[%s11160_s1 + $0x98] sm:$0xff]  ;;  %v2594_v58 = vld [vmem:[%s11160_s1 + $0x90] sm:$0xff] }
 0x247   :  { %v4477_v48 = vrot.slane %v2285_v34, %v7264_v53  ;;  %v4472_v49 = vrot.slane %v2284_v36, %v7270_v57  ;;  %1402 = vadd.xlane.f32.xlu1 %v1401_v24  ;;  %1399 = vadd.xlane.f32.xlu0 %v1398_v25  ;;  %v311_v24 = vld [vmem:[%s11159_s0 + $0x940] sm:$0xff] }
 0x248   :  { %v1199_v52 = vpop.xlane.xlu1 %1198  ;;  %v1196_v54 = vpop.xlane.xlu0 %1195  ;;  %v2580_v25 = vld [vmem:[%s11160_s1 + $0x20] sm:$0xff]  ;;  %6550 = vmatprep.subr.mxu0 %v2596_v12 }
 0x249   :  { %v4473_v59 = vsel %vm11163_vm12, %v4472_v49, %v4468_v44  ;;  %v2287_v0 = vmul.f32 0.020408163, %v1199_v52  ;;  %v2286_v1 = vmul.f32 0.020408163, %v1196_v54  ;;  %v1416_v49 = vsel %vm527_vm0, %v311_v24, 0.0  ;;  %6551 = vmatpush3.msra.mxu0 %v2580_v25  ;;  %v2576_v25 = vld [vmem:[%s11160_s1] sm:$0xff] }
 0x24a   :  { %v4478_v13 = vsel %vm3446_vm13, %v4477_v48, %v4473_v59  ;;  %v1419_v48 = vsel %vm527_vm0, %v312_v21, 0.0  ;;  %6552 = vmatprep.subr.mxu0 %v2595_v33  ;;  %v2578_v59 = vld [vmem:[%s11160_s1 + $0x10] sm:$0xff] }
 0x24b   :  { %v4487_v10 = vrot.slane %v2287_v0, %v7289_v9  ;;  %v4482_v11 = vrot.slane %v2286_v1, %v7284_v6  ;;  %1408 = vadd.xlane.f32.xlu1 %v1407_v55  ;;  %1405 = vadd.xlane.f32.xlu0 %v1404_v56  ;;  %v313_v56 = vld [vmem:[%s11159_s0 + $0x950] sm:$0xff] }
 0x24c   :  { %v1205_v15 = vpop.xlane.xlu1 %1204  ;;  %v1202_v17 = vpop.xlane.xlu0 %1201  ;;  %6553 = vmatpush3.msra.mxu0 %v2579_v38 }
 0x24d   :  { %v2289_v16 = vmul.f32 0.020408163, %v1205_v15  ;;  %v2288_v23 = vmul.f32 0.020408163, %v1202_v17  ;;  %v4483_v27 = vsel %vm3453_vm14, %v4482_v11, %v4478_v13  ;;  %v1425_v13 = vsel %vm527_vm0, %v314_v50, 0.0  ;;  %v316_v11 = vld [vmem:[%s11159_s0 + $0x968] sm:$0xff]  ;;  %6554 = vmatprep.subr.mxu0 %v2594_v58 }
 0x24e   :  { %v8649_v34 = vsel %vm3460_vm15, %v4487_v10, %v4483_v27  ;;  %v1422_v10 = vsel %vm527_vm0, %v313_v56, 0.0  ;;  %6555 = vmatpush3.msra.mxu0 %v2578_v59 }
 0x24f   :  { %11193 = vst [vmem:[#allocation18_spill] sm:$0xff] %v8649_v34  ;;  %v4496_v36 = vrot.slane %v2289_v16, %v7167_v31  ;;  %v4492_v37 = vrot.slane %v2288_v23, %v7161_v28  ;;  %1414 = vadd.xlane.f32.xlu1 %v1413_v18  ;;  %1411 = vadd.xlane.f32.xlu0 %v1410_v20  ;;  %v315_v18 = vld [vmem:[%s11159_s0 + $0x960] sm:$0xff]  ;;  %v2577_v20 = vld [vmem:[%s11160_s1 + $0x8] sm:$0xff] }
 0x250   :  { %v1211_v44 = vpop.xlane.xlu1 %1210  ;;  %v1208_v47 = vpop.xlane.xlu0 %1207  ;;  %6556 = vmatprep.subr.mxu0 %v2593_v2  ;;  %v2592_v16 = vld [vmem:[%s11160_s1 + $0x80] sm:$0xff] }
 0x251   :  { %v4497_v52 = vsel %vm3362_vm1, %v4496_v36, %v4492_v37  ;;  %v2291_v54 = vmul.f32 0.020408163, %v1211_v44  ;;  %v2290_v55 = vmul.f32 0.020408163, %v1208_v47  ;;  %v1431_v36 = vsel %vm527_vm0, %v316_v11, 0.0  ;;  %6557 = vmatpush3.msra.mxu0 %v2577_v20 }
 0x252   :  { %v1428_v37 = vsel %vm527_vm0, %v315_v18, 0.0  ;;  %6558 = vmatprep.subr.mxu0 %v2592_v16 }
 0x253   :  { %v4506_v0 = vrot.slane %v2291_v54, %v7164_v30  ;;  %v4501_v1 = vrot.slane %v2290_v55, %v7170_v32  ;;  %1420 = vadd.xlane.f32.xlu1 %v1419_v48  ;;  %1417 = vadd.xlane.f32.xlu0 %v1416_v49  ;;  %v319_v48 = vld [vmem:[%s11159_s0 + $0x980] sm:$0xff]  ;;  %v317_v49 = vld [vmem:[%s11159_s0 + $0x970] sm:$0xff] }
 0x254   :  { %v1217_v4 = vpop.xlane.xlu1 %1216  ;;  %v1214_v5 = vpop.xlane.xlu0 %1213  ;;  %6559 = vmatpush3.msra.mxu0 %v2576_v25  ;;  %v1440_v58 = vsel %vm527_vm0, %v319_v48, 0.0  ;;  %v1434_v59 = vsel %vm527_vm0, %v317_v49, 0.0 }
 0x255   :  { %v4502_v12 = vsel %vm3369_vm2, %v4501_v1, %v4497_v52  ;;  %v2293_v15 = vmul.f32 0.020408163, %v1217_v4  ;;  %v2292_v17 = vmul.f32 0.020408163, %v1214_v5  ;;  %v321_v4 = vld [vmem:[%s11159_s0 + $0x990] sm:$0xff]  ;;  %v320_v5 = vld [vmem:[%s11159_s0 + $0x988] sm:$0xff] }
 0x256   :  { %v4507_v21 = vsel %vm3376_vm3, %v4506_v0, %v4502_v12  ;;  %v1443_v18 = vsel %vm527_vm0, %v320_v5, 0.0 }
 0x257   :  { %v4516_v23 = vrot.slane %v2293_v15, %v7181_v42  ;;  %v4511_v24 = vrot.slane %v2292_v17, %v7184_v43  ;;  %1426 = vadd.xlane.f32.xlu1 %v1425_v13  ;;  %1423 = vadd.xlane.f32.xlu0 %v1422_v10  ;;  %v1446_v17 = vsel %vm527_vm0, %v321_v4, 0.0 }
 0x258   :  { %v1223_v27 = vpop.xlane.xlu1 %1222  ;;  %v1220_v33 = vpop.xlane.xlu0 %1219 }
 0x259   :  { %v4512_v38 = vsel %vm3383_vm4, %v4511_v24, %v4507_v21  ;;  %v2295_v44 = vmul.f32 0.020408163, %v1223_v27  ;;  %v2294_v47 = vmul.f32 0.020408163, %v1220_v33  ;;  %v322_v24 = vld [vmem:[%s11159_s0 + $0x998] sm:$0xff] }
 0x25a   :  { %v4517_v50 = vsel %vm3390_vm5, %v4516_v23, %v4512_v38  ;;  %v323_v23 = vld [vmem:[%s11159_s0 + $0x9a0] sm:$0xff] }
 0x25b   :  { %v4526_v52 = vrot.slane %v2295_v44, %v7203_v60  ;;  %v4521_v54 = vrot.slane %v2294_v47, %v7206_v61  ;;  %1432 = vadd.xlane.f32.xlu1 %v1431_v36  ;;  %1429 = vadd.xlane.f32.xlu0 %v1428_v37  ;;  %v1452_v38 = vsel %vm527_vm0, %v323_v23, 0.0  ;;  %v1449_v44 = vsel %vm527_vm0, %v322_v24, 0.0  ;;  %v329_v24 = vld [vmem:[%s11159_s0 + $0x9d0] sm:$0xff] }
 0x25c   :  { %v1229_v55 = vpop.xlane.xlu1 %1228  ;;  %v1226_v56 = vpop.xlane.xlu0 %1225 }
 0x25d   :  { %v4522_v0 = vsel %vm3397_vm6, %v4521_v54, %v4517_v50  ;;  %v2297_v1 = vmul.f32 0.020408163, %v1229_v55  ;;  %v2296_v2 = vmul.f32 0.020408163, %v1226_v56  ;;  %v325_v50 = vld [vmem:[%s11159_s0 + $0x9b0] sm:$0xff] }
 0x25e   :  { %v4527_v13 = vsel %vm3404_vm7, %v4526_v52, %v4522_v0  ;;  %v324_v52 = vld [vmem:[%s11159_s0 + $0x9a8] sm:$0xff]  ;;  %v1458_v0 = vsel %vm527_vm0, %v325_v50, 0.0  ;;  %v331_v50 = vld [vmem:[%s11159_s0 + $0x9e0] sm:$0xff] }
 0x25f   :  { %v4536_v10 = vrot.slane %v2297_v1, %v7224_v14  ;;  %v4531_v11 = vrot.slane %v2296_v2, %v7230_v19  ;;  %1441 = vadd.xlane.f32.xlu1 %v1440_v58  ;;  %1435 = vadd.xlane.f32.xlu0 %v1434_v59  ;;  %v1455_v1 = vsel %vm527_vm0, %v324_v52, 0.0  ;;  %v2623_v52 = vld [vmem:[%s11160_s1 + $0x178] sm:$0xff] }
 0x260   :  { %v1235_v12 = vpop.xlane.xlu1 %1234  ;;  %v1232_v15 = vpop.xlane.xlu0 %1231 }
 0x261   :  { %v4532_v20 = vsel %vm3411_vm8, %v4531_v11, %v4527_v13  ;;  %v2299_v21 = vmul.f32 0.020408163, %v1235_v12  ;;  %v2298_v16 = vmul.f32 0.020408163, %v1232_v15  ;;  %v327_v13 = vld [vmem:[%s11159_s0 + $0x9c0] sm:$0xff] }
 0x262   :  { %v4537_v25 = vsel %vm11176_vm9, %v4536_v10, %v4532_v20  ;;  %v326_v10 = vld [vmem:[%s11159_s0 + $0x9b8] sm:$0xff]  ;;  %v1464_v20 = vsel %vm527_vm0, %v327_v13, 0.0 }
 0x263   :  { %v4546_v27 = vrot.slane %v2299_v21, %v7244_v35  ;;  %v4541_v33 = vrot.slane %v2298_v16, %v7250_v39  ;;  %1447 = vadd.xlane.f32.xlu1 %v1446_v17  ;;  %1444 = vadd.xlane.f32.xlu0 %v1443_v18  ;;  %v1461_v21 = vsel %vm527_vm0, %v326_v10, 0.0  ;;  %v1476_v10 = vsel %vm527_vm0, %v331_v50, 0.0 }
 0x264   :  { %v1241_v36 = vpop.xlane.xlu1 %1240  ;;  %v1238_v37 = vpop.xlane.xlu0 %1237 }
 0x265   :  { %v4542_v47 = vsel %vm11164_vm10, %v4541_v33, %v4537_v25  ;;  %v2301_v48 = vmul.f32 0.020408163, %v1241_v36  ;;  %v2300_v49 = vmul.f32 0.020408163, %v1238_v37  ;;  %v328_v25 = vld [vmem:[%s11159_s0 + $0x9c8] sm:$0xff] }
 0x266   :  { %v4547_v54 = vsel %vm11165_vm11, %v4546_v27, %v4542_v47 }
 0x267   :  { %v4556_v55 = vrot.slane %v2301_v48, %v7264_v53  ;;  %v4551_v56 = vrot.slane %v2300_v49, %v7270_v57  ;;  %1453 = vadd.xlane.f32.xlu1 %v1452_v38  ;;  %1450 = vadd.xlane.f32.xlu0 %v1449_v44  ;;  %v2639_v38 = vld [vmem:[%s11160_s1 + $0x1f8] sm:$0xff]  ;;  %v1470_v48 = vsel %vm527_vm0, %v329_v24, 0.0  ;;  %v1467_v49 = vsel %vm527_vm0, %v328_v25, 0.0  ;;  %v2620_v24 = vld [vmem:[%s11160_s1 + $0x160] sm:$0xff] }
 0x268   :  { %v1247_v58 = vpop.xlane.xlu1 %1246  ;;  %v1244_v59 = vpop.xlane.xlu0 %1243  ;;  %6563 = vmatprep.subr.mxu1 %v2639_v38 }
 0x269   :  { %v4552_v2 = vsel %vm11163_vm12, %v4551_v56, %v4547_v54  ;;  %v2303_v4 = vmul.f32 0.020408163, %v1247_v58  ;;  %v2302_v5 = vmul.f32 0.020408163, %v1244_v59  ;;  %v330_v58 = vld [vmem:[%s11159_s0 + $0x9d8] sm:$0xff]  ;;  %6564 = vmatpush3.msra.mxu1 %v2623_v52  ;;  %v2638_v59 = vld [vmem:[%s11160_s1 + $0x1f0] sm:$0xff] }
 0x26a   :  { %v4557_v11 = vsel %vm3446_vm13, %v4556_v55, %v4552_v2  ;;  %6565 = vmatprep.subr.mxu1 %v2638_v59 }
 0x26b   :  { %v4566_v12 = vrot.slane %v2303_v4, %v7289_v9  ;;  %v4561_v15 = vrot.slane %v2302_v5, %v7284_v6  ;;  %1459 = vadd.xlane.f32.xlu1 %v1458_v0  ;;  %1456 = vadd.xlane.f32.xlu0 %v1455_v1  ;;  %v2622_v0 = vld [vmem:[%s11160_s1 + $0x170] sm:$0xff]  ;;  %v2637_v4 = vld [vmem:[%s11160_s1 + $0x1e8] sm:$0xff] }
 0x26c   :  { %v1253_v17 = vpop.xlane.xlu1 %1252  ;;  %v1250_v18 = vpop.xlane.xlu0 %1249  ;;  %6566 = vmatpush3.msra.mxu1 %v2622_v0 }
 0x26d   :  { %v2305_v16 = vmul.f32 0.020408163, %v1253_v17  ;;  %v2304_v23 = vmul.f32 0.020408163, %v1250_v18  ;;  %v4562_v27 = vsel %vm3453_vm14, %v4561_v15, %v4557_v11  ;;  %v1473_v11 = vsel %vm527_vm0, %v330_v58, 0.0  ;;  %v2621_v15 = vld [vmem:[%s11160_s1 + $0x168] sm:$0xff]  ;;  %6567 = vmatprep.subr.mxu1 %v2637_v4 }
 0x26e   :  { %v8767_v33 = vsel %vm3460_vm15, %v4566_v12, %v4562_v27  ;;  %v333_v12 = vld [vmem:[%s11159_s0 + $0x9f0] sm:$0xff]  ;;  %6568 = vmatpush3.msra.mxu1 %v2621_v15 }
 0x26f   :  { %11194 = vst [vmem:[#allocation19_spill] sm:$0xff] %v8767_v33  ;;  %v4575_v36 = vrot.slane %v2305_v16, %v7167_v31  ;;  %v4571_v37 = vrot.slane %v2304_v23, %v7161_v28  ;;  %1465 = vadd.xlane.f32.xlu1 %v1464_v20  ;;  %1462 = vadd.xlane.f32.xlu0 %v1461_v21  ;;  %v332_v21 = vld [vmem:[%s11159_s0 + $0x9e8] sm:$0xff]  ;;  %v2636_v16 = vld [vmem:[%s11160_s1 + $0x1e0] sm:$0xff]  ;;  %v2634_v58 = vld [vmem:[%s11160_s1 + $0x1d0] sm:$0xff] }
 0x270   :  { %v1259_v44 = vpop.xlane.xlu1 %1258  ;;  %v1256_v47 = vpop.xlane.xlu0 %1255  ;;  %6569 = vmatprep.subr.mxu1 %v2636_v16  ;;  %v2735_v33 = vld [vmem:[%s11160_s1 + $0x4f8] sm:$0xff] }
 0x271   :  { %v4576_v54 = vsel %vm3362_vm1, %v4575_v36, %v4571_v37  ;;  %v2307_v55 = vmul.f32 0.020408163, %v1259_v44  ;;  %v2306_v56 = vmul.f32 0.020408163, %v1256_v47  ;;  %v2635_v36 = vld [vmem:[%s11160_s1 + $0x1d8] sm:$0xff]  ;;  %v1482_v44 = vsel %vm527_vm0, %v333_v12, 0.0  ;;  %6570 = vmatpush3.msra.mxu1 %v2620_v24 }
 0x272   :  { %v1479_v47 = vsel %vm527_vm0, %v332_v21, 0.0  ;;  %6571 = vmatprep.subr.mxu1 %v2635_v36  ;;  %v2617_v21 = vld [vmem:[%s11160_s1 + $0x148] sm:$0xff]  ;;  %v2632_v24 = vld [vmem:[%s11160_s1 + $0x1c0] sm:$0xff] }
 0x273   :  { %v4585_v1 = vrot.slane %v2307_v55, %v7164_v30  ;;  %v4580_v2 = vrot.slane %v2306_v56, %v7170_v32  ;;  %1471 = vadd.xlane.f32.xlu1 %v1470_v48  ;;  %1468 = vadd.xlane.f32.xlu0 %v1467_v49  ;;  %v318_v48 = vld [vmem:[%s11159_s0 + $0x978] sm:$0xff] }
 0x274   :  { %v1265_v5 = vpop.xlane.xlu1 %1264  ;;  %v1262_v13 = vpop.xlane.xlu0 %1261  ;;  %v2619_v55 = vld [vmem:[%s11160_s1 + $0x158] sm:$0xff] }
 0x275   :  { %v4581_v17 = vsel %vm3369_vm2, %v4580_v2, %v4576_v54  ;;  %v2309_v18 = vmul.f32 0.020408163, %v1265_v5  ;;  %v2308_v20 = vmul.f32 0.020408163, %v1262_v13  ;;  %v334_v54 = vld [vmem:[%s11159_s0 + $0x9f8] sm:$0xff]  ;;  %v1437_v5 = vsel %vm527_vm0, %v318_v48, 0.0  ;;  %6572 = vmatpush3.msra.mxu1 %v2619_v55 }
 0x276   :  { %v4586_v23 = vsel %vm3376_vm3, %v4585_v1, %v4581_v17  ;;  %v2618_v1 = vld [vmem:[%s11160_s1 + $0x150] sm:$0xff]  ;;  %v1485_v13 = vsel %vm527_vm0, %v334_v54, 0.0  ;;  %v351_v17 = vld [vmem:[%s11159_s0 + $0xa80] sm:$0xff]  ;;  %6573 = vmatprep.subr.mxu1 %v2634_v58  ;;  %v2631_v54 = vld [vmem:[%s11160_s1 + $0x1b8] sm:$0xff] }
 0x277   :  { %v4595_v25 = vrot.slane %v2309_v18, %v7181_v42  ;;  %v4590_v27 = vrot.slane %v2308_v20, %v7184_v43  ;;  %1477 = vadd.xlane.f32.xlu1 %v1476_v10  ;;  %1474 = vadd.xlane.f32.xlu0 %v1473_v11  ;;  %v352_v10 = vld [vmem:[%s11159_s0 + $0xa88] sm:$0xff]  ;;  %v2615_v58 = vld [vmem:[%s11160_s1 + $0x138] sm:$0xff] }
 0x278   :  { %v1271_v37 = vpop.xlane.xlu1 %1270  ;;  %v1268_v38 = vpop.xlane.xlu0 %1267  ;;  %v2633_v18 = vld [vmem:[%s11160_s1 + $0x1c8] sm:$0xff]  ;;  %6574 = vmatpush3.msra.mxu1 %v2618_v1  ;;  %v1539_v36 = vsel %vm527_vm0, %v352_v10, 0.0 }
 0x279   :  { %v4591_v49 = vsel %vm3383_vm4, %v4590_v27, %v4586_v23  ;;  %v2311_v50 = vmul.f32 0.020408163, %v1271_v37  ;;  %v2310_v52 = vmul.f32 0.020408163, %v1268_v38  ;;  %v1536_v37 = vsel %vm527_vm0, %v351_v17, 0.0  ;;  %v336_v38 = vld [vmem:[%s11159_s0 + $0xa08] sm:$0xff]  ;;  %6575 = vmatprep.subr.mxu1 %v2633_v18 }
 0x27a   :  { %v4596_v56 = vsel %vm3390_vm5, %v4595_v25, %v4591_v49  ;;  %v335_v49 = vld [vmem:[%s11159_s0 + $0xa00] sm:$0xff]  ;;  %6576 = vmatpush3.msra.mxu1 %v2617_v21  ;;  %v1491_v1 = vsel %vm527_vm0, %v336_v38, 0.0  ;;  %v2614_v17 = vld [vmem:[%s11160_s1 + $0x130] sm:$0xff]  ;;  %v2629_v21 = vld [vmem:[%s11160_s1 + $0x1a8] sm:$0xff] }
 0x27b   :  { %v4605_v59 = vrot.slane %v2311_v50, %v7203_v60  ;;  %v4600_v0 = vrot.slane %v2310_v52, %v7206_v61  ;;  %1483 = vadd.xlane.f32.xlu1 %v1482_v44  ;;  %1480 = vadd.xlane.f32.xlu0 %v1479_v47  ;;  %v2616_v50 = vld [vmem:[%s11160_s1 + $0x140] sm:$0xff] }
 0x27c   :  { %v1277_v2 = vpop.xlane.xlu1 %1276  ;;  %v1274_v4 = vpop.xlane.xlu0 %1273  ;;  %6577 = vmatprep.subr.mxu1 %v2632_v24 }
 0x27d   :  { %v4601_v11 = vsel %vm3397_vm6, %v4600_v0, %v4596_v56  ;;  %v2313_v12 = vmul.f32 0.020408163, %v1277_v2  ;;  %v2312_v15 = vmul.f32 0.020408163, %v1274_v4  ;;  %v1488_v2 = vsel %vm527_vm0, %v335_v49, 0.0  ;;  %v337_v4 = vld [vmem:[%s11159_s0 + $0xa10] sm:$0xff]  ;;  %6578 = vmatpush3.msra.mxu1 %v2616_v50 }
 0x27e   :  { %v4606_v20 = vsel %vm3404_vm7, %v4605_v59, %v4601_v11  ;;  %v353_v11 = vld [vmem:[%s11159_s0 + $0xa90] sm:$0xff]  ;;  %6579 = vmatprep.subr.mxu1 %v2631_v54  ;;  %v1494_v24 = vsel %vm527_vm0, %v337_v4, 0.0  ;;  %v2612_v54 = vld [vmem:[%s11160_s1 + $0x120] sm:$0xff] }
 0x27f   :  { %v4615_v16 = vrot.slane %v2313_v12, %v7224_v14  ;;  %v4610_v23 = vrot.slane %v2312_v15, %v7230_v19  ;;  %1438 = vadd.xlane.f32.xlu1 %v1437_v5  ;;  %1486 = vadd.xlane.f32.xlu0 %v1485_v13  ;;  %v2630_v12 = vld [vmem:[%s11160_s1 + $0x1b0] sm:$0xff] }
 0x280   :  { %v1283_v25 = vpop.xlane.xlu1 %1282  ;;  %v1280_v27 = vpop.xlane.xlu0 %1279  ;;  %6580 = vmatpush3.msra.mxu1 %v2615_v58 }
 0x281   :  { %v4611_v44 = vsel %vm3411_vm8, %v4610_v23, %v4606_v20  ;;  %v2315_v47 = vmul.f32 0.020408163, %v1283_v25  ;;  %v2314_v48 = vmul.f32 0.020408163, %v1280_v27  ;;  %v1542_v25 = vsel %vm527_vm0, %v353_v11, 0.0  ;;  %v383_v27 = vld [vmem:[%s11159_s0 + $0xb80] sm:$0xff]  ;;  %6581 = vmatprep.subr.mxu1 %v2630_v12 }
 0x282   :  { %v4616_v52 = vsel %vm11176_vm9, %v4615_v16, %v4611_v44  ;;  %v354_v44 = vld [vmem:[%s11159_s0 + $0xa98] sm:$0xff]  ;;  %6582 = vmatpush3.msra.mxu1 %v2614_v17  ;;  %v1632_v58 = vsel %vm527_vm0, %v383_v27, 0.0 }
 0x283   :  { %v4625_v55 = vrot.slane %v2315_v47, %v7244_v35  ;;  %v4620_v56 = vrot.slane %v2314_v48, %v7250_v39  ;;  %1540 = vadd.xlane.f32.xlu1 %v1539_v36  ;;  %1537 = vadd.xlane.f32.xlu0 %v1536_v37  ;;  %v2613_v47 = vld [vmem:[%s11160_s1 + $0x128] sm:$0xff]  ;;  %v2628_v48 = vld [vmem:[%s11160_s1 + $0x1a0] sm:$0xff] }
 0x284   :  { %v1289_v59 = vpop.xlane.xlu1 %1288  ;;  %v1286_v0 = vpop.xlane.xlu0 %1285  ;;  %6583 = vmatprep.subr.mxu1 %v2629_v21  ;;  %v2610_v21 = vld [vmem:[%s11160_s1 + $0x110] sm:$0xff] }
 0x285   :  { %v4621_v5 = vsel %vm11164_vm10, %v4620_v56, %v4616_v52  ;;  %v2317_v13 = vmul.f32 0.020408163, %v1289_v59  ;;  %v2316_v10 = vmul.f32 0.020408163, %v1286_v0  ;;  %v1545_v59 = vsel %vm527_vm0, %v354_v44, 0.0  ;;  %6584 = vmatpush3.msra.mxu1 %v2613_v47  ;;  %v338_v0 = vld [vmem:[%s11159_s0 + $0xa18] sm:$0xff] }
 0x286   :  { %v4626_v15 = vsel %vm11165_vm11, %v4625_v55, %v4621_v5  ;;  %6585 = vmatprep.subr.mxu1 %v2628_v48  ;;  %v2611_v5 = vld [vmem:[%s11160_s1 + $0x118] sm:$0xff]  ;;  %v2624_v44 = vld [vmem:[%s11160_s1 + $0x180] sm:$0xff] }
 0x287   :  { %v4635_v18 = vrot.slane %v2317_v13, %v7264_v53  ;;  %v4630_v20 = vrot.slane %v2316_v10, %v7270_v57  ;;  %1492 = vadd.xlane.f32.xlu1 %v1491_v1  ;;  %1489 = vadd.xlane.f32.xlu0 %v1488_v2  ;;  %v384_v1 = vld [vmem:[%s11159_s0 + $0xb88] sm:$0xff]  ;;  %v2627_v2 = vld [vmem:[%s11160_s1 + $0x198] sm:$0xff]  ;;  %v2626_v10 = vld [vmem:[%s11160_s1 + $0x190] sm:$0xff] }
 0x288   :  { %v1295_v16 = vpop.xlane.xlu1 %1294  ;;  %v1292_v23 = vpop.xlane.xlu0 %1291  ;;  %6586 = vmatpush3.msra.mxu1 %v2612_v54  ;;  %v1635_v17 = vsel %vm527_vm0, %v384_v1, 0.0  ;;  %v2608_v47 = vld [vmem:[%s11160_s1 + $0x100] sm:$0xff]  ;;  %v356_v54 = vld [vmem:[%s11159_s0 + $0xaa8] sm:$0xff] }
 0x289   :  { %v4631_v36 = vsel %vm11163_vm12, %v4630_v20, %v4626_v15  ;;  %v2319_v37 = vmul.f32 0.020408163, %v1295_v16  ;;  %v2318_v38 = vmul.f32 0.020408163, %v1292_v23  ;;  %v1497_v15 = vsel %vm527_vm0, %v338_v0, 0.0  ;;  %6587 = vmatprep.subr.mxu1 %v2627_v2  ;;  %v355_v20 = vld [vmem:[%s11159_s0 + $0xaa0] sm:$0xff] }
 0x28a   :  { %v4636_v49 = vsel %vm3446_vm13, %v4635_v18, %v4631_v36  ;;  %v367_v18 = vld [vmem:[%s11159_s0 + $0xb00] sm:$0xff]  ;;  %6588 = vmatpush3.msra.mxu1 %v2611_v5  ;;  %v2625_v16 = vld [vmem:[%s11160_s1 + $0x188] sm:$0xff]  ;;  %v1548_v36 = vsel %vm527_vm0, %v355_v20, 0.0  ;;  %v1551_v1 = vsel %vm527_vm0, %v356_v54, 0.0  ;;  %v369_v5 = vld [vmem:[%s11159_s0 + $0xb10] sm:$0xff] }
 0x28b   :  { %v4645_v50 = vrot.slane %v2319_v37, %v7289_v9  ;;  %v4640_v52 = vrot.slane %v2318_v38, %v7284_v6  ;;  %1495 = vadd.xlane.f32.xlu1 %v1494_v24  ;;  %1543 = vadd.xlane.f32.xlu0 %v1542_v25  ;;  %v2609_v23 = vld [vmem:[%s11160_s1 + $0x108] sm:$0xff]  ;;  %v1584_v27 = vsel %vm527_vm0, %v367_v18, 0.0  ;;  %v385_v37 = vld [vmem:[%s11159_s0 + $0xb90] sm:$0xff]  ;;  %v1590_v18 = vsel %vm527_vm0, %v369_v5, 0.0 }
 0x28c   :  { %v8926_v55 = vpop.xlane.xlu1 %1300  ;;  %v8928_v56 = vpop.xlane.xlu0 %1297  ;;  %6589 = vmatprep.subr.mxu1 %v2626_v10  ;;  %v368_v38 = vld [vmem:[%s11159_s0 + $0xb08] sm:$0xff]  ;;  %v357_v20 = vld [vmem:[%s11159_s0 + $0xab0] sm:$0xff] }
 0x28d   :  { %v4641_v4 = vsel %vm3453_vm14, %v4640_v52, %v4636_v49  ;;  %6590 = vmatpush3.msra.mxu1 %v2610_v21  ;;  %v1587_v52 = vsel %vm527_vm0, %v368_v38, 0.0  ;;  %v340_v21 = vld [vmem:[%s11159_s0 + $0xa28] sm:$0xff]  ;;  %v370_v38 = vld [vmem:[%s11159_s0 + $0xb18] sm:$0xff] }
 0x28e   :  { %v8946_v13 = vsel %vm3460_vm15, %v4645_v50, %v4641_v4  ;;  %6591 = vmatprep.subr.mxu1 %v2625_v16  ;;  %v1638_v50 = vsel %vm527_vm0, %v385_v37, 0.0  ;;  %v386_v4 = vld [vmem:[%s11159_s0 + $0xb98] sm:$0xff]  ;;  %v387_v37 = vld [vmem:[%s11159_s0 + $0xba0] sm:$0xff] }
 0x28f   :  { %11195 = vst [vmem:[#allocation20_spill] sm:$0xff] %v8946_v13  ;;  %1633 = vadd.xlane.f32.xlu1 %v1632_v58  ;;  %1546 = vadd.xlane.f32.xlu0 %v1545_v59  ;;  %v339_v58 = vld [vmem:[%s11159_s0 + $0xa20] sm:$0xff] }
 0x290   :  { %v8951_v11 = vpop.xlane.xlu1 %1306  ;;  %v1304_v12 = vpop.xlane.xlu0 %1303  ;;  %6592 = vmatpush3.msra.mxu1 %v2609_v23  ;;  %v1500_v2 = vsel %vm527_vm0, %v339_v58, 0.0  ;;  %v1644_v58 = vsel %vm527_vm0, %v387_v37, 0.0 }
 0x291   :  { %6593 = vmatprep.subr.mxu1 %v2624_v44  ;;  %v2321_v44 = vmul.f32 0.020408163, %v8926_v55  ;;  %v341_v55 = vld [vmem:[%s11159_s0 + $0xa30] sm:$0xff] }
 0x292   :  { %6594 = vmatpush3.msra.mxu1 %v2608_v47  ;;  %v2320_v47 = vmul.f32 0.020408163, %v8928_v56 }
 0x293   :  { %1498 = vadd.xlane.f32.xlu1 %v1497_v15  ;;  %1636 = vadd.xlane.f32.xlu0 %v1635_v17  ;;  %v1641_v17 = vsel %vm527_vm0, %v386_v4, 0.0  ;;  %v4654_v56 = vrot.slane %v2321_v44, %v7167_v31  ;;  %v2323_v4 = vmul.f32 0.020408163, %v8951_v11  ;;  %v371_v11 = vld [vmem:[%s11159_s0 + $0xb20] sm:$0xff] }
 0x294   :  { %v8970_v24 = vpop.xlane.xlu1 %1312  ;;  %v1310_v25 = vpop.xlane.xlu0 %1309 }
 0x295   :  { %v4664_v44 = vrot.slane %v2323_v4, %v7164_v30 }
 0x297   :  { %1585 = vadd.xlane.f32.xlu1 %v1584_v27  ;;  %1549 = vadd.xlane.f32.xlu0 %v1548_v36  ;;  %v1554_v27 = vsel %vm527_vm0, %v357_v20, 0.0  ;;  %v1503_v36 = vsel %vm527_vm0, %v340_v21, 0.0 }
 0x298   :  { %v8986_v48 = vpop.xlane.xlu1 %1318  ;;  %v1316_v49 = vpop.xlane.xlu0 %1315 }
 0x29b   :  { %1639 = vadd.xlane.f32.xlu1 %v1638_v50  ;;  %1588 = vadd.xlane.f32.xlu0 %v1587_v52  ;;  %v2322_v50 = vmul.f32 0.020408163, %v1304_v12  ;;  %v4650_v12 = vrot.slane %v2320_v47, %v7161_v28  ;;  %v2325_v47 = vmul.f32 0.020408163, %v8970_v24  ;;  %v359_v24 = vld [vmem:[%s11159_s0 + $0xac0] sm:$0xff] }
 0x29c   :  { %v8996_v59 = vpop.xlane.xlu1 %1324  ;;  %v8998_v0 = vpop.xlane.xlu0 %1321 }
 0x29d   :  { %v4659_v5 = vrot.slane %v2322_v50, %v7170_v32 }
 0x29f   :  { %1552 = vadd.xlane.f32.xlu1 %v1551_v1  ;;  %1501 = vadd.xlane.f32.xlu0 %v1500_v2  ;;  %v1593_v1 = vsel %vm527_vm0, %v370_v38, 0.0  ;;  %v358_v2 = vld [vmem:[%s11159_s0 + $0xab8] sm:$0xff]  ;;  %v388_v38 = vld [vmem:[%s11159_s0 + $0xba8] sm:$0xff] }
 0x2a0   :  { %v9008_v10 = vpop.xlane.xlu1 %1330  ;;  %v9010_v15 = vpop.xlane.xlu0 %1327  ;;  %v1557_v21 = vsel %vm527_vm0, %v358_v2, 0.0  ;;  %v1647_v13 = vsel %vm527_vm0, %v388_v38, 0.0 }
 0x2a3   :  { %1642 = vadd.xlane.f32.xlu1 %v1641_v17  ;;  %1591 = vadd.xlane.f32.xlu0 %v1590_v18  ;;  %v2324_v17 = vmul.f32 0.020408163, %v1310_v25  ;;  %v4655_v25 = vsel %vm3362_vm1, %v4654_v56, %v4650_v12  ;;  %v1596_v56 = vsel %vm527_vm0, %v371_v11, 0.0 }
 0x2a4   :  { %v9020_v16 = vpop.xlane.xlu1 %1336  ;;  %v9022_v23 = vpop.xlane.xlu0 %1333  ;;  %v4660_v50 = vsel %vm3369_vm2, %v4659_v5, %v4655_v25  ;;  %v4674_v5 = vrot.slane %v2325_v47, %v7181_v42 }
 0x2a7   :  { %1555 = vadd.xlane.f32.xlu1 %v1554_v27  ;;  %1504 = vadd.xlane.f32.xlu0 %v1503_v36  ;;  %v1506_v27 = vsel %vm527_vm0, %v341_v55, 0.0 }
 0x2a8   :  { %v9034_v52 = vpop.xlane.xlu1 %1342  ;;  %v9036_v54 = vpop.xlane.xlu0 %1339 }
 0x2ab   :  { %1645 = vadd.xlane.f32.xlu1 %v1644_v58  ;;  %1594 = vadd.xlane.f32.xlu0 %v1593_v1  ;;  %v4669_v58 = vrot.slane %v2324_v17, %v7184_v43  ;;  %v2326_v1 = vmul.f32 0.020408163, %v1316_v49  ;;  %v342_v49 = vld [vmem:[%s11159_s0 + $0xa38] sm:$0xff]  ;;  %v4665_v17 = vsel %vm3376_vm3, %v4664_v44, %v4660_v50  ;;  %v1560_v44 = vsel %vm527_vm0, %v359_v24, 0.0 }
 0x2ac   :  { %v1349_v18 = vpop.xlane.xlu1 %1348  ;;  %v1346_v20 = vpop.xlane.xlu0 %1345 }
 0x2ad   :  { %v2337_v36 = vmul.f32 0.020408163, %v1349_v18  ;;  %v2336_v37 = vmul.f32 0.020408163, %v1346_v20 }
 0x2af   :  { %1558 = vadd.xlane.f32.xlu1 %v1557_v21  ;;  %1507 = vadd.xlane.f32.xlu0 %v1506_v27  ;;  %v4733_v2 = vrot.slane %v2337_v36, %v7167_v31  ;;  %v4729_v55 = vrot.slane %v2336_v37, %v7161_v28  ;;  %v2327_v21 = vmul.f32 0.020408163, %v8986_v48  ;;  %v4670_v27 = vsel %vm3383_vm4, %v4669_v58, %v4665_v17 }
 0x2b0   :  { %v1355_v18 = vpop.xlane.xlu1 %1354  ;;  %v1352_v20 = vpop.xlane.xlu0 %1351  ;;  %v4679_v36 = vrot.slane %v2326_v1, %v7206_v61  ;;  %v2328_v37 = vmul.f32 0.020408163, %v8998_v0  ;;  %v1509_v48 = vsel %vm527_vm0, %v342_v49, 0.0  ;;  %v389_v0 = vld [vmem:[%s11159_s0 + $0xbb0] sm:$0xff]  ;;  %v360_v49 = vld [vmem:[%s11159_s0 + $0xac8] sm:$0xff] }
 0x2b1   :  { %v2339_v12 = vmul.f32 0.020408163, %v1355_v18  ;;  %v2338_v4 = vmul.f32 0.020408163, %v1352_v20  ;;  %v4734_v11 = vsel %vm3362_vm1, %v4733_v2, %v4729_v55  ;;  %v4684_v2 = vrot.slane %v2327_v21, %v7203_v60 }
 0x2b2   :  { %v4675_v55 = vsel %vm3390_vm5, %v4674_v5, %v4670_v27  ;;  %v2329_v20 = vmul.f32 0.020408163, %v8996_v59  ;;  %v1650_v27 = vsel %vm527_vm0, %v389_v0, 0.0  ;;  %v2332_v0 = vmul.f32 0.020408163, %v9022_v23 }
 0x2b3   :  { %v4738_v38 = vrot.slane %v2338_v4, %v7170_v32  ;;  %1648 = vadd.xlane.f32.xlu1 %v1647_v13  ;;  %1597 = vadd.xlane.f32.xlu0 %v1596_v56  ;;  %v4743_v25 = vrot.slane %v2339_v12, %v7164_v30  ;;  %v372_v13 = vld [vmem:[%s11159_s0 + $0xb28] sm:$0xff]  ;;  %v4680_v56 = vsel %vm3397_vm6, %v4679_v36, %v4675_v55  ;;  %v2330_v4 = vmul.f32 0.020408163, %v9010_v15 }
 0x2b4   :  { %v1361_v18 = vpop.xlane.xlu1 %1360  ;;  %v1358_v47 = vpop.xlane.xlu0 %1357  ;;  %v4689_v12 = vrot.slane %v2328_v37, %v7230_v19  ;;  %v1599_v36 = vsel %vm527_vm0, %v372_v13, 0.0 }
 0x2b5   :  { %v4739_v50 = vsel %vm3369_vm2, %v4738_v38, %v4734_v11  ;;  %v2341_v58 = vmul.f32 0.020408163, %v1361_v18  ;;  %v2340_v1 = vmul.f32 0.020408163, %v1358_v47  ;;  %v343_v11 = vld [vmem:[%s11159_s0 + $0xa40] sm:$0xff]  ;;  %v4694_v18 = vrot.slane %v2329_v20, %v7224_v14 }
 0x2b6   :  { %v4744_v5 = vsel %vm3376_vm3, %v4743_v25, %v4739_v50  ;;  %v4685_v47 = vsel %vm3404_vm7, %v4684_v2, %v4680_v56  ;;  %v1563_v25 = vsel %vm527_vm0, %v360_v49, 0.0  ;;  %v4699_v50 = vrot.slane %v2330_v4, %v7250_v39  ;;  %v373_v56 = vld [vmem:[%s11159_s0 + $0xb30] sm:$0xff] }
 0x2b7   :  { %v4748_v24 = vrot.slane %v2340_v1, %v7184_v43  ;;  %1561 = vadd.xlane.f32.xlu1 %v1560_v44  ;;  %1510 = vadd.xlane.f32.xlu0 %v1509_v48  ;;  %v4753_v17 = vrot.slane %v2341_v58, %v7181_v42  ;;  %v4690_v44 = vsel %vm3411_vm8, %v4689_v12, %v4685_v47  ;;  %v2331_v48 = vmul.f32 0.020408163, %v9008_v10  ;;  %v390_v1 = vld [vmem:[%s11159_s0 + $0xbb8] sm:$0xff]  ;;  %v344_v47 = vld [vmem:[%s11159_s0 + $0xa48] sm:$0xff] }
 0x2b8   :  { %v1367_v21 = vpop.xlane.xlu1 %1366  ;;  %v1364_v59 = vpop.xlane.xlu0 %1363  ;;  %v1512_v10 = vsel %vm527_vm0, %v343_v11, 0.0  ;;  %v4695_v49 = vsel %vm11176_vm9, %v4694_v18, %v4690_v44  ;;  %v1653_v23 = vsel %vm527_vm0, %v390_v1, 0.0  ;;  %v361_v18 = vld [vmem:[%s11159_s0 + $0xad0] sm:$0xff] }
 0x2b9   :  { %v4749_v15 = vsel %vm3383_vm4, %v4748_v24, %v4744_v5  ;;  %v2343_v37 = vmul.f32 0.020408163, %v1367_v21  ;;  %v2342_v38 = vmul.f32 0.020408163, %v1364_v59  ;;  %v4704_v5 = vrot.slane %v2331_v48, %v7244_v35 }
 0x2ba   :  { %v4754_v2 = vsel %vm3390_vm5, %v4753_v17, %v4749_v15  ;;  %v4700_v17 = vsel %vm11164_vm10, %v4699_v50, %v4695_v49  ;;  %v1602_v59 = vsel %vm527_vm0, %v373_v56, 0.0  ;;  %v2334_v48 = vmul.f32 0.020408163, %v9036_v54  ;;  %v391_v56 = vld [vmem:[%s11159_s0 + $0xbc0] sm:$0xff] }
 0x2bb   :  { %v4758_v58 = vrot.slane %v2342_v38, %v7206_v61  ;;  %1651 = vadd.xlane.f32.xlu1 %v1650_v27  ;;  %1600 = vadd.xlane.f32.xlu0 %v1599_v36  ;;  %v4763_v13 = vrot.slane %v2343_v37, %v7203_v60  ;;  %v2333_v27 = vmul.f32 0.020408163, %v9020_v16  ;;  %v4709_v36 = vrot.slane %v2332_v0, %v7270_v57 }
 0x2bc   :  { %v1373_v55 = vpop.xlane.xlu1 %1372  ;;  %v1370_v20 = vpop.xlane.xlu0 %1369  ;;  %v4705_v50 = vsel %vm11165_vm11, %v4704_v5, %v4700_v17  ;;  %v1566_v1 = vsel %vm527_vm0, %v361_v18, 0.0  ;;  %v1515_v0 = vsel %vm527_vm0, %v344_v47, 0.0  ;;  %v4719_v5 = vrot.slane %v2334_v48, %v7284_v6 }
 0x2bd   :  { %v4759_v12 = vsel %vm3397_vm6, %v4758_v58, %v4754_v2  ;;  %v2345_v4 = vmul.f32 0.020408163, %v1373_v55  ;;  %v2344_v24 = vmul.f32 0.020408163, %v1370_v20  ;;  %v4710_v2 = vsel %vm11163_vm12, %v4709_v36, %v4705_v50 }
 0x2be   :  { %v4764_v37 = vsel %vm3404_vm7, %v4763_v13, %v4759_v12  ;;  %v4714_v13 = vrot.slane %v2333_v27, %v7264_v53  ;;  %v374_v12 = vld [vmem:[%s11159_s0 + $0xb38] sm:$0xff] }
 0x2bf   :  { %v4768_v21 = vrot.slane %v2344_v24, %v7230_v19  ;;  %1564 = vadd.xlane.f32.xlu1 %v1563_v25  ;;  %1513 = vadd.xlane.f32.xlu0 %v1512_v10  ;;  %v4773_v15 = vrot.slane %v2345_v4, %v7224_v14  ;;  %v2335_v4 = vmul.f32 0.020408163, %v9034_v52  ;;  %v1605_v52 = vsel %vm527_vm0, %v374_v12, 0.0 }
 0x2c0   :  { %v1379_v38 = vpop.xlane.xlu1 %1378  ;;  %v1376_v11 = vpop.xlane.xlu0 %1375 }
 0x2c1   :  { %v4769_v25 = vsel %vm3411_vm8, %v4768_v21, %v4764_v37  ;;  %v2347_v44 = vmul.f32 0.020408163, %v1379_v38  ;;  %v2346_v16 = vmul.f32 0.020408163, %v1376_v11  ;;  %v1656_v21 = vsel %vm527_vm0, %v391_v56, 0.0 }
 0x2c2   :  { %v4774_v20 = vsel %vm11176_vm9, %v4773_v15, %v4769_v25  ;;  %v4715_v37 = vsel %vm3446_vm13, %v4714_v13, %v4710_v2  ;;  %v4724_v38 = vrot.slane %v2335_v4, %v7289_v9  ;;  %v362_v25 = vld [vmem:[%s11159_s0 + $0xad8] sm:$0xff] }
 0x2c3   :  { %v4778_v58 = vrot.slane %v2346_v16, %v7250_v39  ;;  %1654 = vadd.xlane.f32.xlu1 %v1653_v23  ;;  %1603 = vadd.xlane.f32.xlu0 %v1602_v59  ;;  %v4783_v55 = vrot.slane %v2347_v44, %v7244_v35  ;;  %v345_v44 = vld [vmem:[%s11159_s0 + $0xa50] sm:$0xff]  ;;  %v4720_v16 = vsel %vm3453_vm14, %v4719_v5, %v4715_v37 }
 0x2c4   :  { %v1385_v10 = vpop.xlane.xlu1 %1384  ;;  %v1382_v54 = vpop.xlane.xlu0 %1381  ;;  %v1518_v13 = vsel %vm527_vm0, %v345_v44, 0.0 }
 0x2c5   :  { %v4779_v24 = vsel %vm11164_vm10, %v4778_v58, %v4774_v20  ;;  %v2349_v49 = vmul.f32 0.020408163, %v1385_v10  ;;  %v2348_v23 = vmul.f32 0.020408163, %v1382_v54  ;;  %v4725_v20 = vsel %vm3460_vm15, %v4724_v38, %v4720_v16  ;;  %v392_v10 = vld [vmem:[%s11159_s0 + $0xbc8] sm:$0xff]  ;;  %v375_v54 = vld [vmem:[%s11159_s0 + $0xb40] sm:$0xff] }
 0x2c6   :  { %v4784_v27 = vsel %vm11165_vm11, %v4783_v55, %v4779_v24  ;;  %v1608_v5 = vsel %vm527_vm0, %v375_v54, 0.0  ;;  %v348_v54 = vld [vmem:[%s11159_s0 + $0xa68] sm:$0xff] }
 0x2c7   :  { %v4788_v17 = vrot.slane %v2348_v23, %v7270_v57  ;;  %1567 = vadd.xlane.f32.xlu1 %v1566_v1  ;;  %1516 = vadd.xlane.f32.xlu0 %v1515_v0  ;;  %v4793_v59 = vrot.slane %v2349_v49, %v7264_v53  ;;  %v1569_v0 = vsel %vm527_vm0, %v362_v25, 0.0  ;;  %v1659_v23 = vsel %vm527_vm0, %v392_v10, 0.0  ;;  %v365_v10 = vld [vmem:[%s11159_s0 + $0xaf0] sm:$0xff] }
 0x2c8   :  { %v1391_v36 = vpop.xlane.xlu1 %1390  ;;  %v1388_v15 = vpop.xlane.xlu0 %1387 }
 0x2c9   :  { %v4789_v11 = vsel %vm11163_vm12, %v4788_v17, %v4784_v27  ;;  %v2351_v18 = vmul.f32 0.020408163, %v1391_v36  ;;  %v2350_v47 = vmul.f32 0.020408163, %v1388_v15  ;;  %vm5911_vm12 = vcmask 1041409   ;;  %v363_v17 = vld [vmem:[%s11159_s0 + $0xae0] sm:$0xff] }
 0x2ca   :  { %v4794_v2 = vsel %vm3446_vm13, %v4793_v59, %v4789_v11  ;;  %v5912_v49 = vsel %vm5911_vm12, %v4725_v20, %v7313_v40  ;;  %v1572_v40 = vsel %vm527_vm0, %v363_v17, 0.0  ;;  %v393_v36 = vld [vmem:[%s11159_s0 + $0xbd0] sm:$0xff]  ;;  %v376_v15 = vld [vmem:[%s11159_s0 + $0xb48] sm:$0xff]  ;;  %v378_v17 = vld [vmem:[%s11159_s0 + $0xb58] sm:$0xff] }
 0x2cb   :  { %v4803_v48 = vrot.slane %v2351_v18, %v7289_v9  ;;  %v4798_v50 = vrot.slane %v2350_v47, %v7284_v6  ;;  %1657 = vadd.xlane.f32.xlu1 %v1656_v21  ;;  %1606 = vadd.xlane.f32.xlu0 %v1605_v52  ;;  %v1662_v38 = vsel %vm527_vm0, %v393_v36, 0.0  ;;  %v1611_v11 = vsel %vm527_vm0, %v376_v15, 0.0  ;;  %v364_v18 = vld [vmem:[%s11159_s0 + $0xae8] sm:$0xff]  ;;  %v347_v47 = vld [vmem:[%s11159_s0 + $0xa60] sm:$0xff] }
 0x2cc   :  { %v9179_v58 = vpop.xlane.xlu1 %1396  ;;  %v9181_v1 = vpop.xlane.xlu0 %1393  ;;  %v1575_v16 = vsel %vm527_vm0, %v364_v18, 0.0  ;;  %v1617_v15 = vsel %vm527_vm0, %v378_v17, 0.0  ;;  %v349_v18 = vld [vmem:[%s11159_s0 + $0xa70] sm:$0xff]  ;;  %v379_v17 = vld [vmem:[%s11159_s0 + $0xb60] sm:$0xff] }
 0x2cd   :  { %v4799_v55 = vsel %vm3453_vm14, %v4798_v50, %v4794_v2  ;;  %v394_v50 = vld [vmem:[%s11159_s0 + $0xbd8] sm:$0xff] }
 0x2ce   :  { %v4804_v56 = vsel %vm3460_vm15, %v4803_v48, %v4799_v55  ;;  %v1524_v48 = vsel %vm527_vm0, %v347_v47, 0.0  ;;  %v1665_v55 = vsel %vm527_vm0, %v394_v50, 0.0  ;;  %v2670_v47 = vld [vmem:[%s11160_s1 + $0x2f0] sm:$0xff] }
 0x2cf   :  { %1570 = vadd.xlane.f32.xlu1 %v1569_v0  ;;  %1519 = vadd.xlane.f32.xlu0 %v1518_v13  ;;  %v5913_v12 = vsel %vm5911_vm12, %v4804_v56, %v7410_v41  ;;  %v346_v41 = vld [vmem:[%s11159_s0 + $0xa58] sm:$0xff]  ;;  %v377_v0 = vld [vmem:[%s11159_s0 + $0xb50] sm:$0xff] }
 0x2d0   :  { %v9197_v4 = vpop.xlane.xlu1 %1402  ;;  %6008 = vmatprep.mubr.f32.mxu0 %v5913_v12  ;;  %v9199_v24 = vpop.xlane.xlu0 %1399  ;;  %v1521_v27 = vsel %vm527_vm0, %v346_v41, 0.0  ;;  %v1614_v20 = vsel %vm527_vm0, %v377_v0, 0.0  ;;  %v2671_v41 = vld [vmem:[%s11160_s1 + $0x2f8] sm:$0xff]  ;;  %v2654_v50 = vld [vmem:[%s11160_s1 + $0x270] sm:$0xff] }
 0x2d1   :  { %6009 = vmatmul.mubr.f32.vlgmr.msra.gmra.mxu0 %v5912_v49  ;;  %v1578_v49 = vsel %vm527_vm0, %v365_v10, 0.0  ;;  %6598 = vmatprep.subr.mxu0 %v2671_v41  ;;  %v2354_v0 = vmul.f32 0.020408163, %v9199_v24  ;;  %v2653_v24 = vld [vmem:[%s11160_s1 + $0x268] sm:$0xff]  ;;  %v2668_v41 = vld [vmem:[%s11160_s1 + $0x2e0] sm:$0xff] }
 0x2d3   :  { %1660 = vadd.xlane.f32.xlu1 %v1659_v23  ;;  %1609 = vadd.xlane.f32.xlu0 %v1608_v5  ;;  %v1527_v23 = vsel %vm527_vm0, %v348_v54, 0.0  ;;  %v395_v5 = vld [vmem:[%s11159_s0 + $0xbe0] sm:$0xff] }
 0x2d4   :  { %v9211_v21 = vpop.xlane.xlu1 %1408  ;;  %v9213_v59 = vpop.xlane.xlu0 %1405  ;;  %v1668_v36 = vsel %vm527_vm0, %v395_v5, 0.0 }
 0x2d7   :  { %1573 = vadd.xlane.f32.xlu1 %v1572_v40  ;;  %1522 = vadd.xlane.f32.xlu0 %v1521_v27 }
 0x2d8   :  { %v9223_v52 = vpop.xlane.xlu1 %1414  ;;  %v9225_v37 = vpop.xlane.xlu0 %1411 }
 0x2db   :  { %1663 = vadd.xlane.f32.xlu1 %v1662_v38  ;;  %1612 = vadd.xlane.f32.xlu0 %v1611_v11  ;;  %v2655_v38 = vld [vmem:[%s11160_s1 + $0x278] sm:$0xff] }
 0x2dc   :  { %v9235_v25 = vpop.xlane.xlu1 %1420  ;;  %v9237_v44 = vpop.xlane.xlu0 %1417  ;;  %v366_v11 = vld [vmem:[%s11159_s0 + $0xaf8] sm:$0xff]  ;;  %6599 = vmatpush3.msra.mxu0 %v2655_v38  ;;  %v2652_v38 = vld [vmem:[%s11160_s1 + $0x260] sm:$0xff] }
 0x2dd   :  { %6600 = vmatprep.subr.mxu0 %v2670_v47 }
 0x2de   :  { %6601 = vmatpush3.msra.mxu0 %v2654_v50 }
 0x2df   :  { %1576 = vadd.xlane.f32.xlu1 %v1575_v16  ;;  %1525 = vadd.xlane.f32.xlu0 %v1524_v48  ;;  %v2353_v16 = vmul.f32 0.020408163, %v9179_v58  ;;  %v2352_v48 = vmul.f32 0.020408163, %v9181_v1  ;;  %v1581_v58 = vsel %vm527_vm0, %v366_v11, 0.0  ;;  %v1530_v1 = vsel %vm527_vm0, %v349_v18, 0.0 }
 0x2e0   :  { %v9247_v13 = vpop.xlane.xlu1 %1426  ;;  %v9249_v2 = vpop.xlane.xlu0 %1423  ;;  %v4817_v11 = vrot.slane %v2354_v0, %v7170_v32  ;;  %v2356_v18 = vmul.f32 0.020408163, %v9213_v59  ;;  %v1620_v0 = vsel %vm527_vm0, %v379_v17, 0.0  ;;  %v380_v59 = vld [vmem:[%s11159_s0 + $0xb68] sm:$0xff]  ;;  %v2357_v17 = vmul.f32 0.020408163, %v9211_v21 }
 0x2e3   :  { %1666 = vadd.xlane.f32.xlu1 %v1665_v55  ;;  %1615 = vadd.xlane.f32.xlu0 %v1614_v20  ;;  %v2669_v20 = vld [vmem:[%s11160_s1 + $0x2e8] sm:$0xff] }
 0x2e4   :  { %v9259_v56 = vpop.xlane.xlu1 %1432  ;;  %v9261_v12 = vpop.xlane.xlu0 %1429  ;;  %6602 = vmatprep.subr.mxu0 %v2669_v20 }
 0x2e5   :  { %6603 = vmatpush3.msra.mxu0 %v2653_v24  ;;  %v350_v24 = vld [vmem:[%s11159_s0 + $0xa78] sm:$0xff] }
 0x2e6   :  { %6604 = vmatprep.subr.mxu0 %v2668_v41  ;;  %v2666_v41 = vld [vmem:[%s11160_s1 + $0x2d0] sm:$0xff] }
 0x2e7   :  { %1579 = vadd.xlane.f32.xlu1 %v1578_v49  ;;  %1528 = vadd.xlane.f32.xlu0 %v1527_v23  ;;  %v396_v49 = vld [vmem:[%s11159_s0 + $0xbe8] sm:$0xff] }
 0x2e8   :  { %v1442_v40 = vpop.xlane.xlu1 %1441  ;;  %v9274_v27 = vpop.xlane.xlu0 %1435  ;;  %6605 = vmatpush3.msra.mxu0 %v2652_v38  ;;  %v4827_v38 = vrot.slane %v2356_v18, %v7184_v43  ;;  %v1533_v18 = vsel %vm527_vm0, %v350_v24, 0.0 }
 0x2e9   :  { %v2368_v55 = vmul.f32 0.020408163, %v1442_v40  ;;  %v4812_v40 = vrot.slane %v2353_v16, %v7167_v31  ;;  %v2667_v16 = vld [vmem:[%s11160_s1 + $0x2d8] sm:$0xff] }
 0x2ea   :  { %6606 = vmatprep.subr.mxu0 %v2667_v16 }
 0x2eb   :  { %1669 = vadd.xlane.f32.xlu1 %v1668_v36  ;;  %1618 = vadd.xlane.f32.xlu0 %v1617_v15  ;;  %v4808_v36 = vrot.slane %v2352_v48, %v7161_v28  ;;  %v2355_v15 = vmul.f32 0.020408163, %v9197_v4  ;;  %v4887_v47 = vrot.slane %v2368_v55, %v7161_v28  ;;  %v2703_v55 = vld [vmem:[%s11160_s1 + $0x3f8] sm:$0xff] }
 0x2ec   :  { %v1448_v10 = vpop.xlane.xlu1 %1447  ;;  %v1445_v54 = vpop.xlane.xlu0 %1444  ;;  %6633 = vmatprep.subr.mxu1 %v2703_v55  ;;  %v397_v55 = vld [vmem:[%s11159_s0 + $0xbf0] sm:$0xff] }
 0x2ed   :  { %v2370_v23 = vmul.f32 0.020408163, %v1448_v10  ;;  %v2369_v5 = vmul.f32 0.020408163, %v1445_v54  ;;  %v1671_v10 = vsel %vm527_vm0, %v396_v49, 0.0  ;;  %v2651_v49 = vld [vmem:[%s11160_s1 + $0x258] sm:$0xff] }
 0x2ee   :  { %6607 = vmatpush3.msra.mxu0 %v2651_v49 }
 0x2ef   :  { %v4891_v50 = vrot.slane %v2369_v5, %v7167_v31  ;;  %1582 = vadd.xlane.f32.xlu1 %v1581_v58  ;;  %1531 = vadd.xlane.f32.xlu0 %v1530_v1  ;;  %v4896_v4 = vrot.slane %v2370_v23, %v7170_v32  ;;  %v4813_v23 = vsel %vm3362_vm1, %v4812_v40, %v4808_v36  ;;  %v2650_v40 = vld [vmem:[%s11160_s1 + $0x250] sm:$0xff] }
 0x2f0   :  { %v1454_v48 = vpop.xlane.xlu1 %1453  ;;  %v1451_v20 = vpop.xlane.xlu0 %1450  ;;  %v4822_v5 = vrot.slane %v2355_v15, %v7164_v30  ;;  %6608 = vmatprep.subr.mxu0 %v2666_v41 }
 0x2f1   :  { %v4892_v54 = vsel %vm3362_vm1, %v4891_v50, %v4887_v47  ;;  %v2372_v58 = vmul.f32 0.020408163, %v1454_v48  ;;  %v2371_v1 = vmul.f32 0.020408163, %v1451_v20  ;;  %v4818_v47 = vsel %vm3369_vm2, %v4817_v11, %v4813_v23  ;;  %6609 = vmatpush3.msra.mxu0 %v2650_v40 }
 0x2f2   :  { %v2358_v50 = vmul.f32 0.020408163, %v9225_v37  ;;  %v4897_v36 = vsel %vm3369_vm2, %v4896_v4, %v4892_v54  ;;  %v1623_v11 = vsel %vm527_vm0, %v380_v59, 0.0  ;;  %v381_v37 = vld [vmem:[%s11159_s0 + $0xb70] sm:$0xff]  ;;  %v2665_v4 = vld [vmem:[%s11160_s1 + $0x2c8] sm:$0xff]  ;;  %v4832_v59 = vrot.slane %v2357_v17, %v7181_v42 }
 0x2f3   :  { %v4901_v48 = vrot.slane %v2371_v1, %v7164_v30  ;;  %1672 = vadd.xlane.f32.xlu1 %v1671_v10  ;;  %1621 = vadd.xlane.f32.xlu0 %v1620_v0  ;;  %v4906_v21 = vrot.slane %v2372_v58, %v7184_v43  ;;  %v4823_v54 = vsel %vm3376_vm3, %v4822_v5, %v4818_v47  ;;  %v2359_v58 = vmul.f32 0.020408163, %v9223_v52  ;;  %v2649_v1 = vld [vmem:[%s11160_s1 + $0x248] sm:$0xff]  ;;  %v2664_v5 = vld [vmem:[%s11160_s1 + $0x2c0] sm:$0xff] }
 0x2f4   :  { %v1460_v15 = vpop.xlane.xlu1 %1459  ;;  %v1457_v16 = vpop.xlane.xlu0 %1456  ;;  %v4828_v24 = vsel %vm3383_vm4, %v4827_v38, %v4823_v54  ;;  %v4837_v49 = vrot.slane %v2358_v50, %v7206_v61  ;;  %v2360_v23 = vmul.f32 0.020408163, %v9237_v44  ;;  %v1626_v38 = vsel %vm527_vm0, %v381_v37, 0.0  ;;  %v382_v44 = vld [vmem:[%s11159_s0 + $0xb78] sm:$0xff]  ;;  %6610 = vmatprep.subr.mxu0 %v2665_v4 }
 0x2f5   :  { %v4902_v20 = vsel %vm3376_vm3, %v4901_v48, %v4897_v36  ;;  %v2374_v10 = vmul.f32 0.020408163, %v1460_v15  ;;  %v2373_v0 = vmul.f32 0.020408163, %v1457_v16  ;;  %v1674_v50 = vsel %vm527_vm0, %v397_v55, 0.0  ;;  %v398_v16 = vld [vmem:[%s11159_s0 + $0xbf8] sm:$0xff]  ;;  %6611 = vmatpush3.msra.mxu0 %v2649_v1 }
 0x2f6   :  { %v4907_v17 = vsel %vm3383_vm4, %v4906_v21, %v4902_v20  ;;  %v2648_v21 = vld [vmem:[%s11160_s1 + $0x240] sm:$0xff]  ;;  %v2361_v37 = vmul.f32 0.020408163, %v9235_v25  ;;  %6612 = vmatprep.subr.mxu0 %v2664_v5  ;;  %v2663_v20 = vld [vmem:[%s11160_s1 + $0x2b8] sm:$0xff]  ;;  %v2362_v55 = vmul.f32 0.020408163, %v9249_v2 }
 0x2f7   :  { %v4911_v41 = vrot.slane %v2373_v0, %v7181_v42  ;;  %1624 = vadd.xlane.f32.xlu1 %v1623_v11  ;;  %1534 = vadd.xlane.f32.xlu0 %v1533_v18  ;;  %v4916_v52 = vrot.slane %v2374_v10, %v7206_v61  ;;  %v4842_v11 = vrot.slane %v2359_v58, %v7203_v60  ;;  %v2647_v25 = vld [vmem:[%s11160_s1 + $0x238] sm:$0xff]  ;;  %v1629_v2 = vsel %vm527_vm0, %v382_v44, 0.0 }
 0x2f8   :  { %v1466_v47 = vpop.xlane.xlu1 %1465  ;;  %v1463_v48 = vpop.xlane.xlu0 %1462  ;;  %v4833_v18 = vsel %vm3390_vm5, %v4832_v59, %v4828_v24  ;;  %v4847_v0 = vrot.slane %v2360_v23, %v7230_v19  ;;  %v416_v59 = vld [vmem:[%s11159_s0 + $0xc88] sm:$0xff]  ;;  %6613 = vmatpush3.msra.mxu0 %v2648_v21  ;;  %v399_v21 = vld [vmem:[%s11159_s0 + $0xc00] sm:$0xff] }
 0x2f9   :  { %v4912_v40 = vsel %vm3390_vm5, %v4911_v41, %v4907_v17  ;;  %v2376_v36 = vmul.f32 0.020408163, %v1466_v47  ;;  %v2375_v15 = vmul.f32 0.020408163, %v1463_v48  ;;  %v4838_v10 = vsel %vm3397_vm6, %v4837_v49, %v4833_v18  ;;  %v415_v17 = vld [vmem:[%s11159_s0 + $0xc80] sm:$0xff]  ;;  %6614 = vmatprep.subr.mxu0 %v2663_v20 }
 0x2fa   :  { %v4917_v58 = vsel %vm3397_vm6, %v4916_v52, %v4912_v40  ;;  %v1677_v49 = vsel %vm527_vm0, %v398_v16, 0.0  ;;  %v2662_v52 = vld [vmem:[%s11160_s1 + $0x2b0] sm:$0xff]  ;;  %v4852_v47 = vrot.slane %v2361_v37, %v7224_v14  ;;  %v4843_v48 = vsel %vm3404_vm7, %v4842_v11, %v4838_v10  ;;  %6615 = vmatpush3.msra.mxu0 %v2647_v25  ;;  %v400_v16 = vld [vmem:[%s11159_s0 + $0xc08] sm:$0xff] }
 0x2fb   :  { %v4921_v4 = vrot.slane %v2375_v15, %v7203_v60  ;;  %1627 = vadd.xlane.f32.xlu1 %v1626_v38  ;;  %1675 = vadd.xlane.f32.xlu0 %v1674_v50  ;;  %v4926_v54 = vrot.slane %v2376_v36, %v7230_v19  ;;  %v1731_v38 = vsel %vm527_vm0, %v416_v59, 0.0  ;;  %v2646_v50 = vld [vmem:[%s11160_s1 + $0x230] sm:$0xff]  ;;  %v4848_v44 = vsel %vm3411_vm8, %v4847_v0, %v4843_v48  ;;  %v2661_v11 = vld [vmem:[%s11160_s1 + $0x2a8] sm:$0xff] }
 0x2fc   :  { %v1472_v1 = vpop.xlane.xlu1 %1471  ;;  %v1469_v24 = vpop.xlane.xlu0 %1468  ;;  %v2363_v40 = vmul.f32 0.020408163, %v9247_v13  ;;  %v4857_v36 = vrot.slane %v2362_v55, %v7250_v39  ;;  %v2364_v13 = vmul.f32 0.020408163, %v9261_v12  ;;  %v1728_v0 = vsel %vm527_vm0, %v415_v17, 0.0  ;;  %6616 = vmatprep.subr.mxu0 %v2662_v52  ;;  %v2645_v25 = vld [vmem:[%s11160_s1 + $0x228] sm:$0xff] }
 0x2fd   :  { %v4922_v23 = vsel %vm3404_vm7, %v4921_v4, %v4917_v58  ;;  %v2378_v41 = vmul.f32 0.020408163, %v1472_v1  ;;  %v2377_v5 = vmul.f32 0.020408163, %v1469_v24  ;;  %6617 = vmatpush3.msra.mxu0 %v2646_v50  ;;  %v4853_v12 = vsel %vm11176_vm9, %v4852_v47, %v4848_v44  ;;  %v2660_v1 = vld [vmem:[%s11160_s1 + $0x2a0] sm:$0xff] }
 0x2fe   :  { %v4927_v37 = vsel %vm3411_vm8, %v4926_v54, %v4922_v23  ;;  %v1683_v58 = vsel %vm527_vm0, %v400_v16, 0.0  ;;  %v1680_v54 = vsel %vm527_vm0, %v399_v21, 0.0  ;;  %6618 = vmatprep.subr.mxu0 %v2661_v11  ;;  %v4862_v24 = vrot.slane %v2363_v40, %v7244_v35  ;;  %v2643_v16 = vld [vmem:[%s11160_s1 + $0x218] sm:$0xff] }
 0x2ff   :  { %v4931_v15 = vrot.slane %v2377_v5, %v7224_v14  ;;  %1630 = vadd.xlane.f32.xlu1 %v1629_v2  ;;  %1678 = vadd.xlane.f32.xlu0 %v1677_v49  ;;  %v4936_v18 = vrot.slane %v2378_v41, %v7250_v39  ;;  %v4858_v2 = vsel %vm11164_vm10, %v4857_v36, %v4853_v12  ;;  %v2365_v49 = vmul.f32 0.020408163, %v9259_v56  ;;  %v401_v41 = vld [vmem:[%s11159_s0 + $0xc10] sm:$0xff]  ;;  %v2644_v5 = vld [vmem:[%s11160_s1 + $0x220] sm:$0xff] }
 0x300   :  { %v1478_v20 = vpop.xlane.xlu1 %1477  ;;  %v1475_v10 = vpop.xlane.xlu0 %1474  ;;  %v4867_v17 = vrot.slane %v2364_v13, %v7270_v57  ;;  %v2366_v52 = vmul.f32 0.020408163, %v9274_v27  ;;  %6619 = vmatpush3.msra.mxu0 %v2645_v25  ;;  %v2659_v27 = vld [vmem:[%s11160_s1 + $0x298] sm:$0xff]  ;;  %v4863_v11 = vsel %vm11165_vm11, %v4862_v24, %v4858_v2  ;;  %v2642_v24 = vld [vmem:[%s11160_s1 + $0x210] sm:$0xff]  ;;  %v2657_v2 = vld [vmem:[%s11160_s1 + $0x288] sm:$0xff] }
 0x301   :  { %v4932_v55 = vsel %vm11176_vm9, %v4931_v15, %v4927_v37  ;;  %v2380_v4 = vmul.f32 0.020408163, %v1478_v20  ;;  %v2379_v59 = vmul.f32 0.020408163, %v1475_v10  ;;  %6620 = vmatprep.subr.mxu0 %v2660_v1  ;;  %v1686_v15 = vsel %vm527_vm0, %v401_v41, 0.0  ;;  %v2658_v37 = vld [vmem:[%s11160_s1 + $0x290] sm:$0xff] }
 0x302   :  { %v4937_v56 = vsel %vm11164_vm10, %v4936_v18, %v4932_v55  ;;  %6621 = vmatpush3.msra.mxu0 %v2644_v5  ;;  %v4872_v21 = vrot.slane %v2365_v49, %v7264_v53  ;;  %vm11196_vm10 = vcmask 851712   ;;  %v4877_v10 = vrot.slane %v2366_v52, %v7284_v6  ;;  %v2641_v5 = vld [vmem:[%s11160_s1 + $0x208] sm:$0xff] }
 0x303   :  { %v4941_v23 = vrot.slane %v2379_v59, %v7244_v35  ;;  %1732 = vadd.xlane.f32.xlu1 %v1731_v38  ;;  %1729 = vadd.xlane.f32.xlu0 %v1728_v0  ;;  %v4946_v47 = vrot.slane %v2380_v4, %v7270_v57  ;;  %v417_v38 = vld [vmem:[%s11159_s0 + $0xc90] sm:$0xff]  ;;  %v4868_v20 = vsel %vm11196_vm10, %v4867_v17, %v4863_v11  ;;  %v447_v59 = vld [vmem:[%s11159_s0 + $0xd80] sm:$0xff] }
 0x304   :  { %v1484_v48 = vpop.xlane.xlu1 %1483  ;;  %v1481_v50 = vpop.xlane.xlu0 %1480  ;;  %v1734_v18 = vsel %vm527_vm0, %v417_v38, 0.0  ;;  %6622 = vmatprep.subr.mxu0 %v2659_v27  ;;  %v4873_v41 = vsel %vm3446_vm13, %v4872_v21, %v4868_v20  ;;  %v402_v38 = vld [vmem:[%s11159_s0 + $0xc18] sm:$0xff] }
 0x305   :  { %v4942_v44 = vsel %vm11165_vm11, %v4941_v23, %v4937_v56  ;;  %v2382_v40 = vmul.f32 0.020408163, %v1484_v48  ;;  %v2381_v36 = vmul.f32 0.020408163, %v1481_v50  ;;  %vm11197_vm11 = vmmov %vm11196_vm10  ;;  %6623 = vmatpush3.msra.mxu0 %v2643_v16  ;;  %v4878_v50 = vsel %vm3453_vm14, %v4877_v10, %v4873_v41  ;;  %v2656_v16 = vld [vmem:[%s11160_s1 + $0x280] sm:$0xff]  ;;  %v2687_v20 = vld [vmem:[%s11160_s1 + $0x378] sm:$0xff] }
 0x306   :  { %v4947_v25 = vsel %vm11197_vm11, %v4946_v47, %v4942_v44  ;;  %6624 = vmatprep.subr.mxu0 %v2658_v37  ;;  %v1824_v47 = vsel %vm527_vm0, %v447_v59, 0.0  ;;  %vm11199_vm10 = vcmask 720512   ;;  %vm11200_vm11 = vcmask 786112  }
 0x307   :  { %v4951_v13 = vrot.slane %v2381_v36, %v7264_v53  ;;  %1684 = vadd.xlane.f32.xlu1 %v1683_v58  ;;  %1681 = vadd.xlane.f32.xlu0 %v1680_v54  ;;  %v4956_v0 = vrot.slane %v2382_v40, %v7284_v6  ;;  %v418_v54 = vld [vmem:[%s11159_s0 + $0xc98] sm:$0xff] }
 0x308   :  { %v1439_v55 = vpop.xlane.xlu1 %1438  ;;  %v1487_v4 = vpop.xlane.xlu0 %1486  ;;  %v1737_v56 = vsel %vm527_vm0, %v418_v54, 0.0  ;;  %6625 = vmatpush3.msra.mxu0 %v2642_v24  ;;  %v2686_v54 = vld [vmem:[%s11160_s1 + $0x370] sm:$0xff] }
 0x309   :  { %v2367_v12 = vmul.f32 0.020408163, %v1439_v55  ;;  %v2383_v58 = vmul.f32 0.020408163, %v1487_v4  ;;  %v4952_v1 = vsel %vm3446_vm13, %v4951_v13, %v4947_v25  ;;  %6626 = vmatprep.subr.mxu0 %v2657_v2  ;;  %v2640_v13 = vld [vmem:[%s11160_s1 + $0x200] sm:$0xff]  ;;  %v2701_v2 = vld [vmem:[%s11160_s1 + $0x3e8] sm:$0xff] }
 0x30a   :  { %v4957_v48 = vsel %vm3453_vm14, %v4956_v0, %v4952_v1  ;;  %6627 = vmatpush3.msra.mxu0 %v2641_v5  ;;  %v431_v55 = vld [vmem:[%s11159_s0 + $0xd00] sm:$0xff] }
 0x30b   :  { %v4882_v49 = vrot.slane %v2367_v12, %v7289_v9  ;;  %v4961_v23 = vrot.slane %v2383_v58, %v7289_v9  ;;  %1687 = vadd.xlane.f32.xlu1 %v1686_v15  ;;  %1735 = vadd.xlane.f32.xlu0 %v1734_v18  ;;  %v448_v15 = vld [vmem:[%s11159_s0 + $0xd88] sm:$0xff]  ;;  %v419_v12 = vld [vmem:[%s11159_s0 + $0xca0] sm:$0xff]  ;;  %v2702_v58 = vld [vmem:[%s11160_s1 + $0x3f0] sm:$0xff]  ;;  %v1776_v41 = vsel %vm527_vm0, %v431_v55, 0.0 }
 0x30c   :  { %v1541_v17 = vpop.xlane.xlu1 %1540  ;;  %v1538_v52 = vpop.xlane.xlu0 %1537  ;;  %v1827_v0 = vsel %vm527_vm0, %v448_v15, 0.0  ;;  %6628 = vmatprep.subr.mxu0 %v2656_v16  ;;  %v1740_v5 = vsel %vm527_vm0, %v419_v12, 0.0  ;;  %v2698_v55 = vld [vmem:[%s11160_s1 + $0x3d0] sm:$0xff] }
 0x30d   :  { %v2401_v44 = vmul.f32 0.020408163, %v1541_v17  ;;  %v2400_v40 = vmul.f32 0.020408163, %v1538_v52  ;;  %v4962_v36 = vsel %vm3460_vm15, %v4961_v23, %v4957_v48  ;;  %v4883_v27 = vsel %vm3460_vm15, %v4882_v49, %v4878_v50  ;;  %6629 = vmatpush3.msra.mxu0 %v2640_v13  ;;  %v449_v17 = vld [vmem:[%s11159_s0 + $0xd90] sm:$0xff]  ;;  %v432_v48 = vld [vmem:[%s11159_s0 + $0xd08] sm:$0xff] }
 0x30e   :  { %v5915_v21 = vsel %vm5911_vm12, %v4962_v36, %v7604_v51  ;;  %v5914_v11 = vsel %vm5911_vm12, %v4883_v27, %v7507_v46  ;;  %v1689_v46 = vsel %vm527_vm0, %v402_v38, 0.0  ;;  %v2685_v50 = vld [vmem:[%s11160_s1 + $0x368] sm:$0xff]  ;;  %v2700_v38 = vld [vmem:[%s11160_s1 + $0x3e0] sm:$0xff]  ;;  %v1830_v16 = vsel %vm527_vm0, %v449_v17, 0.0  ;;  %6668 = vmatprep.subr.mxu0 %v2735_v33 }
 0x30f   :  { %v5049_v18 = vrot.slane %v2401_v44, %v7167_v31  ;;  %v5045_v37 = vrot.slane %v2400_v40, %v7161_v28  ;;  %1825 = vadd.xlane.f32.xlu1 %v1824_v47  ;;  %1738 = vadd.xlane.f32.xlu0 %v1737_v56  ;;  %v2684_v36 = vld [vmem:[%s11160_s1 + $0x360] sm:$0xff] }
 0x310   :  { %6078 = vmatprep.mubr.f32.mxu1 %v5915_v21  ;;  %v1493_v51 = vpop.xlane.xlu1 %1492  ;;  %v1490_v10 = vpop.xlane.xlu0 %1489  ;;  %v1779_v21 = vsel %vm527_vm0, %v432_v48, 0.0 }
 0x311   :  { %v5050_v4 = vsel %vm3362_vm1, %v5049_v18, %v5045_v37  ;;  %v2385_v59 = vmul.f32 0.020408163, %v1493_v51  ;;  %6079 = vmatmul.mubr.f32.vlgmr.msra.gmra.mxu1 %v5914_v11  ;;  %v2384_v25 = vmul.f32 0.020408163, %v1490_v10  ;;  %v420_v37 = vld [vmem:[%s11159_s0 + $0xca8] sm:$0xff]  ;;  %v2699_v51 = vld [vmem:[%s11160_s1 + $0x3d8] sm:$0xff] }
 0x312   :  { %6634 = vmatpush3.msra.mxu1 %v2687_v20  ;;  %v403_v20 = vld [vmem:[%s11159_s0 + $0xc20] sm:$0xff]  ;;  %v2683_v10 = vld [vmem:[%s11160_s1 + $0x358] sm:$0xff] }
 0x313   :  { %v4970_v1 = vrot.slane %v2385_v59, %v7167_v31  ;;  %v4966_v24 = vrot.slane %v2384_v25, %v7161_v28  ;;  %1690 = vadd.xlane.f32.xlu1 %v1689_v46  ;;  %1828 = vadd.xlane.f32.xlu0 %v1827_v0  ;;  %v1743_v25 = vsel %vm527_vm0, %v420_v37, 0.0  ;;  %v1692_v12 = vsel %vm527_vm0, %v403_v20, 0.0 }
 0x314   :  { %v1496_v49 = vpop.xlane.xlu1 %1495  ;;  %v1544_v23 = vpop.xlane.xlu0 %1543  ;;  %6635 = vmatprep.subr.mxu1 %v2702_v58  ;;  %v450_v58 = vld [vmem:[%s11159_s0 + $0xd98] sm:$0xff] }
 0x315   :  { %v4971_v52 = vsel %vm3362_vm1, %v4970_v1, %v4966_v24  ;;  %v2386_v47 = vmul.f32 0.020408163, %v1496_v49  ;;  %v2402_v56 = vmul.f32 0.020408163, %v1544_v23  ;;  %6636 = vmatpush3.msra.mxu1 %v2686_v54  ;;  %v2682_v49 = vld [vmem:[%s11160_s1 + $0x350] sm:$0xff]  ;;  %v2697_v23 = vld [vmem:[%s11160_s1 + $0x3c8] sm:$0xff] }
 0x316   :  { %6637 = vmatprep.subr.mxu1 %v2701_v2  ;;  %v433_v2 = vld [vmem:[%s11159_s0 + $0xd10] sm:$0xff]  ;;  %v1833_v48 = vsel %vm527_vm0, %v450_v58, 0.0 }
 0x317   :  { %v4975_v44 = vrot.slane %v2386_v47, %v7170_v32  ;;  %v5054_v40 = vrot.slane %v2402_v56, %v7170_v32  ;;  %1777 = vadd.xlane.f32.xlu1 %v1776_v41  ;;  %1741 = vadd.xlane.f32.xlu0 %v1740_v5 }
 0x318   :  { %v1634_v27 = vpop.xlane.xlu1 %1633  ;;  %v1547_v15 = vpop.xlane.xlu0 %1546  ;;  %6638 = vmatpush3.msra.mxu1 %v2685_v50  ;;  %v1782_v50 = vsel %vm527_vm0, %v433_v2, 0.0 }
 0x319   :  { %v4976_v11 = vsel %vm3369_vm2, %v4975_v44, %v4971_v52  ;;  %v5055_v13 = vsel %vm3369_vm2, %v5054_v40, %v5050_v4  ;;  %v2403_v18 = vmul.f32 0.020408163, %v1547_v15  ;;  %6639 = vmatprep.subr.mxu1 %v2700_v38  ;;  %v2432_v46 = vmul.f32 0.020408163, %v1634_v27  ;;  %v2681_v52 = vld [vmem:[%s11160_s1 + $0x348] sm:$0xff]  ;;  %v2696_v15 = vld [vmem:[%s11160_s1 + $0x3c0] sm:$0xff] }
 0x31a   :  { %6640 = vmatpush3.msra.mxu1 %v2684_v36  ;;  %v421_v36 = vld [vmem:[%s11159_s0 + $0xcb0] sm:$0xff]  ;;  %v404_v27 = vld [vmem:[%s11159_s0 + $0xc28] sm:$0xff] }
 0x31b   :  { %v5059_v0 = vrot.slane %v2403_v18, %v7164_v30  ;;  %1831 = vadd.xlane.f32.xlu1 %v1830_v16  ;;  %1780 = vadd.xlane.f32.xlu0 %v1779_v21  ;;  %v5203_v41 = vrot.slane %v2432_v46, %v7161_v28  ;;  %v2680_v16 = vld [vmem:[%s11160_s1 + $0x340] sm:$0xff]  ;;  %v1746_v20 = vsel %vm527_vm0, %v421_v36, 0.0 }
 0x31c   :  { %v1499_v4 = vpop.xlane.xlu1 %1498  ;;  %v1637_v59 = vpop.xlane.xlu0 %1636  ;;  %6641 = vmatprep.subr.mxu1 %v2699_v51  ;;  %v1695_v51 = vsel %vm527_vm0, %v404_v27, 0.0  ;;  %v2692_v36 = vld [vmem:[%s11160_s1 + $0x3a0] sm:$0xff] }
 0x31d   :  { %v5060_v54 = vsel %vm3376_vm3, %v5059_v0, %v5055_v13  ;;  %v2387_v1 = vmul.f32 0.020408163, %v1499_v4  ;;  %v2433_v24 = vmul.f32 0.020408163, %v1637_v59  ;;  %6642 = vmatpush3.msra.mxu1 %v2683_v10  ;;  %v2695_v13 = vld [vmem:[%s11160_s1 + $0x3b8] sm:$0xff]  ;;  %v451_v10 = vld [vmem:[%s11159_s0 + $0xda0] sm:$0xff] }
 0x31e   :  { %6643 = vmatprep.subr.mxu1 %v2698_v55  ;;  %v434_v4 = vld [vmem:[%s11159_s0 + $0xd18] sm:$0xff] }
 0x31f   :  { %v4980_v5 = vrot.slane %v2387_v1, %v7164_v30  ;;  %v5207_v17 = vrot.slane %v2433_v24, %v7167_v31  ;;  %1744 = vadd.xlane.f32.xlu1 %v1743_v25  ;;  %1693 = vadd.xlane.f32.xlu0 %v1692_v12  ;;  %v2679_v59 = vld [vmem:[%s11160_s1 + $0x338] sm:$0xff]  ;;  %v2694_v25 = vld [vmem:[%s11160_s1 + $0x3b0] sm:$0xff] }
 0x320   :  { %v1586_v47 = vpop.xlane.xlu1 %1585  ;;  %v1550_v56 = vpop.xlane.xlu0 %1549  ;;  %6644 = vmatpush3.msra.mxu1 %v2682_v49  ;;  %v2678_v1 = vld [vmem:[%s11160_s1 + $0x330] sm:$0xff]  ;;  %v1836_v49 = vsel %vm527_vm0, %v451_v10, 0.0  ;;  %v2676_v10 = vld [vmem:[%s11160_s1 + $0x320] sm:$0xff] }
 0x321   :  { %v4981_v38 = vsel %vm3376_vm3, %v4980_v5, %v4976_v11  ;;  %v5208_v44 = vsel %vm3362_vm1, %v5207_v17, %v5203_v41  ;;  %v2404_v40 = vmul.f32 0.020408163, %v1550_v56  ;;  %6645 = vmatprep.subr.mxu1 %v2697_v23  ;;  %v2416_v21 = vmul.f32 0.020408163, %v1586_v47  ;;  %v422_v41 = vld [vmem:[%s11159_s0 + $0xcb8] sm:$0xff]  ;;  %v405_v56 = vld [vmem:[%s11159_s0 + $0xc30] sm:$0xff] }
 0x322   :  { %6646 = vmatpush3.msra.mxu1 %v2681_v52  ;;  %v1785_v23 = vsel %vm527_vm0, %v434_v4, 0.0 }
 0x323   :  { %v5064_v11 = vrot.slane %v2404_v40, %v7184_v43  ;;  %1834 = vadd.xlane.f32.xlu1 %v1833_v48  ;;  %1783 = vadd.xlane.f32.xlu0 %v1782_v50  ;;  %v5124_v12 = vrot.slane %v2416_v21, %v7161_v28  ;;  %v2693_v48 = vld [vmem:[%s11160_s1 + $0x3a8] sm:$0xff]  ;;  %v1698_v21 = vsel %vm527_vm0, %v405_v56, 0.0 }
 0x324   :  { %v1640_v18 = vpop.xlane.xlu1 %1639  ;;  %v1589_v37 = vpop.xlane.xlu0 %1588  ;;  %6647 = vmatprep.subr.mxu1 %v2696_v15  ;;  %v2677_v50 = vld [vmem:[%s11160_s1 + $0x328] sm:$0xff] }
 0x325   :  { %v5065_v46 = vsel %vm3383_vm4, %v5064_v11, %v5060_v54  ;;  %v2434_v0 = vmul.f32 0.020408163, %v1640_v18  ;;  %v2417_v55 = vmul.f32 0.020408163, %v1589_v37  ;;  %6648 = vmatpush3.msra.mxu1 %v2680_v16  ;;  %v1749_v16 = vsel %vm527_vm0, %v422_v41, 0.0  ;;  %v452_v11 = vld [vmem:[%s11159_s0 + $0xda8] sm:$0xff] }
 0x326   :  { %6649 = vmatprep.subr.mxu1 %v2695_v13 }
 0x327   :  { %v5212_v58 = vrot.slane %v2434_v0, %v7170_v32  ;;  %v5128_v54 = vrot.slane %v2417_v55, %v7167_v31  ;;  %1747 = vadd.xlane.f32.xlu1 %v1746_v20  ;;  %1696 = vadd.xlane.f32.xlu0 %v1695_v51  ;;  %v435_v51 = vld [vmem:[%s11159_s0 + $0xd20] sm:$0xff]  ;;  %v2691_v0 = vld [vmem:[%s11160_s1 + $0x398] sm:$0xff] }
 0x328   :  { %v1553_v24 = vpop.xlane.xlu1 %1552  ;;  %v1502_v2 = vpop.xlane.xlu0 %1501  ;;  %6650 = vmatpush3.msra.mxu1 %v2679_v59  ;;  %v2675_v55 = vld [vmem:[%s11160_s1 + $0x318] sm:$0xff] }
 0x329   :  { %v5213_v5 = vsel %vm3369_vm2, %v5212_v58, %v5208_v44  ;;  %v5129_v17 = vsel %vm3362_vm1, %v5128_v54, %v5124_v12  ;;  %v2405_v52 = vmul.f32 0.020408163, %v1553_v24  ;;  %v2388_v47 = vmul.f32 0.020408163, %v1502_v2  ;;  %6651 = vmatprep.subr.mxu1 %v2694_v25  ;;  %v423_v24 = vld [vmem:[%s11159_s0 + $0xcc0] sm:$0xff]  ;;  %v406_v2 = vld [vmem:[%s11159_s0 + $0xc38] sm:$0xff] }
 0x32a   :  { %6652 = vmatpush3.msra.mxu1 %v2678_v1  ;;  %v1839_v25 = vsel %vm527_vm0, %v452_v11, 0.0  ;;  %v1788_v12 = vsel %vm527_vm0, %v435_v51, 0.0  ;;  %v1701_v56 = vsel %vm527_vm0, %v406_v2, 0.0  ;;  %v2672_v11 = vld [vmem:[%s11160_s1 + $0x300] sm:$0xff] }
 0x32b   :  { %v5069_v44 = vrot.slane %v2405_v52, %v7181_v42  ;;  %v4985_v40 = vrot.slane %v2388_v47, %v7184_v43  ;;  %1837 = vadd.xlane.f32.xlu1 %v1836_v49  ;;  %1786 = vadd.xlane.f32.xlu0 %v1785_v23  ;;  %v2690_v49 = vld [vmem:[%s11160_s1 + $0x390] sm:$0xff]  ;;  %v1752_v47 = vsel %vm527_vm0, %v423_v24, 0.0 }
 0x32c   :  { %v1643_v27 = vpop.xlane.xlu1 %1642  ;;  %v1592_v15 = vpop.xlane.xlu0 %1591  ;;  %6653 = vmatprep.subr.mxu1 %v2693_v48  ;;  %v2674_v23 = vld [vmem:[%s11160_s1 + $0x310] sm:$0xff] }
 0x32d   :  { %v9687_v13 = vsel %vm3390_vm5, %v5069_v44, %v5065_v46  ;;  %v4986_v18 = vsel %vm3383_vm4, %v4985_v40, %v4981_v38  ;;  %v2435_v37 = vmul.f32 0.020408163, %v1643_v27  ;;  %v2418_v20 = vmul.f32 0.020408163, %v1592_v15  ;;  %6654 = vmatpush3.msra.mxu1 %v2677_v50  ;;  %v453_v48 = vld [vmem:[%s11159_s0 + $0xdb0] sm:$0xff]  ;;  %v2673_v27 = vld [vmem:[%s11160_s1 + $0x308] sm:$0xff] }
 0x32e   :  { %6655 = vmatprep.subr.mxu1 %v2692_v36  ;;  %v436_v36 = vld [vmem:[%s11159_s0 + $0xd28] sm:$0xff]  ;;  %v2688_v15 = vld [vmem:[%s11160_s1 + $0x380] sm:$0xff]  ;;  %v437_v24 = vld [vmem:[%s11159_s0 + $0xd30] sm:$0xff] }
 0x32f   :  { %v5217_v46 = vrot.slane %v2435_v37, %v7164_v30  ;;  %v5133_v38 = vrot.slane %v2418_v20, %v7170_v32  ;;  %1750 = vadd.xlane.f32.xlu1 %v1749_v16  ;;  %1699 = vadd.xlane.f32.xlu0 %v1698_v21  ;;  %v1842_v20 = vsel %vm527_vm0, %v453_v48, 0.0  ;;  %v1791_v51 = vsel %vm527_vm0, %v436_v36, 0.0  ;;  %v408_v48 = vld [vmem:[%s11159_s0 + $0xc48] sm:$0xff] }
 0x330   :  { %v9704_v4 = vpop.xlane.xlu1 %1555  ;;  %v1505_v59 = vpop.xlane.xlu0 %1504  ;;  %6656 = vmatpush3.msra.mxu1 %v2676_v10 }
 0x331   :  { %v5218_v58 = vsel %vm3376_vm3, %v5217_v46, %v5213_v5  ;;  %v5134_v54 = vsel %vm3369_vm2, %v5133_v38, %v5129_v17  ;;  %v2389_v1 = vmul.f32 0.020408163, %v1505_v59  ;;  %6657 = vmatprep.subr.mxu1 %v2691_v0  ;;  %v2689_v5 = vld [vmem:[%s11160_s1 + $0x388] sm:$0xff]  ;;  %v407_v38 = vld [vmem:[%s11159_s0 + $0xc40] sm:$0xff]  ;;  %v2406_v8 = vmul.f32 0.020408163, %v9704_v4 }
 0x332   :  { %6658 = vmatpush3.msra.mxu1 %v2675_v55  ;;  %v424_v46 = vld [vmem:[%s11159_s0 + $0xcc8] sm:$0xff] }
 0x333   :  { %v4990_v41 = vrot.slane %v2389_v1, %v7181_v42  ;;  %1840 = vadd.xlane.f32.xlu1 %v1839_v25  ;;  %1789 = vadd.xlane.f32.xlu0 %v1788_v12  ;;  %v1755_v25 = vsel %vm527_vm0, %v424_v46, 0.0  ;;  %v1704_v12 = vsel %vm527_vm0, %v407_v38, 0.0  ;;  %v454_v1 = vld [vmem:[%s11159_s0 + $0xdb8] sm:$0xff] }
 0x334   :  { %v1646_v17 = vpop.xlane.xlu1 %1645  ;;  %v1595_v52 = vpop.xlane.xlu0 %1594  ;;  %6659 = vmatprep.subr.mxu1 %v2690_v49 }
 0x335   :  { %v9732_v50 = vsel %vm3390_vm5, %v4990_v41, %v4986_v18  ;;  %v2436_v44 = vmul.f32 0.020408163, %v1646_v17  ;;  %v2419_v40 = vmul.f32 0.020408163, %v1595_v52  ;;  %6660 = vmatpush3.msra.mxu1 %v2674_v23  ;;  %v1794_v17 = vsel %vm527_vm0, %v437_v24, 0.0 }
 0x336   :  { %6661 = vmatprep.subr.mxu1 %v2689_v5  ;;  %v1845_v5 = vsel %vm527_vm0, %v454_v1, 0.0 }
 0x337   :  { %v5222_v16 = vrot.slane %v2436_v44, %v7184_v43  ;;  %v5138_v21 = vrot.slane %v2419_v40, %v7164_v30  ;;  %1753 = vadd.xlane.f32.xlu1 %v1752_v47  ;;  %1702 = vadd.xlane.f32.xlu0 %v1701_v56  ;;  %v425_v56 = vld [vmem:[%s11159_s0 + $0xcd0] sm:$0xff] }
 0x338   :  { %v9748_v18 = vpop.xlane.xlu1 %1558  ;;  %v9750_v37 = vpop.xlane.xlu0 %1507  ;;  %6662 = vmatpush3.msra.mxu1 %v2673_v27  ;;  %v1758_v36 = vsel %vm527_vm0, %v425_v56, 0.0  ;;  %v1707_v27 = vsel %vm527_vm0, %v408_v48, 0.0 }
 0x339   :  { %v5223_v10 = vsel %vm3383_vm4, %v5222_v16, %v5218_v58  ;;  %v5139_v0 = vsel %vm3376_vm3, %v5138_v21, %v5134_v54  ;;  %6663 = vmatprep.subr.mxu1 %v2688_v15  ;;  %v455_v15 = vld [vmem:[%s11159_s0 + $0xdc0] sm:$0xff]  ;;  %v438_v16 = vld [vmem:[%s11159_s0 + $0xd38] sm:$0xff]  ;;  %v2407_v4 = vmul.f32 0.020408163, %v9748_v18 }
 0x33a   :  { %6664 = vmatpush3.msra.mxu1 %v2672_v11  ;;  %v462_v18 = vld [vmem:[%s11159_s0 + $0xdf8] sm:$0xff] }
 0x33b   :  { %1843 = vadd.xlane.f32.xlu1 %v1842_v20  ;;  %1792 = vadd.xlane.f32.xlu0 %v1791_v51  ;;  %v1848_v20 = vsel %vm527_vm0, %v455_v15, 0.0  ;;  %v1797_v51 = vsel %vm527_vm0, %v438_v16, 0.0  ;;  %v9977_v31 = vsel %vm527_vm0, %v462_v18, 0.0 }
 0x33c   :  { %v1649_v55 = vpop.xlane.xlu1 %1648  ;;  %v1598_v59 = vpop.xlane.xlu0 %1597 }
 0x33d   :  { %v2437_v58 = vmul.f32 0.020408163, %v1649_v55  ;;  %v2420_v54 = vmul.f32 0.020408163, %v1598_v59 }
 0x33f   :  { %v5227_v2 = vrot.slane %v2437_v58, %v7181_v42  ;;  %v5143_v49 = vrot.slane %v2420_v54, %v7184_v43  ;;  %1756 = vadd.xlane.f32.xlu1 %v1755_v25  ;;  %1705 = vadd.xlane.f32.xlu0 %v1704_v12  ;;  %v456_v25 = vld [vmem:[%s11159_s0 + $0xdc8] sm:$0xff]  ;;  %v439_v12 = vld [vmem:[%s11159_s0 + $0xd40] sm:$0xff]  ;;  %v2390_v43 = vmul.f32 0.020408163, %v9750_v37 }
 0x340   :  { %v9772_v23 = vpop.xlane.xlu1 %1561  ;;  %v9774_v41 = vpop.xlane.xlu0 %1510  ;;  %v1851_v1 = vsel %vm527_vm0, %v456_v25, 0.0  ;;  %v1800_v24 = vsel %vm527_vm0, %v439_v12, 0.0 }
 0x341   :  { %v9779_v52 = vsel %vm3390_vm5, %v5227_v2, %v5223_v10  ;;  %v9782_v47 = vsel %vm3383_vm4, %v5143_v49, %v5139_v0  ;;  %v426_v10 = vld [vmem:[%s11159_s0 + $0xcd8] sm:$0xff]  ;;  %v409_v0 = vld [vmem:[%s11159_s0 + $0xc50] sm:$0xff]  ;;  %v427_v2 = vld [vmem:[%s11159_s0 + $0xce0] sm:$0xff]  ;;  %v2408_v30 = vmul.f32 0.020408163, %v9772_v23 }
 0x342   :  { %v1761_v55 = vsel %vm527_vm0, %v426_v10, 0.0  ;;  %v1710_v59 = vsel %vm527_vm0, %v409_v0, 0.0  ;;  %v410_v49 = vld [vmem:[%s11159_s0 + $0xc58] sm:$0xff]  ;;  %v1764_v56 = vsel %vm527_vm0, %v427_v2, 0.0  ;;  %v428_v10 = vld [vmem:[%s11159_s0 + $0xce8] sm:$0xff]  ;;  %v411_v0 = vld [vmem:[%s11159_s0 + $0xc60] sm:$0xff] }
 0x343   :  { %1846 = vadd.xlane.f32.xlu1 %v1845_v5  ;;  %1795 = vadd.xlane.f32.xlu0 %v1794_v17  ;;  %v1713_v48 = vsel %vm527_vm0, %v410_v49, 0.0  ;;  %v1767_v25 = vsel %vm527_vm0, %v428_v10, 0.0  ;;  %v1716_v12 = vsel %vm527_vm0, %v411_v0, 0.0  ;;  %v480_v23 = vld [vmem:[%s11159_s0 + $0xe88] sm:$0xff]  ;;  %v5084_v22 = vrot.slane %v2408_v30, %v7230_v19 }
 0x344   :  { %v9790_v44 = vpop.xlane.xlu1 %1651  ;;  %v9792_v40 = vpop.xlane.xlu0 %1600  ;;  %v9986_v62 = vsel %vm527_vm0, %v480_v23, 0.0 }
 0x345   :  { %v2438_v28 = vmul.f32 0.020408163, %v9790_v44  ;;  %11198 = vst [vmem:[#allocation21_spill] sm:$0xff] %v9986_v62 }
 0x347   :  { %1759 = vadd.xlane.f32.xlu1 %v1758_v36  ;;  %1708 = vadd.xlane.f32.xlu0 %v1707_v27  ;;  %v457_v36 = vld [vmem:[%s11159_s0 + $0xdd0] sm:$0xff]  ;;  %v440_v27 = vld [vmem:[%s11159_s0 + $0xd48] sm:$0xff]  ;;  %v5232_v30 = vrot.slane %v2438_v28, %v7206_v61 }
 0x348   :  { %v9802_v21 = vpop.xlane.xlu1 %1564  ;;  %v9804_v11 = vpop.xlane.xlu0 %1513 }
 0x349   :  { %v2409_v44 = vmul.f32 0.020408163, %v9802_v21  ;;  %v2392_v45 = vmul.f32 0.020408163, %v9804_v11 }
 0x34b   :  { %1849 = vadd.xlane.f32.xlu1 %v1848_v20  ;;  %1798 = vadd.xlane.f32.xlu0 %v1797_v51  ;;  %v1854_v20 = vsel %vm527_vm0, %v457_v36, 0.0  ;;  %v1803_v51 = vsel %vm527_vm0, %v440_v27, 0.0  ;;  %v429_v36 = vld [vmem:[%s11159_s0 + $0xcf0] sm:$0xff]  ;;  %v412_v27 = vld [vmem:[%s11159_s0 + $0xc68] sm:$0xff] }
 0x34c   :  { %v9814_v46 = vpop.xlane.xlu1 %1654  ;;  %v9816_v38 = vpop.xlane.xlu0 %1603  ;;  %v1770_v10 = vsel %vm527_vm0, %v429_v36, 0.0  ;;  %v1719_v0 = vsel %vm527_vm0, %v412_v27, 0.0  ;;  %v443_v27 = vld [vmem:[%s11159_s0 + $0xd60] sm:$0xff] }
 0x34d   :  { %v1812_v33 = vsel %vm527_vm0, %v443_v27, 0.0  ;;  %v5074_v27 = vrot.slane %v2406_v8, %v7206_v61  ;;  %v2421_v8 = vmul.f32 0.020408163, %v9792_v40  ;;  %v2439_v21 = vmul.f32 0.020408163, %v9814_v46  ;;  %v2767_v46 = vld [vmem:[%s11160_s1 + $0x5f8] sm:$0xff] }
 0x34e   :  { %6703 = vmatprep.subr.mxu1 %v2767_v46 }
 0x34f   :  { %1762 = vadd.xlane.f32.xlu1 %v1761_v55  ;;  %1711 = vadd.xlane.f32.xlu0 %v1710_v59 }
 0x350   :  { %v9826_v58 = vpop.xlane.xlu1 %1567  ;;  %v9828_v54 = vpop.xlane.xlu0 %1516 }
 0x351   :  { %v2410_v11 = vmul.f32 0.020408163, %v9826_v58 }
 0x353   :  { %1852 = vadd.xlane.f32.xlu1 %v1851_v1  ;;  %1801 = vadd.xlane.f32.xlu0 %v1800_v24  ;;  %v458_v1 = vld [vmem:[%s11159_s0 + $0xdd8] sm:$0xff]  ;;  %v441_v24 = vld [vmem:[%s11159_s0 + $0xd50] sm:$0xff] }
 0x354   :  { %v9838_v5 = vpop.xlane.xlu1 %1657  ;;  %v9840_v17 = vpop.xlane.xlu0 %1606 }
 0x357   :  { %1765 = vadd.xlane.f32.xlu1 %v1764_v56  ;;  %1714 = vadd.xlane.f32.xlu0 %v1713_v48  ;;  %v1857_v56 = vsel %vm527_vm0, %v458_v1, 0.0  ;;  %v1806_v48 = vsel %vm527_vm0, %v441_v24, 0.0  ;;  %v430_v1 = vld [vmem:[%s11159_s0 + $0xcf8] sm:$0xff]  ;;  %v413_v24 = vld [vmem:[%s11159_s0 + $0xc70] sm:$0xff] }
 0x358   :  { %v9850_v15 = vpop.xlane.xlu1 %1570  ;;  %v9852_v16 = vpop.xlane.xlu0 %1519  ;;  %v1722_v63 = vsel %vm527_vm0, %v413_v24, 0.0  ;;  %v2391_v24 = vmul.f32 0.020408163, %v9774_v41 }
 0x35a   :  { %v5000_v40 = vrot.slane %v2391_v24, %v7203_v60 }
 0x35b   :  { %1855 = vadd.xlane.f32.xlu1 %v1854_v20  ;;  %1804 = vadd.xlane.f32.xlu0 %v1803_v51 }
 0x35c   :  { %v9862_v55 = vpop.xlane.xlu1 %1660  ;;  %v9864_v59 = vpop.xlane.xlu0 %1609 }
 0x35f   :  { %1768 = vadd.xlane.f32.xlu1 %v1767_v25  ;;  %1717 = vadd.xlane.f32.xlu0 %v1716_v12  ;;  %v459_v25 = vld [vmem:[%s11159_s0 + $0xde0] sm:$0xff]  ;;  %v442_v12 = vld [vmem:[%s11159_s0 + $0xd58] sm:$0xff] }
 0x360   :  { %v9874_v2 = vpop.xlane.xlu1 %1573  ;;  %v9876_v49 = vpop.xlane.xlu0 %1522  ;;  %v1809_v36 = vsel %vm527_vm0, %v442_v12, 0.0  ;;  %v445_v12 = vld [vmem:[%s11159_s0 + $0xd70] sm:$0xff] }
 0x361   :  { %v9953_v37 = vsel %vm527_vm0, %v445_v12, 0.0  ;;  %v5079_v12 = vrot.slane %v2407_v4, %v7203_v60  ;;  %v2422_v4 = vmul.f32 0.020408163, %v9816_v38  ;;  %v5148_v38 = vrot.slane %v2421_v8, %v7181_v42 }
 0x363   :  { %1858 = vadd.xlane.f32.xlu1 %v1857_v56  ;;  %1807 = vadd.xlane.f32.xlu0 %v1806_v48  ;;  %v460_v56 = vld [vmem:[%s11159_s0 + $0xde8] sm:$0xff]  ;;  %v1860_v48 = vsel %vm527_vm0, %v459_v25, 0.0  ;;  %v414_v25 = vld [vmem:[%s11159_s0 + $0xc78] sm:$0xff]  ;;  %v5153_v8 = vrot.slane %v2422_v4, %v7206_v61  ;;  %v2394_v4 = vmul.f32 0.020408163, %v9852_v16 }
 0x364   :  { %v9886_v20 = vpop.xlane.xlu1 %1663  ;;  %v9888_v51 = vpop.xlane.xlu0 %1612  ;;  %v1863_v3 = vsel %vm527_vm0, %v460_v56, 0.0  ;;  %v9950_v32 = vsel %vm527_vm0, %v414_v25, 0.0  ;;  %v479_v25 = vld [vmem:[%s11159_s0 + $0xe80] sm:$0xff]  ;;  %v2441_v16 = vmul.f32 0.020408163, %v9862_v55 }
 0x365   :  { %v9992_v18 = vsel %vm527_vm0, %v479_v25, 0.0  ;;  %v2412_v25 = vmul.f32 0.020408163, %v9874_v2  ;;  %v2424_v55 = vmul.f32 0.020408163, %v9864_v59 }
 0x367   :  { %1771 = vadd.xlane.f32.xlu1 %v1770_v10  ;;  %1720 = vadd.xlane.f32.xlu0 %v1719_v0  ;;  %v1773_v10 = vsel %vm527_vm0, %v430_v1, 0.0  ;;  %v444_v0 = vld [vmem:[%s11159_s0 + $0xd68] sm:$0xff]  ;;  %v461_v1 = vld [vmem:[%s11159_s0 + $0xdf0] sm:$0xff] }
 0x368   :  { %v9916_v34 = vpop.xlane.xlu1 %1576  ;;  %v9918_v29 = vpop.xlane.xlu0 %1525  ;;  %v9947_v56 = vsel %vm527_vm0, %v444_v0, 0.0  ;;  %v9968_v0 = vsel %vm527_vm0, %v446_v26, 0.0  ;;  %v4995_v26 = vrot.slane %v2390_v43, %v7206_v61  ;;  %v5075_v43 = vsel %vm3397_vm6, %v5074_v27, %v9687_v13 }
 0x369   :  { %v2411_v13 = vmul.f32 0.020408163, %v9850_v15  ;;  %v5005_v27 = vrot.slane %v2392_v45, %v7230_v19  ;;  %v5233_v15 = vsel %vm3397_vm6, %v5232_v30, %v9779_v52 }
 0x36a   :  { %v4996_v28 = vsel %vm3397_vm6, %v4995_v26, %v9732_v50  ;;  %v5094_v50 = vrot.slane %v2410_v11, %v7250_v39 }
 0x36b   :  { %1861 = vadd.xlane.f32.xlu1 %v1860_v48  ;;  %1810 = vadd.xlane.f32.xlu0 %v1809_v36  ;;  %v9965_v36 = vsel %vm527_vm0, %v461_v1, 0.0  ;;  %v464_v1 = vld [vmem:[%s11159_s0 + $0xe08] sm:$0xff]  ;;  %v5099_v52 = vrot.slane %v2411_v13, %v7244_v35 }
 0x36c   :  { %v9960_v41 = vpop.xlane.xlu1 %1666  ;;  %v9962_v48 = vpop.xlane.xlu0 %1615  ;;  %v9999_v24 = vsel %vm527_vm0, %v464_v1, 0.0  ;;  %v5001_v1 = vsel %vm3404_vm7, %v5000_v40, %v4996_v28  ;;  %v463_v40 = vld [vmem:[%s11159_s0 + $0xe00] sm:$0xff] }
 0x36f   :  { %1774 = vadd.xlane.f32.xlu1 %v1773_v10  ;;  %1723 = vadd.xlane.f32.xlu0 %v1722_v63  ;;  %v5080_v63 = vsel %vm3404_vm7, %v5079_v12, %v5075_v43  ;;  %v5089_v10 = vrot.slane %v2409_v44, %v7224_v14  ;;  %v5237_v12 = vrot.slane %v2439_v21, %v7203_v60  ;;  %v2413_v44 = vmul.f32 0.020408163, %v9916_v34 }
 0x370   :  { %v1580_v23 = vpop.xlane.xlu1 %1579  ;;  %v1529_v62 = vpop.xlane.xlu0 %1528  ;;  %v5085_v58 = vsel %vm3411_vm8, %v5084_v22, %v5080_v63  ;;  %v2393_v22 = vmul.f32 0.020408163, %v9828_v54  ;;  %v5149_v34 = vsel %vm3390_vm5, %v5148_v38, %v9782_v47  ;;  %v5006_v21 = vsel %vm3411_vm8, %v5005_v27, %v5001_v1 }
 0x371   :  { %v2414_v45 = vmul.f32 0.020408163, %v1580_v23  ;;  %v2423_v54 = vmul.f32 0.020408163, %v9840_v17  ;;  %v5104_v43 = vrot.slane %v2412_v25, %v7270_v57  ;;  %v5238_v30 = vsel %vm3404_vm7, %v5237_v12, %v5233_v15 }
 0x372   :  { %v5154_v11 = vsel %vm3397_vm6, %v5153_v8, %v5149_v34  ;;  %v5109_v47 = vrot.slane %v2413_v44, %v7264_v53  ;;  %v5010_v17 = vrot.slane %v2393_v22, %v7224_v14  ;;  %v2396_v25 = vmul.f32 0.020408163, %v9918_v29 }
 0x373   :  { %1864 = vadd.xlane.f32.xlu1 %v1863_v3  ;;  %1813 = vadd.xlane.f32.xlu0 %v1812_v33  ;;  %v5090_v3 = vsel %vm11176_vm9, %v5089_v10, %v5085_v58  ;;  %v2440_v33 = vmul.f32 0.020408163, %v9838_v5  ;;  %v10041_v5 = vsel %vm527_vm0, %v463_v40, 0.0  ;;  %v5114_v46 = vrot.slane %v2414_v45, %v7284_v6 }
 0x374   :  { %v1670_v26 = vpop.xlane.xlu1 %1669  ;;  %v10021_v2 = vpop.xlane.xlu0 %1618  ;;  %v5095_v23 = vsel %vm11199_vm10, %v5094_v50, %v5090_v3  ;;  %v5158_v28 = vrot.slane %v2423_v54, %v7203_v60  ;;  %v5015_v58 = vrot.slane %v2394_v4, %v7250_v39  ;;  %vm11201_vm10 = vcmask 851712  }
 0x375   :  { %v5242_v10 = vrot.slane %v2440_v33, %v7230_v19  ;;  %v5100_v13 = vsel %vm11200_vm11, %v5099_v52, %v5095_v23  ;;  %v2397_v12 = vmul.f32 0.020408163, %v1529_v62  ;;  %v5247_v44 = vrot.slane %v2441_v16, %v7224_v14 }
 0x376   :  { %v5105_v27 = vsel %vm11201_vm10, %v5104_v43, %v5100_v13  ;;  %v2442_v62 = vmul.f32 0.020408163, %v9886_v20  ;;  %v5025_v34 = vrot.slane %v2396_v25, %v7270_v57  ;;  %vm11202_vm11 = vcmask 720512  }
 0x377   :  { %1816 = vadd.xlane.f32.xlu1 %v9947_v56  ;;  %1726 = vadd.xlane.f32.xlu0 %v9950_v32  ;;  %v2395_v56 = vmul.f32 0.020408163, %v9876_v49  ;;  %v5110_v1 = vsel %vm3446_vm13, %v5109_v47, %v5105_v27  ;;  %v5011_v49 = vsel %vm11176_vm9, %v5010_v17, %v5006_v21  ;;  %v5243_v59 = vsel %vm3411_vm8, %v5242_v10, %v5238_v30 }
 0x378   :  { %v1583_v63 = vpop.xlane.xlu1 %1582  ;;  %v1532_v38 = vpop.xlane.xlu0 %1531  ;;  %v5115_v29 = vsel %vm3453_vm14, %v5114_v46, %v5110_v1  ;;  %v5016_v33 = vsel %vm11202_vm11, %v5015_v58, %v5011_v49  ;;  %v5163_v52 = vrot.slane %v2424_v55, %v7230_v19  ;;  %v2443_v21 = vmul.f32 0.020408163, %v9960_v41  ;;  %v465_v58 = vld [vmem:[%s11159_s0 + $0xe10] sm:$0xff] }
 0x379   :  { %v2415_v32 = vmul.f32 0.020408163, %v1583_v63  ;;  %v2398_v15 = vmul.f32 0.020408163, %v1532_v38  ;;  %v5020_v45 = vrot.slane %v2395_v56, %v7244_v35  ;;  %v5030_v54 = vrot.slane %v2397_v12, %v7264_v53  ;;  %v11205_v38 = vld [vmem:[#allocation21_spill] sm:$0xff]  ;;  %v481_v12 = vld [vmem:[%s11159_s0 + $0xe90] sm:$0xff] }
 0x37a   :  { %v5248_v20 = vsel %vm11176_vm9, %v5247_v44, %v5243_v59  ;;  %v2444_v4 = vmul.f32 0.020408163, %v1670_v26  ;;  %vm11203_vm10 = vcmask 786112   ;;  %v5252_v41 = vrot.slane %v2442_v62, %v7250_v39 }
 0x37b   :  { %v5119_v8 = vrot.slane %v2415_v32, %v7289_v9  ;;  %1819 = vadd.xlane.f32.xlu1 %v9953_v37  ;;  %1867 = vadd.xlane.f32.xlu0 %v9965_v36  ;;  %v5159_v37 = vsel %vm3404_vm7, %v5158_v28, %v5154_v11  ;;  %v2425_v36 = vmul.f32 0.020408163, %v9888_v51  ;;  %v2426_v51 = vmul.f32 0.020408163, %v9962_v48 }
 0x37c   :  { %v1673_v50 = vpop.xlane.xlu1 %1672  ;;  %v1622_v22 = vpop.xlane.xlu0 %1621  ;;  %v5035_v43 = vrot.slane %v2398_v15, %v7284_v6  ;;  %v5021_v11 = vsel %vm11203_vm10, %v5020_v45, %v5016_v33  ;;  %v2427_v47 = vmul.f32 0.020408163, %v10021_v2  ;;  %vm11204_vm11 = vcmask 851712   ;;  %v11207_v15 = vld [vmem:[#allocation10_spill] sm:$0xff] }
 0x37d   :  { %v5120_v40 = vsel %vm3460_vm15, %v5119_v8, %v5115_v29  ;;  %v5026_v17 = vsel %vm11204_vm11, %v5025_v34, %v5021_v11  ;;  %v2445_v16 = vmul.f32 0.020408163, %v1673_v50  ;;  %v2428_v48 = vmul.f32 0.020408163, %v1622_v22  ;;  %v2734_v22 = vld [vmem:[%s11160_s1 + $0x4f0] sm:$0xff]  ;;  %v2732_v11 = vld [vmem:[%s11160_s1 + $0x4e0] sm:$0xff] }
 0x37e   :  { %v5917_v3 = vsel %vm5911_vm12, %v5120_v40, %v7798_v7  ;;  %v5257_v26 = vrot.slane %v2443_v21, %v7244_v35  ;;  %v5031_v46 = vsel %vm3446_vm13, %v5030_v54, %v5026_v17  ;;  %v5164_v10 = vsel %vm3411_vm8, %v5163_v52, %v5159_v37  ;;  %v2718_v40 = vld [vmem:[%s11160_s1 + $0x470] sm:$0xff]  ;;  %v2733_v21 = vld [vmem:[%s11160_s1 + $0x4e8] sm:$0xff] }
 0x37f   :  { %1822 = vadd.xlane.f32.xlu1 %v9968_v0  ;;  %6148 = vmatprep.mubr.f32.mxu0 %v5917_v3  ;;  %v5168_v0 = vrot.slane %v2425_v36, %v7224_v14  ;;  %v5173_v2 = vrot.slane %v2426_v51, %v7250_v39  ;;  %v5262_v13 = vrot.slane %v2444_v4, %v7270_v57  ;;  %vm11206_vm10 = vcmask 720512  }
 0x380   :  { %1870 = vadd.xlane.f32.xlu0 %v9977_v31  ;;  %v1625_v7 = vpop.xlane.xlu1 %1624  ;;  %v1535_v30 = vpop.xlane.xlu0 %1534  ;;  %v5036_v28 = vsel %vm3453_vm14, %v5035_v43, %v5031_v46  ;;  %v5178_v27 = vrot.slane %v2427_v47, %v7244_v35  ;;  %v5253_v8 = vsel %vm11206_vm10, %v5252_v41, %v5248_v20  ;;  %v5267_v49 = vrot.slane %v2445_v16, %v7264_v53  ;;  %v2717_v43 = vld [vmem:[%s11160_s1 + $0x468] sm:$0xff] }
 0x381   :  { %v2399_v23 = vmul.f32 0.020408163, %v1535_v30  ;;  %v2429_v31 = vmul.f32 0.020408163, %v1625_v7  ;;  %v5183_v44 = vrot.slane %v2428_v48, %v7270_v57  ;;  %v5169_v29 = vsel %vm11176_vm9, %v5168_v0, %v5164_v10  ;;  %v2716_v0 = vld [vmem:[%s11160_s1 + $0x460] sm:$0xff] }
 0x382   :  { %vm11208_vm11 = vcmask 786112   ;;  %v1878_v62 = vsel %vm527_vm0, %v465_v58, 0.0  ;;  %v5174_v37 = vsel %vm11206_vm10, %v5173_v2, %v5169_v29  ;;  %v1926_v52 = vsel %vm527_vm0, %v481_v12, 0.0  ;;  %v11213_v58 = vld [vmem:[#allocation11_spill] sm:$0xff] }
 0x383   :  { %v5040_v63 = vrot.slane %v2399_v23, %v7289_v9  ;;  %1924 = vadd.xlane.f32.xlu1 %v11205_v38  ;;  %v5258_v59 = vsel %vm11208_vm11, %v5257_v26, %v5253_v8  ;;  %v5188_v45 = vrot.slane %v2429_v31, %v7264_v53  ;;  %vm11209_vm11 = vcmask 851712  }
 0x384   :  { %1921 = vadd.xlane.f32.xlu0 %v9992_v18  ;;  %v1628_v56 = vpop.xlane.xlu1 %1627  ;;  %v1676_v32 = vpop.xlane.xlu0 %1675  ;;  %v2719_v18 = vld [vmem:[%s11160_s1 + $0x478] sm:$0xff]  ;;  %v5263_v54 = vsel %vm11209_vm11, %v5262_v13, %v5258_v59  ;;  %vm11210_vm10 = vcmask 786112   ;;  %vm11211_vm9 = vmmov %vm11209_vm11  ;;  %v495_v59 = vld [vmem:[%s11159_s0 + $0xf00] sm:$0xff] }
 0x385   :  { %v2430_v25 = vmul.f32 0.020408163, %v1628_v56  ;;  %v2446_v55 = vmul.f32 0.020408163, %v1676_v32  ;;  %v5041_v1 = vsel %vm3460_vm15, %v5040_v63, %v5036_v28  ;;  %v5179_v20 = vsel %vm11210_vm10, %v5178_v27, %v5174_v37  ;;  %v466_v13 = vld [vmem:[%s11159_s0 + $0xe18] sm:$0xff]  ;;  %v512_v56 = vld [vmem:[%s11159_s0 + $0xf88] sm:$0xff]  ;;  %vm11221_vm11 = vmmov %vm11210_vm10 }
 0x386   :  { %v5916_v50 = vsel %vm5911_vm12, %v5041_v1, %v11207_v15  ;;  %v5268_v7 = vsel %vm3446_vm13, %v5267_v49, %v5263_v54  ;;  %v5184_v30 = vsel %vm11211_vm9, %v5183_v44, %v5179_v20  ;;  %v11212_v32 = vld [vmem:[#allocation12_spill] sm:$0xff]  ;;  %v11214_v1 = vld [vmem:[#allocation7_spill] sm:$0xff]  ;;  %v2019_v29 = vsel %vm527_vm0, %v512_v56, 0.0  ;;  %v2765_v54 = vld [vmem:[%s11160_s1 + $0x5e8] sm:$0xff] }
 0x387   :  { %1876 = vadd.xlane.f32.xlu1 %v9999_v24  ;;  %6149 = vmatmul.mubr.f32.vlgmr.msra.gmra.mxu0 %v5916_v50  ;;  %v5193_v36 = vrot.slane %v2430_v25, %v7284_v6  ;;  %v5272_v34 = vrot.slane %v2446_v55, %v7284_v6  ;;  %v511_v24 = vld [vmem:[%s11159_s0 + $0xf80] sm:$0xff]  ;;  %v5189_v41 = vsel %vm3446_vm13, %v5188_v45, %v5184_v30  ;;  %v2731_v25 = vld [vmem:[%s11160_s1 + $0x4d8] sm:$0xff]  ;;  %v2766_v44 = vld [vmem:[%s11160_s1 + $0x5f0] sm:$0xff]  ;;  %vm11220_vm9 = vcmask 720512  }
 0x388   :  { %1873 = vadd.xlane.f32.xlu0 %v10041_v5  ;;  %v1631_v3 = vpop.xlane.xlu1 %1630  ;;  %v1679_v33 = vpop.xlane.xlu0 %1678  ;;  %6669 = vmatpush3.msra.mxu0 %v2719_v18  ;;  %v482_v5 = vld [vmem:[%s11159_s0 + $0xe98] sm:$0xff]  ;;  %v2016_v48 = vsel %vm527_vm0, %v511_v24, 0.0  ;;  %v11215_v18 = vld [vmem:[#allocation5_spill] sm:$0xff]  ;;  %v2730_v45 = vld [vmem:[%s11160_s1 + $0x4d0] sm:$0xff]  ;;  %vm11222_vm10 = vcmask 851712  }
 0x389   :  { %v2431_v51 = vmul.f32 0.020408163, %v1631_v3  ;;  %v2447_v4 = vmul.f32 0.020408163, %v1679_v33  ;;  %6670 = vmatprep.subr.mxu0 %v2734_v22  ;;  %v1929_v26 = vsel %vm527_vm0, %v482_v5, 0.0  ;;  %v5273_v46 = vsel %vm3453_vm14, %v5272_v34, %v5268_v7  ;;  %v2751_v55 = vld [vmem:[%s11160_s1 + $0x578] sm:$0xff] }
 0x38a   :  { %6671 = vmatpush3.msra.mxu0 %v2718_v40  ;;  %v5194_v31 = vsel %vm3453_vm14, %v5193_v36, %v5189_v41  ;;  %v2715_v49 = vld [vmem:[%s11160_s1 + $0x458] sm:$0xff]  ;;  %v1881_v22 = vsel %vm527_vm0, %v466_v13, 0.0  ;;  %v483_v36 = vld [vmem:[%s11159_s0 + $0xea0] sm:$0xff]  ;;  %v2714_v34 = vld [vmem:[%s11160_s1 + $0x450] sm:$0xff] }
 0x38b   :  { %v5198_v47 = vrot.slane %v2431_v51, %v7289_v9  ;;  %v5277_v23 = vrot.slane %v2447_v4, %v7289_v9  ;;  %1879 = vadd.xlane.f32.xlu1 %v1878_v62  ;;  %6672 = vmatprep.subr.mxu0 %v2733_v21  ;;  %v2729_v3 = vld [vmem:[%s11160_s1 + $0x4c8] sm:$0xff]  ;;  %v2750_v33 = vld [vmem:[%s11160_s1 + $0x570] sm:$0xff]  ;;  %v1968_v4 = vsel %vm527_vm0, %v495_v59, 0.0  ;;  %v1932_v5 = vsel %vm527_vm0, %v483_v36, 0.0 }
 0x38c   :  { %1927 = vadd.xlane.f32.xlu0 %v1926_v52  ;;  %v1733_v17 = vpop.xlane.xlu1 %1732  ;;  %v1730_v16 = vpop.xlane.xlu0 %1729  ;;  %6673 = vmatpush3.msra.mxu0 %v2717_v43  ;;  %v2713_v21 = vld [vmem:[%s11160_s1 + $0x448] sm:$0xff]  ;;  %v2728_v43 = vld [vmem:[%s11160_s1 + $0x4c0] sm:$0xff]  ;;  %v513_v41 = vld [vmem:[%s11159_s0 + $0xf90] sm:$0xff] }
 0x38d   :  { %v2465_v63 = vmul.f32 0.020408163, %v1733_v17  ;;  %v2464_v38 = vmul.f32 0.020408163, %v1730_v16  ;;  %v5278_v10 = vsel %vm3460_vm15, %v5277_v23, %v5273_v46  ;;  %v5199_v2 = vsel %vm3460_vm15, %v5198_v47, %v5194_v31  ;;  %6674 = vmatprep.subr.mxu0 %v2732_v11  ;;  %v2749_v47 = vld [vmem:[%s11160_s1 + $0x568] sm:$0xff]  ;;  %v2764_v17 = vld [vmem:[%s11160_s1 + $0x5e0] sm:$0xff] }
 0x38e   :  { %v5919_v28 = vsel %vm5911_vm12, %v5278_v10, %v11212_v32  ;;  %v5918_v27 = vsel %vm5911_vm12, %v5199_v2, %v11213_v58  ;;  %6675 = vmatpush3.msra.mxu0 %v2716_v0  ;;  %v496_v23 = vld [vmem:[%s11159_s0 + $0xf08] sm:$0xff]  ;;  %v2712_v0 = vld [vmem:[%s11160_s1 + $0x440] sm:$0xff]  ;;  %v2727_v46 = vld [vmem:[%s11160_s1 + $0x4b8] sm:$0xff]  ;;  %v2022_v10 = vsel %vm527_vm0, %v513_v41, 0.0 }
 0x38f   :  { %v5365_v12 = vrot.slane %v2465_v63, %v11214_v1  ;;  %v5361_v8 = vrot.slane %v2464_v38, %v11215_v18  ;;  %2017 = vadd.xlane.f32.xlu1 %v2016_v48  ;;  %6218 = vmatprep.mubr.f32.mxu1 %v5919_v28  ;;  %v11216_v16 = vld [vmem:[#allocation8_spill] sm:$0xff]  ;;  %v1971_v28 = vsel %vm527_vm0, %v496_v23, 0.0  ;;  %v484_v58 = vld [vmem:[%s11159_s0 + $0xea8] sm:$0xff] }
 0x390   :  { %1930 = vadd.xlane.f32.xlu0 %v1929_v26  ;;  %v1685_v15 = vpop.xlane.xlu1 %1684  ;;  %6219 = vmatmul.mubr.f32.vlgmr.msra.gmra.mxu1 %v5918_v27  ;;  %v1682_v50 = vpop.xlane.xlu0 %1681  ;;  %v2748_v31 = vld [vmem:[%s11160_s1 + $0x560] sm:$0xff]  ;;  %v2711_v2 = vld [vmem:[%s11160_s1 + $0x438] sm:$0xff]  ;;  %v1935_v59 = vsel %vm527_vm0, %v484_v58, 0.0 }
 0x391   :  { %v5366_v62 = vsel %vm3362_vm1, %v5365_v12, %v5361_v8  ;;  %v2449_v40 = vmul.f32 0.020408163, %v1685_v15  ;;  %v2448_v37 = vmul.f32 0.020408163, %v1682_v50  ;;  %6676 = vmatprep.subr.mxu0 %v2731_v25  ;;  %6704 = vmatpush3.msra.mxu1 %v2751_v55  ;;  %v467_v27 = vld [vmem:[%s11159_s0 + $0xe20] sm:$0xff]  ;;  %v2763_v25 = vld [vmem:[%s11160_s1 + $0x5d8] sm:$0xff] }
 0x392   :  { %6677 = vmatpush3.msra.mxu0 %v2715_v49  ;;  %6705 = vmatprep.subr.mxu1 %v2766_v44  ;;  %v2726_v55 = vld [vmem:[%s11160_s1 + $0x4b0] sm:$0xff]  ;;  %v2747_v12 = vld [vmem:[%s11160_s1 + $0x558] sm:$0xff]  ;;  %v515_v58 = vld [vmem:[%s11159_s0 + $0xfa0] sm:$0xff] }
 0x393   :  { %v5286_v52 = vrot.slane %v2449_v40, %v11214_v1  ;;  %v5282_v24 = vrot.slane %v2448_v37, %v11215_v18  ;;  %1882 = vadd.xlane.f32.xlu1 %v1881_v22  ;;  %6678 = vmatprep.subr.mxu0 %v2730_v45  ;;  %v11217_v49 = vld [vmem:[#allocation6_spill] sm:$0xff]  ;;  %v1884_v45 = vsel %vm527_vm0, %v467_v27, 0.0 }
 0x394   :  { %2020 = vadd.xlane.f32.xlu0 %v2019_v29  ;;  %v1688_v20 = vpop.xlane.xlu1 %1687  ;;  %v1736_v51 = vpop.xlane.xlu0 %1735  ;;  %6679 = vmatpush3.msra.mxu0 %v2714_v34  ;;  %v2710_v15 = vld [vmem:[%s11160_s1 + $0x430] sm:$0xff]  ;;  %v514_v34 = vld [vmem:[%s11159_s0 + $0xf98] sm:$0xff] }
 0x395   :  { %v5287_v7 = vsel %vm3362_vm1, %v5286_v52, %v5282_v24  ;;  %v2450_v30 = vmul.f32 0.020408163, %v1688_v20  ;;  %v2466_v11 = vmul.f32 0.020408163, %v1736_v51  ;;  %6680 = vmatprep.subr.mxu0 %v2729_v3  ;;  %6706 = vmatpush3.msra.mxu1 %v2750_v33  ;;  %v2762_v50 = vld [vmem:[%s11160_s1 + $0x5d0] sm:$0xff]  ;;  %v2709_v52 = vld [vmem:[%s11160_s1 + $0x428] sm:$0xff] }
 0x396   :  { %6681 = vmatpush3.msra.mxu0 %v2713_v21  ;;  %6707 = vmatprep.subr.mxu1 %v2765_v54  ;;  %v2746_v3 = vld [vmem:[%s11160_s1 + $0x550] sm:$0xff]  ;;  %v2761_v24 = vld [vmem:[%s11160_s1 + $0x5c8] sm:$0xff]  ;;  %v2724_v51 = vld [vmem:[%s11160_s1 + $0x4a0] sm:$0xff] }
 0x397   :  { %v5291_v48 = vrot.slane %v2450_v30, %v11216_v16  ;;  %v5370_v26 = vrot.slane %v2466_v11, %v11216_v16  ;;  %1969 = vadd.xlane.f32.xlu1 %v1968_v4  ;;  %6682 = vmatprep.subr.mxu0 %v2728_v43  ;;  %v497_v33 = vld [vmem:[%s11159_s0 + $0xf10] sm:$0xff]  ;;  %v2745_v4 = vld [vmem:[%s11160_s1 + $0x548] sm:$0xff]  ;;  %v2708_v30 = vld [vmem:[%s11160_s1 + $0x420] sm:$0xff] }
 0x398   :  { %1933 = vadd.xlane.f32.xlu0 %v1932_v5  ;;  %v1826_v63 = vpop.xlane.xlu1 %1825  ;;  %v1739_v38 = vpop.xlane.xlu0 %1738  ;;  %6708 = vmatpush3.msra.mxu1 %v2749_v47  ;;  %v1974_v23 = vsel %vm527_vm0, %v497_v33, 0.0  ;;  %v2722_v27 = vld [vmem:[%s11160_s1 + $0x490] sm:$0xff]  ;;  %v2705_v33 = vld [vmem:[%s11160_s1 + $0x408] sm:$0xff] }
 0x399   :  { %v5292_v13 = vsel %vm3369_vm2, %v5291_v48, %v5287_v7  ;;  %v5371_v56 = vsel %vm3369_vm2, %v5370_v26, %v5366_v62  ;;  %v2467_v32 = vmul.f32 0.020408163, %v1739_v38  ;;  %6683 = vmatpush3.msra.mxu0 %v2712_v0  ;;  %6709 = vmatprep.subr.mxu1 %v2764_v17  ;;  %v2496_v8 = vmul.f32 0.020408163, %v1826_v63  ;;  %v2725_v62 = vld [vmem:[%s11160_s1 + $0x4a8] sm:$0xff]  ;;  %v485_v0 = vld [vmem:[%s11159_s0 + $0xeb0] sm:$0xff] }
 0x39a   :  { %6684 = vmatprep.subr.mxu0 %v2727_v46  ;;  %6710 = vmatpush3.msra.mxu1 %v2748_v31  ;;  %v2025_v7 = vsel %vm527_vm0, %v514_v34, 0.0  ;;  %v468_v17 = vld [vmem:[%s11159_s0 + $0xe28] sm:$0xff]  ;;  %v2760_v48 = vld [vmem:[%s11160_s1 + $0x5c0] sm:$0xff]  ;;  %v2723_v26 = vld [vmem:[%s11160_s1 + $0x498] sm:$0xff] }
 0x39b   :  { %v5375_v44 = vrot.slane %v2467_v32, %v11217_v49  ;;  %2023 = vadd.xlane.f32.xlu1 %v2022_v10  ;;  %6685 = vmatpush3.msra.mxu0 %v2711_v2  ;;  %v5519_v21 = vrot.slane %v2496_v8, %v11215_v18  ;;  %v2744_v46 = vld [vmem:[%s11160_s1 + $0x540] sm:$0xff]  ;;  %v2707_v10 = vld [vmem:[%s11160_s1 + $0x418] sm:$0xff]  ;;  %v1938_v32 = vsel %vm527_vm0, %v485_v0, 0.0 }
 0x39c   :  { %1972 = vadd.xlane.f32.xlu0 %v1971_v28  ;;  %v1691_v22 = vpop.xlane.xlu1 %1690  ;;  %v1829_v29 = vpop.xlane.xlu0 %1828  ;;  %6711 = vmatprep.subr.mxu1 %v2763_v25  ;;  %v11218_v63 = vld [vmem:[#allocation9_spill] sm:$0xff]  ;;  %v2759_v2 = vld [vmem:[%s11160_s1 + $0x5b8] sm:$0xff]  ;;  %v1887_v28 = vsel %vm527_vm0, %v468_v17, 0.0 }
 0x39d   :  { %v5376_v40 = vsel %vm3376_vm3, %v5375_v44, %v5371_v56  ;;  %v2451_v37 = vmul.f32 0.020408163, %v1691_v22  ;;  %v2497_v36 = vmul.f32 0.020408163, %v1829_v29  ;;  %6686 = vmatprep.subr.mxu0 %v2726_v55  ;;  %6712 = vmatpush3.msra.mxu1 %v2747_v12  ;;  %v498_v8 = vld [vmem:[%s11159_s0 + $0xf18] sm:$0xff] }
 0x39e   :  { %6687 = vmatpush3.msra.mxu0 %v2710_v15  ;;  %6713 = vmatprep.subr.mxu1 %v2762_v50  ;;  %v2743_v44 = vld [vmem:[%s11160_s1 + $0x538] sm:$0xff]  ;;  %v2706_v15 = vld [vmem:[%s11160_s1 + $0x410] sm:$0xff]  ;;  %v1977_v34 = vsel %vm527_vm0, %v498_v8, 0.0 }
 0x39f   :  { %v5296_v54 = vrot.slane %v2451_v37, %v11217_v49  ;;  %v5523_v20 = vrot.slane %v2497_v36, %v11214_v1  ;;  %1936 = vadd.xlane.f32.xlu1 %v1935_v59  ;;  %6688 = vmatprep.subr.mxu0 %v2725_v62  ;;  %v2758_v50 = vld [vmem:[%s11160_s1 + $0x5b0] sm:$0xff]  ;;  %v2028_v36 = vsel %vm527_vm0, %v515_v58, 0.0 }
 0x3a0   :  { %1885 = vadd.xlane.f32.xlu0 %v1884_v45  ;;  %v1778_v5 = vpop.xlane.xlu1 %1777  ;;  %v1742_v43 = vpop.xlane.xlu0 %1741  ;;  %6714 = vmatpush3.msra.mxu1 %v2746_v3  ;;  %v2721_v45 = vld [vmem:[%s11160_s1 + $0x488] sm:$0xff]  ;;  %v2742_v62 = vld [vmem:[%s11160_s1 + $0x530] sm:$0xff]  ;;  %v486_v3 = vld [vmem:[%s11159_s0 + $0xeb8] sm:$0xff] }
 0x3a1   :  { %v10303_v11 = vsel %vm3376_vm3, %v5296_v54, %v5292_v13  ;;  %v5524_v41 = vsel %vm3362_vm1, %v5523_v20, %v5519_v21  ;;  %v2468_v47 = vmul.f32 0.020408163, %v1742_v43  ;;  %6689 = vmatpush3.msra.mxu0 %v2709_v52  ;;  %6715 = vmatprep.subr.mxu1 %v2761_v24  ;;  %v2480_v31 = vmul.f32 0.020408163, %v1778_v5  ;;  %v469_v20 = vld [vmem:[%s11159_s0 + $0xe30] sm:$0xff]  ;;  %v2741_v5 = vld [vmem:[%s11160_s1 + $0x528] sm:$0xff] }
 0x3a2   :  { %6690 = vmatprep.subr.mxu0 %v2724_v51  ;;  %6716 = vmatpush3.msra.mxu1 %v2745_v4  ;;  %v2757_v51 = vld [vmem:[%s11160_s1 + $0x5a8] sm:$0xff]  ;;  %v2720_v4 = vld [vmem:[%s11160_s1 + $0x480] sm:$0xff]  ;;  %v1941_v0 = vsel %vm527_vm0, %v486_v3, 0.0  ;;  %v1890_v17 = vsel %vm527_vm0, %v469_v20, 0.0 }
 0x3a3   :  { %v5380_v38 = vrot.slane %v2468_v47, %v11218_v63  ;;  %2026 = vadd.xlane.f32.xlu1 %v2025_v7  ;;  %6691 = vmatpush3.msra.mxu0 %v2708_v30  ;;  %v5440_v22 = vrot.slane %v2480_v31, %v11215_v18  ;;  %v2704_v30 = vld [vmem:[%s11160_s1 + $0x400] sm:$0xff] }
 0x3a4   :  { %1975 = vadd.xlane.f32.xlu0 %v1974_v23  ;;  %v1832_v13 = vpop.xlane.xlu1 %1831  ;;  %v1781_v56 = vpop.xlane.xlu0 %1780  ;;  %6717 = vmatprep.subr.mxu1 %v2760_v48  ;;  %v2740_v48 = vld [vmem:[%s11160_s1 + $0x520] sm:$0xff] }
 0x3a5   :  { %v5381_v25 = vsel %vm3383_vm4, %v5380_v38, %v5376_v40  ;;  %v2498_v55 = vmul.f32 0.020408163, %v1832_v13  ;;  %v2481_v12 = vmul.f32 0.020408163, %v1781_v56  ;;  %6692 = vmatprep.subr.mxu0 %v2723_v26  ;;  %6718 = vmatpush3.msra.mxu1 %v2744_v46  ;;  %v499_v13 = vld [vmem:[%s11159_s0 + $0xf20] sm:$0xff] }
 0x3a6   :  { %6693 = vmatpush3.msra.mxu0 %v2707_v10  ;;  %6719 = vmatprep.subr.mxu1 %v2759_v2  ;;  %v516_v10 = vld [vmem:[%s11159_s0 + $0xfa8] sm:$0xff]  ;;  %v2755_v2 = vld [vmem:[%s11160_s1 + $0x598] sm:$0xff] }
 0x3a7   :  { %v5528_v29 = vrot.slane %v2498_v55, %v11216_v16  ;;  %v5444_v59 = vrot.slane %v2481_v12, %v11214_v1  ;;  %1939 = vadd.xlane.f32.xlu1 %v1938_v32  ;;  %6694 = vmatprep.subr.mxu0 %v2722_v27  ;;  %v2738_v55 = vld [vmem:[%s11160_s1 + $0x510] sm:$0xff] }
 0x3a8   :  { %1888 = vadd.xlane.f32.xlu0 %v1887_v28  ;;  %v1745_v40 = vpop.xlane.xlu1 %1744  ;;  %v1694_v37 = vpop.xlane.xlu0 %1693  ;;  %6720 = vmatpush3.msra.mxu1 %v2743_v44  ;;  %v2754_v28 = vld [vmem:[%s11160_s1 + $0x590] sm:$0xff] }
 0x3a9   :  { %v5529_v52 = vsel %vm3369_vm2, %v5528_v29, %v5524_v41  ;;  %v5445_v24 = vsel %vm3362_vm1, %v5444_v59, %v5440_v22  ;;  %v2469_v21 = vmul.f32 0.020408163, %v1745_v40  ;;  %v2452_v54 = vmul.f32 0.020408163, %v1694_v37  ;;  %6695 = vmatpush3.msra.mxu0 %v2706_v15  ;;  %6721 = vmatprep.subr.mxu1 %v2758_v50  ;;  %v2756_v41 = vld [vmem:[%s11160_s1 + $0x5a0] sm:$0xff]  ;;  %v2753_v22 = vld [vmem:[%s11160_s1 + $0x588] sm:$0xff] }
 0x3aa   :  { %6696 = vmatprep.subr.mxu0 %v2721_v45  ;;  %6722 = vmatpush3.msra.mxu1 %v2742_v62  ;;  %v1980_v15 = vsel %vm527_vm0, %v499_v13, 0.0  ;;  %v487_v50 = vld [vmem:[%s11159_s0 + $0xec0] sm:$0xff]  ;;  %v470_v29 = vld [vmem:[%s11159_s0 + $0xe38] sm:$0xff]  ;;  %v2737_v59 = vld [vmem:[%s11160_s1 + $0x508] sm:$0xff] }
 0x3ab   :  { %v5385_v43 = vrot.slane %v2469_v21, %v7181_v42  ;;  %v5301_v7 = vrot.slane %v2452_v54, %v11218_v63  ;;  %2029 = vadd.xlane.f32.xlu1 %v2028_v36  ;;  %6697 = vmatpush3.msra.mxu0 %v2705_v33  ;;  %v2752_v62 = vld [vmem:[%s11160_s1 + $0x580] sm:$0xff]  ;;  %v1944_v36 = vsel %vm527_vm0, %v487_v50, 0.0  ;;  %v517_v21 = vld [vmem:[%s11159_s0 + $0xfb0] sm:$0xff]  ;;  %v500_v54 = vld [vmem:[%s11159_s0 + $0xf28] sm:$0xff] }
 0x3ac   :  { %1978 = vadd.xlane.f32.xlu0 %v1977_v34  ;;  %v1835_v47 = vpop.xlane.xlu1 %1834  ;;  %v1784_v23 = vpop.xlane.xlu0 %1783  ;;  %6723 = vmatprep.subr.mxu1 %v2757_v51  ;;  %v2736_v34 = vld [vmem:[%s11160_s1 + $0x500] sm:$0xff] }
 0x3ad   :  { %v10395_v26 = vsel %vm3390_vm5, %v5385_v43, %v5381_v25  ;;  %v5302_v46 = vsel %vm3383_vm4, %v5301_v7, %v10303_v11  ;;  %v2499_v31 = vmul.f32 0.020408163, %v1835_v47  ;;  %v2482_v38 = vmul.f32 0.020408163, %v1784_v23  ;;  %6698 = vmatprep.subr.mxu0 %v2720_v4  ;;  %6724 = vmatpush3.msra.mxu1 %v2741_v5  ;;  %v2739_v11 = vld [vmem:[%s11160_s1 + $0x518] sm:$0xff]  ;;  %v488_v47 = vld [vmem:[%s11159_s0 + $0xec8] sm:$0xff] }
 0x3ae   :  { %6699 = vmatpush3.msra.mxu0 %v2704_v30  ;;  %6725 = vmatprep.subr.mxu1 %v2756_v41  ;;  %v2031_v25 = vsel %vm527_vm0, %v516_v10, 0.0  ;;  %v2034_v43 = vsel %vm527_vm0, %v517_v21, 0.0  ;;  %v1983_v41 = vsel %vm527_vm0, %v500_v54, 0.0  ;;  %v471_v23 = vld [vmem:[%s11159_s0 + $0xe40] sm:$0xff]  ;;  %v518_v10 = vld [vmem:[%s11159_s0 + $0xfb8] sm:$0xff]  ;;  %v520_v54 = vld [vmem:[%s11159_s0 + $0xfc8] sm:$0xff] }
 0x3af   :  { %v5533_v56 = vrot.slane %v2499_v31, %v11217_v49  ;;  %v5449_v32 = vrot.slane %v2482_v38, %v11216_v16  ;;  %1942 = vadd.xlane.f32.xlu1 %v1941_v0  ;;  %6726 = vmatpush3.msra.mxu1 %v2740_v48  ;;  %v1947_v48 = vsel %vm527_vm0, %v488_v47, 0.0  ;;  %v1896_v38 = vsel %vm527_vm0, %v471_v23, 0.0  ;;  %v474_v47 = vld [vmem:[%s11159_s0 + $0xe58] sm:$0xff] }
 0x3b0   :  { %1891 = vadd.xlane.f32.xlu0 %v1890_v17  ;;  %v10416_v58 = vpop.xlane.xlu1 %1747  ;;  %v1697_v27 = vpop.xlane.xlu0 %1696  ;;  %6727 = vmatprep.subr.mxu1 %v2755_v2  ;;  %v501_v2 = vld [vmem:[%s11159_s0 + $0xf30] sm:$0xff] }
 0x3b1   :  { %v5534_v12 = vsel %vm3376_vm3, %v5533_v56, %v5529_v52  ;;  %v5450_v8 = vsel %vm3369_vm2, %v5449_v32, %v5445_v24  ;;  %v2453_v44 = vmul.f32 0.020408163, %v1697_v27  ;;  %6728 = vmatpush3.msra.mxu1 %v2739_v11  ;;  %v1893_v24 = vsel %vm527_vm0, %v470_v29, 0.0  ;;  %v519_v29 = vld [vmem:[%s11159_s0 + $0xfc0] sm:$0xff] }
 0x3b2   :  { %6729 = vmatprep.subr.mxu1 %v2754_v28  ;;  %v2037_v28 = vsel %vm527_vm0, %v518_v10, 0.0 }
 0x3b3   :  { %v5306_v45 = vrot.slane %v2453_v44, %v7181_v42  ;;  %2032 = vadd.xlane.f32.xlu1 %v2031_v25  ;;  %6730 = vmatpush3.msra.mxu1 %v2738_v55  ;;  %v1986_v55 = vsel %vm527_vm0, %v501_v2, 0.0 }
 0x3b4   :  { %1981 = vadd.xlane.f32.xlu0 %v1980_v15  ;;  %v1838_v40 = vpop.xlane.xlu1 %1837  ;;  %v1787_v37 = vpop.xlane.xlu0 %1786  ;;  %6731 = vmatprep.subr.mxu1 %v2753_v22 }
 0x3b5   :  { %v10446_v3 = vsel %vm3390_vm5, %v5306_v45, %v5302_v46  ;;  %v2500_v33 = vmul.f32 0.020408163, %v1838_v40  ;;  %v2483_v52 = vmul.f32 0.020408163, %v1787_v37  ;;  %6732 = vmatpush3.msra.mxu1 %v2737_v59  ;;  %v502_v59 = vld [vmem:[%s11159_s0 + $0xf38] sm:$0xff]  ;;  %v2040_v40 = vsel %vm527_vm0, %v519_v29, 0.0 }
 0x3b6   :  { %6733 = vmatprep.subr.mxu1 %v2752_v62  ;;  %v1989_v37 = vsel %vm527_vm0, %v502_v59, 0.0  ;;  %v505_v29 = vld [vmem:[%s11159_s0 + $0xf50] sm:$0xff] }
 0x3b7   :  { %v5538_v20 = vrot.slane %v2500_v33, %v11218_v63  ;;  %v5454_v51 = vrot.slane %v2483_v52, %v11217_v49  ;;  %1945 = vadd.xlane.f32.xlu1 %v1944_v36  ;;  %6734 = vmatpush3.msra.mxu1 %v2736_v34  ;;  %v490_v36 = vld [vmem:[%s11159_s0 + $0xed8] sm:$0xff]  ;;  %v473_v34 = vld [vmem:[%s11159_s0 + $0xe50] sm:$0xff] }
 0x3b8   :  { %1894 = vadd.xlane.f32.xlu0 %v1893_v24  ;;  %v10457_v4 = vpop.xlane.xlu1 %1750  ;;  %v10459_v5 = vpop.xlane.xlu0 %1699  ;;  %v1953_v24 = vsel %vm527_vm0, %v490_v36, 0.0  ;;  %v1902_v21 = vsel %vm527_vm0, %v473_v34, 0.0  ;;  %v1998_v36 = vsel %vm527_vm0, %v505_v29, 0.0  ;;  %v493_v34 = vld [vmem:[%s11159_s0 + $0xef0] sm:$0xff] }
 0x3b9   :  { %v5539_v7 = vsel %vm3383_vm4, %v5538_v20, %v5534_v12  ;;  %v5455_v30 = vsel %vm3376_vm3, %v5454_v51, %v5450_v8  ;;  %v489_v12 = vld [vmem:[%s11159_s0 + $0xed0] sm:$0xff]  ;;  %v472_v8 = vld [vmem:[%s11159_s0 + $0xe48] sm:$0xff]  ;;  %v503_v20 = vld [vmem:[%s11159_s0 + $0xf40] sm:$0xff]  ;;  %v2471_v29 = vmul.f32 0.020408163, %v10457_v4 }
 0x3ba   :  { %v1950_v50 = vsel %vm527_vm0, %v489_v12, 0.0  ;;  %v1899_v22 = vsel %vm527_vm0, %v472_v8, 0.0 }
 0x3bb   :  { %2035 = vadd.xlane.f32.xlu1 %v2034_v43 }
 0x3bc   :  { %1984 = vadd.xlane.f32.xlu0 %v1983_v41  ;;  %v1841_v0 = vpop.xlane.xlu1 %1840  ;;  %v1790_v17 = vpop.xlane.xlu0 %1789  ;;  %v491_v41 = vld [vmem:[%s11159_s0 + $0xee0] sm:$0xff] }
 0x3bd   :  { %v2501_v46 = vmul.f32 0.020408163, %v1841_v0  ;;  %v2484_v31 = vmul.f32 0.020408163, %v1790_v17  ;;  %v1956_v17 = vsel %vm527_vm0, %v491_v41, 0.0  ;;  %v506_v41 = vld [vmem:[%s11159_s0 + $0xf58] sm:$0xff] }
 0x3bf   :  { %v5543_v13 = vrot.slane %v2501_v46, %v7181_v42  ;;  %v5459_v11 = vrot.slane %v2484_v31, %v11218_v63  ;;  %1948 = vadd.xlane.f32.xlu1 %v1947_v48  ;;  %v1905_v48 = vsel %vm527_vm0, %v474_v47, 0.0  ;;  %v521_v46 = vld [vmem:[%s11159_s0 + $0xfd0] sm:$0xff]  ;;  %v504_v31 = vld [vmem:[%s11159_s0 + $0xf48] sm:$0xff]  ;;  %v2799_v47 = vld [vmem:[%s11160_s1 + $0x6f8] sm:$0xff] }
 0x3c0   :  { %1897 = vadd.xlane.f32.xlu0 %v1896_v38  ;;  %v10481_v56 = vpop.xlane.xlu1 %1753  ;;  %v10483_v32 = vpop.xlane.xlu0 %1702  ;;  %v2046_v2 = vsel %vm527_vm0, %v521_v46, 0.0  ;;  %6738 = vmatprep.subr.mxu0 %v2799_v47  ;;  %v510_v47 = vld [vmem:[%s11159_s0 + $0xf78] sm:$0xff] }
 0x3c1   :  { %v10487_v27 = vsel %vm3390_vm5, %v5543_v13, %v5539_v7  ;;  %v10490_v25 = vsel %vm3383_vm4, %v5459_v11, %v5455_v30  ;;  %v2043_v7 = vsel %vm527_vm0, %v520_v54, 0.0  ;;  %v1992_v30 = vsel %vm527_vm0, %v503_v20, 0.0  ;;  %v492_v11 = vld [vmem:[%s11159_s0 + $0xee8] sm:$0xff] }
 0x3c2   :  { %v1995_v13 = vsel %vm527_vm0, %v504_v31, 0.0  ;;  %v1959_v8 = vsel %vm527_vm0, %v492_v11, 0.0  ;;  %v1962_v20 = vsel %vm527_vm0, %v493_v34, 0.0  ;;  %v494_v31 = vld [vmem:[%s11159_s0 + $0xef8] sm:$0xff]  ;;  %v2470_v11 = vmul.f32 0.020408163, %v10416_v58 }
 0x3c3   :  { %2038 = vadd.xlane.f32.xlu1 %v2037_v28  ;;  %v475_v28 = vld [vmem:[%s11159_s0 + $0xe60] sm:$0xff]  ;;  %v509_v58 = vld [vmem:[%s11159_s0 + $0xf70] sm:$0xff] }
 0x3c4   :  { %1987 = vadd.xlane.f32.xlu0 %v1986_v55  ;;  %v10499_v44 = vpop.xlane.xlu1 %1843  ;;  %v10501_v15 = vpop.xlane.xlu0 %1792 }
 0x3c7   :  { %1951 = vadd.xlane.f32.xlu1 %v1950_v50  ;;  %v1908_v50 = vsel %vm527_vm0, %v475_v28, 0.0  ;;  %v2001_v28 = vsel %vm527_vm0, %v506_v41, 0.0 }
 0x3c8   :  { %1900 = vadd.xlane.f32.xlu0 %v1899_v22  ;;  %v10511_v45 = vpop.xlane.xlu1 %1756  ;;  %v10513_v62 = vpop.xlane.xlu0 %1705  ;;  %v522_v22 = vld [vmem:[%s11159_s0 + $0xfd8] sm:$0xff] }
 0x3cb   :  { %2041 = vadd.xlane.f32.xlu1 %v2040_v40 }
 0x3cc   :  { %1990 = vadd.xlane.f32.xlu0 %v1989_v37  ;;  %v10523_v33 = vpop.xlane.xlu1 %1846  ;;  %v10525_v52 = vpop.xlane.xlu0 %1795  ;;  %v2049_v37 = vsel %vm527_vm0, %v522_v22, 0.0  ;;  %v478_v22 = vld [vmem:[%s11159_s0 + $0xe78] sm:$0xff] }
 0x3cd   :  { %v1917_v41 = vsel %vm527_vm0, %v478_v22, 0.0  ;;  %v2485_v22 = vmul.f32 0.020408163, %v10501_v15  ;;  %v2503_v49 = vmul.f32 0.020408163, %v10523_v33 }
 0x3cf   :  { %1954 = vadd.xlane.f32.xlu1 %v1953_v24  ;;  %v476_v24 = vld [vmem:[%s11159_s0 + $0xe68] sm:$0xff] }
 0x3d0   :  { %1903 = vadd.xlane.f32.xlu0 %v1902_v21  ;;  %v10535_v51 = vpop.xlane.xlu1 %1759  ;;  %v10537_v43 = vpop.xlane.xlu0 %1708 }
 0x3d3   :  { %2044 = vadd.xlane.f32.xlu1 %v2043_v7  ;;  %v1911_v7 = vsel %vm527_vm0, %v476_v24, 0.0  ;;  %v525_v24 = vld [vmem:[%s11159_s0 + $0xff0] sm:$0xff] }
 0x3d4   :  { %1993 = vadd.xlane.f32.xlu0 %v1992_v30  ;;  %v10547_v23 = vpop.xlane.xlu1 %1849  ;;  %v10549_v0 = vpop.xlane.xlu0 %1798  ;;  %v523_v30 = vld [vmem:[%s11159_s0 + $0xfe0] sm:$0xff]  ;;  %v10667_v63 = vsel %vm527_vm0, %v525_v24, 0.0 }
 0x3d5   :  { %v2052_v46 = vsel %vm527_vm0, %v523_v30, 0.0 }
 0x3d7   :  { %1957 = vadd.xlane.f32.xlu1 %v1956_v17 }
 0x3d8   :  { %1906 = vadd.xlane.f32.xlu0 %v1905_v48  ;;  %v10559_v38 = vpop.xlane.xlu1 %1762  ;;  %v10561_v10 = vpop.xlane.xlu0 %1711 }
 0x3d9   :  { %v2475_v33 = vmul.f32 0.020408163, %v10559_v38  ;;  %v5553_v38 = vrot.slane %v2503_v49, %v7203_v60 }
 0x3db   :  { %2047 = vadd.xlane.f32.xlu1 %v2046_v2  ;;  %v477_v2 = vld [vmem:[%s11159_s0 + $0xe70] sm:$0xff] }
 0x3dc   :  { %1996 = vadd.xlane.f32.xlu0 %v1995_v13  ;;  %v10571_v55 = vpop.xlane.xlu1 %1852  ;;  %v10573_v12 = vpop.xlane.xlu0 %1801  ;;  %v524_v13 = vld [vmem:[%s11159_s0 + $0xfe8] sm:$0xff]  ;;  %v1914_v34 = vsel %vm527_vm0, %v477_v2, 0.0  ;;  %v2455_v2 = vmul.f32 0.020408163, %v10483_v32  ;;  %v2473_v32 = vmul.f32 0.020408163, %v10511_v45 }
 0x3dd   :  { %v2055_v4 = vsel %vm527_vm0, %v524_v13, 0.0  ;;  %v526_v13 = vld [vmem:[%s11159_s0 + $0xff8] sm:$0xff] }
 0x3de   :  { %v10678_v24 = vsel %vm527_vm0, %v526_v13, 0.0  ;;  %v2831_v45 = vld [vmem:[%s11160_s1 + $0x7f8] sm:$0xff] }
 0x3df   :  { %1960 = vadd.xlane.f32.xlu1 %v1959_v8  ;;  %v507_v8 = vld [vmem:[%s11159_s0 + $0xf60] sm:$0xff]  ;;  %6773 = vmatprep.subr.mxu1 %v2831_v45 }
 0x3e0   :  { %1909 = vadd.xlane.f32.xlu0 %v1908_v50  ;;  %v10583_v59 = vpop.xlane.xlu1 %1765  ;;  %v10585_v40 = vpop.xlane.xlu0 %1714  ;;  %v508_v50 = vld [vmem:[%s11159_s0 + $0xf68] sm:$0xff]  ;;  %v2004_v30 = vsel %vm527_vm0, %v507_v8, 0.0  ;;  %v5395_v8 = vrot.slane %v2471_v29, %v7203_v60  ;;  %v2474_v29 = vmul.f32 0.020408163, %v10535_v51 }
 0x3e1   :  { %v2476_v13 = vmul.f32 0.020408163, %v10583_v59 }
 0x3e3   :  { %2050 = vadd.xlane.f32.xlu1 %v2049_v37  ;;  %v2454_v37 = vmul.f32 0.020408163, %v10459_v5  ;;  %v2007_v5 = vsel %vm527_vm0, %v508_v50, 0.0  ;;  %v2502_v50 = vmul.f32 0.020408163, %v10499_v44 }
 0x3e4   :  { %1999 = vadd.xlane.f32.xlu0 %v1998_v36  ;;  %v10595_v21 = vpop.xlane.xlu1 %1855  ;;  %v10597_v54 = vpop.xlane.xlu0 %1804  ;;  %v1965_v36 = vsel %vm527_vm0, %v494_v31, 0.0  ;;  %v2472_v31 = vmul.f32 0.020408163, %v10481_v56 }
 0x3e5   :  { %v5311_v56 = vrot.slane %v2454_v37, %v7206_v61 }
 0x3e6   :  { %v5400_v37 = vrot.slane %v2472_v31, %v7230_v19 }
 0x3e7   :  { %1963 = vadd.xlane.f32.xlu1 %v1962_v20  ;;  %v5312_v16 = vsel %vm3397_vm6, %v5311_v56, %v10446_v3 }
 0x3e8   :  { %1912 = vadd.xlane.f32.xlu0 %v1911_v7  ;;  %v1769_v17 = vpop.xlane.xlu1 %1768  ;;  %v10610_v48 = vpop.xlane.xlu0 %1717 }
 0x3e9   :  { %v2477_v31 = vmul.f32 0.020408163, %v1769_v17  ;;  %v5415_v17 = vrot.slane %v2475_v33, %v7244_v35 }
 0x3eb   :  { %2053 = vadd.xlane.f32.xlu1 %v2052_v46  ;;  %v5390_v46 = vrot.slane %v2470_v11, %v7206_v61  ;;  %v2456_v11 = vmul.f32 0.020408163, %v10513_v62 }
 0x3ec   :  { %2002 = vadd.xlane.f32.xlu0 %v2001_v28  ;;  %v10643_v20 = vpop.xlane.xlu1 %1858  ;;  %v10645_v7 = vpop.xlane.xlu0 %1807  ;;  %v10658_v28 = vsel %vm527_vm0, %v509_v58, 0.0  ;;  %v10673_v58 = vsel %vm527_vm0, %v510_v47, 0.0  ;;  %v5464_v47 = vrot.slane %v2485_v22, %v7181_v42  ;;  %vm11219_vm0 = vcmask 654912  }
 0x3ed   :  { %v5391_v62 = vsel %vm3397_vm6, %v5390_v46, %v10395_v26  ;;  %v5405_v26 = vrot.slane %v2473_v32, %v7224_v14  ;;  %v5321_v46 = vrot.slane %v2456_v11, %v7230_v19  ;;  %v2457_v32 = vmul.f32 0.020408163, %v10537_v43 }
 0x3ee   :  { %v5396_v51 = vsel %vm3404_vm7, %v5395_v8, %v5391_v62  ;;  %v5410_v8 = vrot.slane %v2474_v29, %v7250_v39  ;;  %v5425_v43 = vrot.slane %v2477_v31, %v7264_v53 }
 0x3ef   :  { %1966 = vadd.xlane.f32.xlu1 %v1965_v36  ;;  %v5316_v36 = vrot.slane %v2455_v2, %v7203_v60  ;;  %v2486_v2 = vmul.f32 0.020408163, %v10525_v52  ;;  %v5401_v3 = vsel %vm3411_vm8, %v5400_v37, %v5396_v51  ;;  %v5465_v52 = vsel %vm3390_vm5, %v5464_v47, %v10490_v25 }
 0x3f0   :  { %1915 = vadd.xlane.f32.xlu0 %v1914_v34  ;;  %v1772_v44 = vpop.xlane.xlu1 %1771  ;;  %v1721_v15 = vpop.xlane.xlu0 %1720  ;;  %v5548_v34 = vrot.slane %v2502_v50, %v7206_v61  ;;  %v5406_v11 = vsel %vm11219_vm0, %v5405_v26, %v5401_v3  ;;  %v5326_v37 = vrot.slane %v2457_v32, %v7224_v14  ;;  %v2460_v47 = vmul.f32 0.020408163, %v10610_v48 }
 0x3f1   :  { %v2478_v50 = vmul.f32 0.020408163, %v1772_v44  ;;  %v5317_v56 = vsel %vm3404_vm7, %v5316_v36, %v5312_v16  ;;  %v2458_v16 = vmul.f32 0.020408163, %v10561_v10  ;;  %v5411_v25 = vsel %vm11220_vm9, %v5410_v8, %v5406_v11 }
 0x3f2   :  { %v5549_v49 = vsel %vm3397_vm6, %v5548_v34, %v10487_v27  ;;  %v5322_v29 = vsel %vm3411_vm8, %v5321_v46, %v5317_v56  ;;  %v5469_v27 = vrot.slane %v2486_v2, %v7206_v61  ;;  %v5416_v36 = vsel %vm11221_vm11, %v5415_v17, %v5411_v25 }
 0x3f3   :  { %2056 = vadd.xlane.f32.xlu1 %v2055_v4  ;;  %v2487_v4 = vmul.f32 0.020408163, %v10549_v0  ;;  %v10718_v44 = vsel %vm3404_vm7, %v5553_v38, %v5549_v49  ;;  %v5430_v0 = vrot.slane %v2478_v50, %v7284_v6  ;;  %v2459_v10 = vmul.f32 0.020408163, %v10585_v40 }
 0x3f4   :  { %2005 = vadd.xlane.f32.xlu0 %v2004_v30  ;;  %v10699_v22 = vpop.xlane.xlu1 %1861  ;;  %v10701_v59 = vpop.xlane.xlu0 %1810  ;;  %v5420_v30 = vrot.slane %v2476_v13, %v7270_v57  ;;  %v2461_v26 = vmul.f32 0.020408163, %v1721_v15  ;;  %v5470_v40 = vsel %vm3397_vm6, %v5469_v27, %v5465_v52  ;;  %v5327_v8 = vsel %vm11219_vm0, %v5326_v37, %v5322_v29 }
 0x3f5   :  { %v5474_v51 = vrot.slane %v2487_v4, %v7203_v60  ;;  %v2488_v50 = vmul.f32 0.020408163, %v10573_v12  ;;  %v5336_v15 = vrot.slane %v2459_v10, %v7244_v35  ;;  %v5341_v56 = vrot.slane %v2460_v47, %v7270_v57 }
 0x3f6   :  { %v5421_v34 = vsel %vm11222_vm10, %v5420_v30, %v5416_v36  ;;  %v5346_v12 = vrot.slane %v2461_v26, %v7264_v53  ;;  %v2506_v4 = vmul.f32 0.020408163, %v10595_v21  ;;  %v2491_v27 = vmul.f32 0.020408163, %v10701_v59 }
 0x3f7   :  { %2008 = vadd.xlane.f32.xlu1 %v2007_v5  ;;  %v10727_v5 = vmul.f32 0.020408163, %v10547_v23  ;;  %v5426_v13 = vsel %vm3446_vm13, %v5425_v43, %v5421_v34  ;;  %v2505_v23 = vmul.f32 0.020408163, %v10571_v55  ;;  %v2489_v55 = vmul.f32 0.020408163, %v10597_v54 }
 0x3f8   :  { %1918 = vadd.xlane.f32.xlu0 %v1917_v41  ;;  %v1775_v45 = vpop.xlane.xlu1 %1774  ;;  %v1724_v62 = vpop.xlane.xlu0 %1723  ;;  %v5331_v41 = vrot.slane %v2458_v16, %v7250_v39  ;;  %v5431_v48 = vsel %vm3453_vm14, %v5430_v0, %v5426_v13  ;;  %v5475_v17 = vsel %vm3404_vm7, %v5474_v51, %v5470_v40  ;;  %v2490_v54 = vmul.f32 0.020408163, %v10645_v7  ;;  %v11224_v40 = vld [vmem:[#allocation13_spill] sm:$0xff] }
 0x3f9   :  { %v2479_v33 = vmul.f32 0.020408163, %v1775_v45  ;;  %v2462_v31 = vmul.f32 0.020408163, %v1724_v62  ;;  %v5563_v52 = vrot.slane %v2505_v23, %v7224_v14  ;;  %v5479_v16 = vrot.slane %v2488_v50, %v7230_v19  ;;  %v2782_v50 = vld [vmem:[%s11160_s1 + $0x670] sm:$0xff] }
 0x3fa   :  { %v5332_v49 = vsel %vm11220_vm9, %v5331_v41, %v5327_v8  ;;  %v5484_v25 = vrot.slane %v2489_v55, %v7224_v14  ;;  %v2507_v21 = vmul.f32 0.020408163, %v10643_v20  ;;  %v5568_v36 = vrot.slane %v2506_v4, %v7250_v39  ;;  %vm11225_vm9 = vmmov %vm11219_vm0 }
 0x3fb   :  { %v5435_v46 = vrot.slane %v2479_v33, %v7289_v9  ;;  %2011 = vadd.xlane.f32.xlu1 %v10658_v28  ;;  %v5558_v28 = vrot.slane %v10727_v5, %v7230_v19  ;;  %v5351_v30 = vrot.slane %v2462_v31, %v7284_v6  ;;  %v5337_v43 = vsel %vm11221_vm11, %v5336_v15, %v5332_v49  ;;  %v2798_v31 = vld [vmem:[%s11160_s1 + $0x6f0] sm:$0xff] }
 0x3fc   :  { %2059 = vadd.xlane.f32.xlu0 %v10667_v63  ;;  %v1865_v38 = vpop.xlane.xlu1 %1864  ;;  %v1814_v2 = vpop.xlane.xlu0 %1813  ;;  %v11223_v63 = vld [vmem:[#allocation14_spill] sm:$0xff]  ;;  %v5342_v0 = vsel %vm11222_vm10, %v5341_v56, %v5337_v43  ;;  %v5489_v10 = vrot.slane %v2490_v54, %v7250_v39  ;;  %v5494_v34 = vrot.slane %v2491_v27, %v7244_v35  ;;  %v5480_v13 = vsel %vm3411_vm8, %v5479_v16, %v5475_v17  ;;  %v2780_v27 = vld [vmem:[%s11160_s1 + $0x660] sm:$0xff] }
 0x3fd   :  { %v5436_v3 = vsel %vm3460_vm15, %v5435_v46, %v5431_v48  ;;  %v2492_v7 = vmul.f32 0.020408163, %v1814_v2  ;;  %v5347_v45 = vsel %vm3446_vm13, %v5346_v12, %v5342_v0  ;;  %v2509_v33 = vmul.f32 0.020408163, %v1865_v38 }
 0x3fe   :  { %v5921_v32 = vsel %vm5911_vm12, %v5436_v3, %v11223_v63  ;;  %v5352_v59 = vsel %vm3453_vm14, %v5351_v30, %v5347_v45  ;;  %v5573_v26 = vrot.slane %v2507_v21, %v7244_v35  ;;  %v5559_v38 = vsel %vm3411_vm8, %v5558_v28, %v10718_v44  ;;  %v2797_v28 = vld [vmem:[%s11160_s1 + $0x6e8] sm:$0xff] }
 0x3ff   :  { %2014 = vadd.xlane.f32.xlu1 %v10673_v58  ;;  %6288 = vmatprep.mubr.f32.mxu0 %v5921_v32  ;;  %v5499_v46 = vrot.slane %v2492_v7, %v7270_v57  ;;  %v5485_v2 = vsel %vm11219_vm0, %v5484_v25, %v5480_v13  ;;  %v5564_v15 = vsel %vm11225_vm9, %v5563_v52, %v5559_v38  ;;  %vm11226_vm11 = vcmask 720512   ;;  %v2781_v52 = vld [vmem:[%s11160_s1 + $0x668] sm:$0xff]  ;;  %v2795_v7 = vld [vmem:[%s11160_s1 + $0x6d8] sm:$0xff]  ;;  %v2814_v38 = vld [vmem:[%s11160_s1 + $0x770] sm:$0xff] }
 0x400   :  { %2062 = vadd.xlane.f32.xlu0 %v10678_v24  ;;  %v1817_v11 = vpop.xlane.xlu1 %1816  ;;  %v1727_v29 = vpop.xlane.xlu0 %1726  ;;  %v2508_v24 = vmul.f32 0.020408163, %v10699_v22  ;;  %v2783_v22 = vld [vmem:[%s11160_s1 + $0x678] sm:$0xff]  ;;  %v5490_v3 = vsel %vm11226_vm11, %v5489_v10, %v5485_v2  ;;  %v5583_v55 = vrot.slane %v2509_v33, %v7264_v53  ;;  %vm11227_vm10 = vmmov %vm11226_vm11  ;;  %vm11228_vm0 = vcmask 786112   ;;  %v2777_v2 = vld [vmem:[%s11160_s1 + $0x648] sm:$0xff] }
 0x401   :  { %v2463_v58 = vmul.f32 0.020408163, %v1727_v29  ;;  %v2493_v62 = vmul.f32 0.020408163, %v1817_v11  ;;  %v5569_v63 = vsel %vm11227_vm10, %v5568_v36, %v5564_v15  ;;  %v5495_v32 = vsel %vm11228_vm0, %v5494_v34, %v5490_v3  ;;  %vm11229_vm9 = vmmov %vm11228_vm0  ;;  %v2796_v11 = vld [vmem:[%s11160_s1 + $0x6e0] sm:$0xff]  ;;  %v2779_v36 = vld [vmem:[%s11160_s1 + $0x658] sm:$0xff] }
 0x402   :  { %v5578_v48 = vrot.slane %v2508_v24, %v7270_v57  ;;  %v5574_v4 = vsel %vm11229_vm9, %v5573_v26, %v5569_v63  ;;  %vm11230_vm11 = vcmask 851712   ;;  %v11232_v33 = vld [vmem:[#allocation15_spill] sm:$0xff]  ;;  %v2792_v15 = vld [vmem:[%s11160_s1 + $0x6c0] sm:$0xff] }
 0x403   :  { %v5356_v37 = vrot.slane %v2463_v58, %v7289_v9  ;;  %v5504_v8 = vrot.slane %v2493_v62, %v7264_v53  ;;  %v5500_v54 = vsel %vm11230_vm11, %v5499_v46, %v5495_v32  ;;  %vm11231_vm10 = vmmov %vm11230_vm11  ;;  %v2830_v46 = vld [vmem:[%s11160_s1 + $0x7f0] sm:$0xff]  ;;  %v2828_v63 = vld [vmem:[%s11160_s1 + $0x7e0] sm:$0xff] }
 0x404   :  { %v1820_v5 = vpop.xlane.xlu1 %1819  ;;  %v1868_v51 = vpop.xlane.xlu0 %1867  ;;  %v5579_v29 = vsel %vm11231_vm10, %v5578_v48, %v5574_v4  ;;  %v2791_v32 = vld [vmem:[%s11160_s1 + $0x6b8] sm:$0xff] }
 0x405   :  { %v2494_v20 = vmul.f32 0.020408163, %v1820_v5  ;;  %v2510_v47 = vmul.f32 0.020408163, %v1868_v51  ;;  %v5357_v41 = vsel %vm3460_vm15, %v5356_v37, %v5352_v59  ;;  %v5505_v16 = vsel %vm3446_vm13, %v5504_v8, %v5500_v54  ;;  %v2794_v51 = vld [vmem:[%s11160_s1 + $0x6d0] sm:$0xff] }
 0x406   :  { %v5920_v23 = vsel %vm5911_vm12, %v5357_v41, %v11224_v40  ;;  %v5584_v58 = vsel %vm3446_vm13, %v5583_v55, %v5579_v29  ;;  %v2815_v41 = vld [vmem:[%s11160_s1 + $0x778] sm:$0xff]  ;;  %v2793_v40 = vld [vmem:[%s11160_s1 + $0x6c8] sm:$0xff] }
 0x407   :  { %6289 = vmatmul.mubr.f32.vlgmr.msra.gmra.mxu0 %v5920_v23  ;;  %v5509_v56 = vrot.slane %v2494_v20, %v7284_v6  ;;  %v5588_v17 = vrot.slane %v2510_v47, %v7284_v6  ;;  %v11233_v20 = vld [vmem:[#allocation16_spill] sm:$0xff]  ;;  %v2813_v55 = vld [vmem:[%s11160_s1 + $0x768] sm:$0xff] }
 0x408   :  { %v1823_v44 = vpop.xlane.xlu1 %1822  ;;  %6739 = vmatpush3.msra.mxu0 %v2783_v22  ;;  %v2778_v22 = vld [vmem:[%s11160_s1 + $0x650] sm:$0xff]  ;;  %v11234_v29 = vld [vmem:[#allocation8_spill] sm:$0xff] }
 0x409   :  { %v2495_v49 = vmul.f32 0.020408163, %v1823_v44  ;;  %v1871_v12 = vpop.xlane.xlu0 %1870  ;;  %6740 = vmatprep.subr.mxu0 %v2798_v31  ;;  %v5510_v25 = vsel %vm3453_vm14, %v5509_v56, %v5505_v16  ;;  %v5589_v62 = vsel %vm3453_vm14, %v5588_v17, %v5584_v58  ;;  %v2776_v56 = vld [vmem:[%s11160_s1 + $0x640] sm:$0xff] }
 0x40a   :  { %v2511_v30 = vmul.f32 0.020408163, %v1871_v12  ;;  %6741 = vmatpush3.msra.mxu0 %v2782_v50  ;;  %v2829_v50 = vld [vmem:[%s11160_s1 + $0x7e8] sm:$0xff]  ;;  %v2812_v12 = vld [vmem:[%s11160_s1 + $0x760] sm:$0xff] }
 0x40b   :  { %v5514_v43 = vrot.slane %v2495_v49, %v7289_v9  ;;  %6742 = vmatprep.subr.mxu0 %v2797_v28 }
 0x40c   :  { %v5593_v0 = vrot.slane %v2511_v30, %v7289_v9  ;;  %v1925_v21 = vpop.xlane.xlu1 %1924  ;;  %6743 = vmatpush3.msra.mxu0 %v2781_v52  ;;  %v2775_v52 = vld [vmem:[%s11160_s1 + $0x638] sm:$0xff] }
 0x40d   :  { %v2529_v45 = vmul.f32 0.020408163, %v1925_v21  ;;  %v1922_v24 = vpop.xlane.xlu0 %1921  ;;  %v5515_v37 = vsel %vm3460_vm15, %v5514_v43, %v5510_v25  ;;  %6744 = vmatprep.subr.mxu0 %v2796_v11  ;;  %v2827_v30 = vld [vmem:[%s11160_s1 + $0x7d8] sm:$0xff]  ;;  %v2790_v11 = vld [vmem:[%s11160_s1 + $0x6b0] sm:$0xff]  ;;  %v2789_v21 = vld [vmem:[%s11160_s1 + $0x6a8] sm:$0xff] }
 0x40e   :  { %v2528_v10 = vmul.f32 0.020408163, %v1922_v24  ;;  %v5594_v59 = vsel %vm3460_vm15, %v5593_v0, %v5589_v62  ;;  %v5922_v5 = vsel %vm5911_vm12, %v5515_v37, %v11232_v33  ;;  %6745 = vmatpush3.msra.mxu0 %v2780_v27  ;;  %v2811_v43 = vld [vmem:[%s11160_s1 + $0x758] sm:$0xff]  ;;  %v2774_v27 = vld [vmem:[%s11160_s1 + $0x630] sm:$0xff]  ;;  %v2773_v62 = vld [vmem:[%s11160_s1 + $0x628] sm:$0xff] }
 0x40f   :  { %v5681_v34 = vrot.slane %v2529_v45, %v11214_v1  ;;  %v5923_v47 = vsel %vm5911_vm12, %v5594_v59, %v11233_v20  ;;  %6746 = vmatprep.subr.mxu0 %v2795_v7  ;;  %v2826_v0 = vld [vmem:[%s11160_s1 + $0x7d0] sm:$0xff]  ;;  %v2788_v59 = vld [vmem:[%s11160_s1 + $0x6a0] sm:$0xff]  ;;  %v2809_v33 = vld [vmem:[%s11160_s1 + $0x748] sm:$0xff] }
 0x410   :  { %v5677_v13 = vrot.slane %v2528_v10, %v11215_v18  ;;  %6358 = vmatprep.mubr.f32.mxu1 %v5923_v47  ;;  %v1877_v26 = vpop.xlane.xlu1 %1876  ;;  %6747 = vmatpush3.msra.mxu0 %v2779_v36  ;;  %v2810_v24 = vld [vmem:[%s11160_s1 + $0x750] sm:$0xff]  ;;  %v2825_v10 = vld [vmem:[%s11160_s1 + $0x7c8] sm:$0xff] }
 0x411   :  { %v2513_v23 = vmul.f32 0.020408163, %v1877_v26  ;;  %6359 = vmatmul.mubr.f32.vlgmr.msra.gmra.mxu1 %v5922_v5  ;;  %v1874_v31 = vpop.xlane.xlu0 %1873  ;;  %6748 = vmatprep.subr.mxu0 %v2794_v51  ;;  %v2772_v5 = vld [vmem:[%s11160_s1 + $0x620] sm:$0xff] }
 0x412   :  { %v5682_v48 = vsel %vm3362_vm1, %v5681_v34, %v5677_v13  ;;  %v2512_v8 = vmul.f32 0.020408163, %v1874_v31  ;;  %6774 = vmatpush3.msra.mxu1 %v2815_v41  ;;  %6749 = vmatpush3.msra.mxu0 %v2778_v22  ;;  %v11235_v34 = vld [vmem:[#allocation6_spill] sm:$0xff]  ;;  %v2824_v41 = vld [vmem:[%s11160_s1 + $0x7c0] sm:$0xff]  ;;  %v2787_v22 = vld [vmem:[%s11160_s1 + $0x698] sm:$0xff] }
 0x413   :  { %v5602_v3 = vrot.slane %v2513_v23, %v11214_v1  ;;  %6775 = vmatprep.subr.mxu1 %v2830_v46  ;;  %6750 = vmatprep.subr.mxu0 %v2793_v40  ;;  %v2808_v46 = vld [vmem:[%s11160_s1 + $0x740] sm:$0xff]  ;;  %v2771_v40 = vld [vmem:[%s11160_s1 + $0x618] sm:$0xff] }
 0x414   :  { %v5598_v44 = vrot.slane %v2512_v8, %v11215_v18  ;;  %v1880_v28 = vpop.xlane.xlu1 %1879  ;;  %6776 = vmatpush3.msra.mxu1 %v2814_v38  ;;  %6751 = vmatpush3.msra.mxu0 %v2777_v2  ;;  %v2823_v38 = vld [vmem:[%s11160_s1 + $0x7b8] sm:$0xff]  ;;  %v2786_v2 = vld [vmem:[%s11160_s1 + $0x690] sm:$0xff] }
 0x415   :  { %v2514_v17 = vmul.f32 0.020408163, %v1880_v28  ;;  %v1928_v49 = vpop.xlane.xlu0 %1927  ;;  %6777 = vmatprep.subr.mxu1 %v2829_v50  ;;  %6752 = vmatprep.subr.mxu0 %v2792_v15  ;;  %v2807_v8 = vld [vmem:[%s11160_s1 + $0x738] sm:$0xff]  ;;  %v2770_v50 = vld [vmem:[%s11160_s1 + $0x610] sm:$0xff] }
 0x416   :  { %v5603_v4 = vsel %vm3362_vm1, %v5602_v3, %v5598_v44  ;;  %v2530_v54 = vmul.f32 0.020408163, %v1928_v49  ;;  %6778 = vmatpush3.msra.mxu1 %v2813_v55  ;;  %6753 = vmatpush3.msra.mxu0 %v2776_v56  ;;  %v2822_v56 = vld [vmem:[%s11160_s1 + $0x7b0] sm:$0xff]  ;;  %v2785_v44 = vld [vmem:[%s11160_s1 + $0x688] sm:$0xff] }
 0x417   :  { %v5607_v16 = vrot.slane %v2514_v17, %v11234_v29  ;;  %6779 = vmatprep.subr.mxu1 %v2828_v63  ;;  %6754 = vmatprep.subr.mxu0 %v2791_v32  ;;  %v2806_v32 = vld [vmem:[%s11160_s1 + $0x730] sm:$0xff]  ;;  %v2769_v17 = vld [vmem:[%s11160_s1 + $0x608] sm:$0xff] }
 0x418   :  { %v5686_v58 = vrot.slane %v2530_v54, %v11234_v29  ;;  %v2018_v25 = vpop.xlane.xlu1 %2017  ;;  %6780 = vmatpush3.msra.mxu1 %v2812_v12  ;;  %6755 = vmatpush3.msra.mxu0 %v2775_v52  ;;  %v2821_v52 = vld [vmem:[%s11160_s1 + $0x7a8] sm:$0xff] }
 0x419   :  { %v5608_v7 = vsel %vm3369_vm2, %v5607_v16, %v5603_v4  ;;  %v1931_v45 = vpop.xlane.xlu0 %1930  ;;  %6781 = vmatprep.subr.mxu1 %v2827_v30  ;;  %6756 = vmatprep.subr.mxu0 %v2790_v11  ;;  %v2560_v51 = vmul.f32 0.020408163, %v2018_v25  ;;  %v2784_v4 = vld [vmem:[%s11160_s1 + $0x680] sm:$0xff]  ;;  %v2805_v54 = vld [vmem:[%s11160_s1 + $0x728] sm:$0xff] }
 0x41a   :  { %v5687_v37 = vsel %vm3369_vm2, %v5686_v58, %v5682_v48  ;;  %v2531_v36 = vmul.f32 0.020408163, %v1931_v45  ;;  %6782 = vmatpush3.msra.mxu1 %v2811_v43  ;;  %6757 = vmatpush3.msra.mxu0 %v2774_v27  ;;  %v2768_v30 = vld [vmem:[%s11160_s1 + $0x600] sm:$0xff] }
 0x41b   :  { %6783 = vmatprep.subr.mxu1 %v2826_v0  ;;  %6758 = vmatprep.subr.mxu0 %v2789_v21  ;;  %v5835_v15 = vrot.slane %v2560_v51, %v11215_v18  ;;  %v11236_v16 = vld [vmem:[#allocation9_spill] sm:$0xff] }
 0x41c   :  { %v5691_v20 = vrot.slane %v2531_v36, %v11235_v34  ;;  %v1883_v47 = vpop.xlane.xlu1 %1882  ;;  %6784 = vmatpush3.msra.mxu1 %v2810_v24  ;;  %6759 = vmatpush3.msra.mxu0 %v2773_v62  ;;  %v2820_v58 = vld [vmem:[%s11160_s1 + $0x7a0] sm:$0xff]  ;;  %v2819_v24 = vld [vmem:[%s11160_s1 + $0x798] sm:$0xff] }
 0x41d   :  { %v2515_v13 = vmul.f32 0.020408163, %v1883_v47  ;;  %v2021_v26 = vpop.xlane.xlu0 %2020  ;;  %6785 = vmatprep.subr.mxu1 %v2825_v10  ;;  %6760 = vmatprep.subr.mxu0 %v2788_v59  ;;  %v2804_v21 = vld [vmem:[%s11160_s1 + $0x720] sm:$0xff]  ;;  %v2802_v47 = vld [vmem:[%s11160_s1 + $0x710] sm:$0xff] }
 0x41e   :  { %v5692_v23 = vsel %vm3376_vm3, %v5691_v20, %v5687_v37  ;;  %v2561_v31 = vmul.f32 0.020408163, %v2021_v26  ;;  %6786 = vmatpush3.msra.mxu1 %v2809_v33  ;;  %6761 = vmatpush3.msra.mxu0 %v2772_v5  ;;  %v2803_v37 = vld [vmem:[%s11160_s1 + $0x718] sm:$0xff]  ;;  %v2818_v33 = vld [vmem:[%s11160_s1 + $0x790] sm:$0xff] }
 0x41f   :  { %v5612_v48 = vrot.slane %v2515_v13, %v11235_v34  ;;  %6787 = vmatprep.subr.mxu1 %v2824_v41  ;;  %6762 = vmatprep.subr.mxu0 %v2787_v22  ;;  %v2801_v13 = vld [vmem:[%s11160_s1 + $0x708] sm:$0xff] }
 0x420   :  { %v5839_v3 = vrot.slane %v2561_v31, %v11214_v1  ;;  %v1970_v55 = vpop.xlane.xlu1 %1969  ;;  %6788 = vmatpush3.msra.mxu1 %v2808_v46  ;;  %6763 = vmatpush3.msra.mxu0 %v2771_v40  ;;  %v2816_v40 = vld [vmem:[%s11160_s1 + $0x780] sm:$0xff] }
 0x421   :  { %v5613_v28 = vsel %vm3376_vm3, %v5612_v48, %v5608_v7  ;;  %v1934_v63 = vpop.xlane.xlu0 %1933  ;;  %6789 = vmatprep.subr.mxu1 %v2823_v38  ;;  %6764 = vmatprep.subr.mxu0 %v2786_v2  ;;  %v2544_v11 = vmul.f32 0.020408163, %v1970_v55  ;;  %v2800_v2 = vld [vmem:[%s11160_s1 + $0x700] sm:$0xff] }
 0x422   :  { %v5840_v49 = vsel %vm3362_vm1, %v5839_v3, %v5835_v15  ;;  %v2532_v12 = vmul.f32 0.020408163, %v1934_v63  ;;  %6790 = vmatpush3.msra.mxu1 %v2807_v8  ;;  %6765 = vmatpush3.msra.mxu0 %v2770_v50 }
 0x423   :  { %6791 = vmatprep.subr.mxu1 %v2822_v56  ;;  %6766 = vmatprep.subr.mxu0 %v2785_v44  ;;  %v5756_v36 = vrot.slane %v2544_v11, %v11215_v18 }
 0x424   :  { %v5696_v43 = vrot.slane %v2532_v12, %v11236_v16  ;;  %v2024_v27 = vpop.xlane.xlu1 %2023  ;;  %6792 = vmatpush3.msra.mxu1 %v2806_v32  ;;  %6767 = vmatpush3.msra.mxu0 %v2769_v17 }
 0x425   :  { %v2562_v25 = vmul.f32 0.020408163, %v2024_v27  ;;  %v1973_v0 = vpop.xlane.xlu0 %1972  ;;  %6793 = vmatprep.subr.mxu1 %v2821_v52  ;;  %6768 = vmatprep.subr.mxu0 %v2784_v4 }
 0x426   :  { %v5697_v7 = vsel %vm3383_vm4, %v5696_v43, %v5692_v23  ;;  %v2545_v45 = vmul.f32 0.020408163, %v1973_v0  ;;  %6794 = vmatpush3.msra.mxu1 %v2805_v54  ;;  %6769 = vmatpush3.msra.mxu0 %v2768_v30 }
 0x427   :  { %v5844_v62 = vrot.slane %v2562_v25, %v11234_v29  ;;  %6795 = vmatprep.subr.mxu1 %v2820_v58 }
 0x428   :  { %v5760_v10 = vrot.slane %v2545_v45, %v11214_v1  ;;  %v1937_v59 = vpop.xlane.xlu1 %1936  ;;  %6796 = vmatpush3.msra.mxu1 %v2804_v21  ;;  %v2817_v1 = vld [vmem:[%s11160_s1 + $0x788] sm:$0xff] }
 0x429   :  { %v5845_v5 = vsel %vm3369_vm2, %v5844_v62, %v5840_v49  ;;  %v2533_v51 = vmul.f32 0.020408163, %v1937_v59  ;;  %v1886_v20 = vpop.xlane.xlu0 %1885  ;;  %6797 = vmatprep.subr.mxu1 %v2819_v24 }
 0x42a   :  { %v5761_v41 = vsel %vm3362_vm1, %v5760_v10, %v5756_v36  ;;  %v2516_v18 = vmul.f32 0.020408163, %v1886_v20  ;;  %6798 = vmatpush3.msra.mxu1 %v2803_v37  ;;  %vm11237_vm1 = vcmask 654912  }
 0x42b   :  { %v5701_v22 = vrot.slane %v2533_v51, %v7181_v42  ;;  %6799 = vmatprep.subr.mxu1 %v2818_v33  ;;  %vm11248_vm9 = vmmov %vm11237_vm1 }
 0x42c   :  { %v5617_v26 = vrot.slane %v2516_v18, %v11236_v16  ;;  %v2027_v46 = vpop.xlane.xlu1 %2026  ;;  %6800 = vmatpush3.msra.mxu1 %v2802_v47 }
 0x42d   :  { %v11015_v23 = vsel %vm3390_vm5, %v5701_v22, %v5697_v7  ;;  %v2563_v31 = vmul.f32 0.020408163, %v2027_v46  ;;  %v1976_v38 = vpop.xlane.xlu0 %1975  ;;  %6801 = vmatprep.subr.mxu1 %v2817_v1 }
 0x42e   :  { %v5618_v48 = vsel %vm3383_vm4, %v5617_v26, %v5613_v28  ;;  %v2546_v8 = vmul.f32 0.020408163, %v1976_v38  ;;  %6802 = vmatpush3.msra.mxu1 %v2801_v13 }
 0x42f   :  { %v5849_v50 = vrot.slane %v2563_v31, %v11235_v34  ;;  %6803 = vmatprep.subr.mxu1 %v2816_v40 }
 0x430   :  { %v5765_v15 = vrot.slane %v2546_v8, %v11234_v29  ;;  %v1940_v3 = vpop.xlane.xlu1 %1939  ;;  %6804 = vmatpush3.msra.mxu1 %v2800_v2 }
 0x431   :  { %v5850_v55 = vsel %vm3376_vm3, %v5849_v50, %v5845_v5  ;;  %v1889_v56 = vpop.xlane.xlu0 %1888  ;;  %v2534_v38 = vmul.f32 0.020408163, %v1940_v3 }
 0x432   :  { %v5766_v44 = vsel %vm3369_vm2, %v5765_v15, %v5761_v41  ;;  %v2517_v63 = vmul.f32 0.020408163, %v1889_v56  ;;  %vm11238_vm2 = vcmask 720512  }
 0x434   :  { %v5622_v32 = vrot.slane %v2517_v63, %v7181_v42  ;;  %v2030_v17 = vpop.xlane.xlu1 %2029 }
 0x435   :  { %v2564_v49 = vmul.f32 0.020408163, %v2030_v17  ;;  %v1979_v28 = vpop.xlane.xlu0 %1978 }
 0x436   :  { %v11027_v12 = vsel %vm3390_vm5, %v5622_v32, %v5618_v48  ;;  %v2547_v52 = vmul.f32 0.020408163, %v1979_v28 }
 0x437   :  { %v5854_v4 = vrot.slane %v2564_v49, %v11236_v16 }
 0x438   :  { %v5770_v29 = vrot.slane %v2547_v52, %v11235_v34  ;;  %v1943_v54 = vpop.xlane.xlu1 %1942 }
 0x439   :  { %v5855_v30 = vsel %vm3383_vm4, %v5854_v4, %v5850_v55  ;;  %v1892_v11 = vpop.xlane.xlu0 %1891  ;;  %v2535_v48 = vmul.f32 0.020408163, %v1943_v54  ;;  %v5706_v55 = vrot.slane %v2534_v38, %v7206_v61 }
 0x43a   :  { %v5771_v43 = vsel %vm3376_vm3, %v5770_v29, %v5766_v44  ;;  %v2518_v8 = vmul.f32 0.020408163, %v1892_v11  ;;  %vm11239_vm3 = vmmov %vm11228_vm0 }
 0x43b   :  { %v5711_v32 = vrot.slane %v2535_v48, %v7203_v60  ;;  %v5707_v54 = vsel %vm3397_vm6, %v5706_v55, %v11015_v23  ;;  %vm11243_vm0 = vmmov %vm11238_vm2 }
 0x43c   :  { %v2033_v27 = vpop.xlane.xlu1 %2032  ;;  %v5627_v49 = vrot.slane %v2518_v8, %v7206_v61  ;;  %vm11249_vm11 = vmmov %vm11243_vm0 }
 0x43d   :  { %v2565_v58 = vmul.f32 0.020408163, %v2033_v27  ;;  %v1982_v25 = vpop.xlane.xlu0 %1981 }
 0x43e   :  { %v2548_v0 = vmul.f32 0.020408163, %v1982_v25 }
 0x43f   :  { %v5859_v21 = vrot.slane %v2565_v58, %v7181_v42  ;;  %v5712_v58 = vsel %vm3404_vm7, %v5711_v32, %v5707_v54 }
 0x440   :  { %v5775_v7 = vrot.slane %v2548_v0, %v11236_v16  ;;  %v1946_v45 = vpop.xlane.xlu1 %1945 }
 0x441   :  { %v5860_v24 = vsel %vm3390_vm5, %v5859_v21, %v5855_v30  ;;  %v1895_v62 = vpop.xlane.xlu0 %1894  ;;  %v2536_v50 = vmul.f32 0.020408163, %v1946_v45  ;;  %v5628_v21 = vsel %vm3397_vm6, %v5627_v49, %v11027_v12 }
 0x442   :  { %v5776_v34 = vsel %vm3383_vm4, %v5775_v7, %v5771_v43  ;;  %v2519_v56 = vmul.f32 0.020408163, %v1895_v62  ;;  %vm11240_vm4 = vmmov %vm11231_vm10 }
 0x443   :  { %v5716_v52 = vrot.slane %v2536_v50, %v7230_v19  ;;  %vm11250_vm10 = vmmov %vm11243_vm0 }
 0x444   :  { %v2036_v37 = vpop.xlane.xlu1 %2035  ;;  %v5632_v30 = vrot.slane %v2519_v56, %v7203_v60 }
 0x445   :  { %v1985_v36 = vpop.xlane.xlu0 %1984  ;;  %v2566_v44 = vmul.f32 0.020408163, %v2036_v37  ;;  %v5717_v23 = vsel %vm3411_vm8, %v5716_v52, %v5712_v58 }
 0x446   :  { %v2549_v17 = vmul.f32 0.020408163, %v1985_v36 }
 0x447   :  { %v5864_v11 = vrot.slane %v2566_v44, %v7206_v61 }
 0x448   :  { %v1949_v10 = vpop.xlane.xlu1 %1948  ;;  %v5780_v25 = vrot.slane %v2549_v17, %v7181_v42 }
 0x449   :  { %v1898_v59 = vpop.xlane.xlu0 %1897  ;;  %v2537_v28 = vmul.f32 0.020408163, %v1949_v10  ;;  %v5865_v42 = vsel %vm3397_vm6, %v5864_v11, %v5860_v24 }
 0x44a   :  { %v2520_v3 = vmul.f32 0.020408163, %v1898_v59  ;;  %v5781_v38 = vsel %vm3390_vm5, %v5780_v25, %v5776_v34  ;;  %vm11241_vm5 = vmmov %vm11237_vm1 }
 0x44b   :  { %v5721_v7 = vrot.slane %v2537_v28, %v7224_v14 }
 0x44c   :  { %v2039_v33 = vpop.xlane.xlu1 %2038  ;;  %v5637_v45 = vrot.slane %v2520_v3, %v7230_v19 }
 0x44d   :  { %v1988_v5 = vpop.xlane.xlu0 %1987  ;;  %v2567_v37 = vmul.f32 0.020408163, %v2039_v33  ;;  %v5722_v33 = vsel %vm11237_vm1, %v5721_v7, %v5717_v23 }
 0x44f   :  { %v5869_v44 = vrot.slane %v2567_v37, %v7203_v60 }
 0x450   :  { %v1952_v51 = vpop.xlane.xlu1 %1951 }
 0x451   :  { %v1901_v20 = vpop.xlane.xlu0 %1900  ;;  %v2538_v4 = vmul.f32 0.020408163, %v1952_v51  ;;  %v5633_v51 = vsel %vm3404_vm7, %v5632_v30, %v5628_v21  ;;  %v5870_v25 = vsel %vm3404_vm7, %v5869_v44, %v5865_v42 }
 0x452   :  { %v2521_v48 = vmul.f32 0.020408163, %v1901_v20  ;;  %v5638_v50 = vsel %vm3411_vm8, %v5637_v45, %v5633_v51 }
 0x453   :  { %v5726_v36 = vrot.slane %v2538_v4, %v7250_v39 }
 0x454   :  { %v2042_v47 = vpop.xlane.xlu1 %2041  ;;  %v5642_v3 = vrot.slane %v2521_v48, %v7224_v14 }
 0x455   :  { %v1991_v41 = vpop.xlane.xlu0 %1990  ;;  %v5727_v24 = vsel %vm11238_vm2, %v5726_v36, %v5722_v33 }
 0x456   :  { %v2551_v55 = vmul.f32 0.020408163, %v1991_v41  ;;  %v5643_v7 = vsel %vm11241_vm5, %v5642_v3, %v5638_v50 }
 0x458   :  { %v1955_v18 = vpop.xlane.xlu1 %1954 }
 0x459   :  { %v1904_v1 = vpop.xlane.xlu0 %1903  ;;  %v2539_v43 = vmul.f32 0.020408163, %v1955_v18  ;;  %v2550_v18 = vmul.f32 0.020408163, %v1988_v5 }
 0x45a   :  { %v2522_v5 = vmul.f32 0.020408163, %v1904_v1  ;;  %v5790_v1 = vrot.slane %v2551_v55, %v7203_v60 }
 0x45b   :  { %v5731_v12 = vrot.slane %v2539_v43, %v7244_v35  ;;  %v5785_v34 = vrot.slane %v2550_v18, %v7206_v61 }
 0x45c   :  { %v11037_v22 = vpop.xlane.xlu1 %2044 }
 0x45d   :  { %v1994_v16 = vpop.xlane.xlu0 %1993  ;;  %v5732_v20 = vsel %vm11239_vm3, %v5731_v12, %v5727_v24  ;;  %v2569_v30 = vmul.f32 0.020408163, %v11037_v22 }
 0x460   :  { %v1958_v13 = vpop.xlane.xlu1 %1957 }
 0x461   :  { %v11039_v26 = vpop.xlane.xlu0 %1906  ;;  %v2540_v0 = vmul.f32 0.020408163, %v1958_v13 }
 0x462   :  { %v2523_v4 = vmul.f32 0.020408163, %v11039_v26 }
 0x463   :  { %v5736_v8 = vrot.slane %v2540_v0, %v7270_v57 }
 0x464   :  { %v11041_v46 = vpop.xlane.xlu1 %2047  ;;  %v5652_v45 = vrot.slane %v2523_v4, %v7244_v35 }
 0x465   :  { %v11043_v40 = vpop.xlane.xlu0 %1996  ;;  %v5737_v52 = vsel %vm11240_vm4, %v5736_v8, %v5732_v20 }
 0x466   :  { %v2553_v37 = vmul.f32 0.020408163, %v11043_v40 }
 0x468   :  { %v1961_v31 = vpop.xlane.xlu1 %1960 }
 0x469   :  { %v11045_v2 = vpop.xlane.xlu0 %1909  ;;  %v2541_v62 = vmul.f32 0.020408163, %v1961_v31  ;;  %v2568_v31 = vmul.f32 0.020408163, %v2042_v47  ;;  %v2552_v47 = vmul.f32 0.020408163, %v1994_v16  ;;  %v5647_v16 = vrot.slane %v2522_v5, %v7250_v39 }
 0x46a   :  { %v2524_v54 = vmul.f32 0.020408163, %v11045_v2  ;;  %v5786_v2 = vsel %vm3397_vm6, %v5785_v34, %v5781_v38  ;;  %v2570_v38 = vmul.f32 0.020408163, %v11041_v46  ;;  %vm11244_vm6 = vmmov %vm11239_vm3 }
 0x46b   :  { %v5741_v56 = vrot.slane %v2541_v62, %v7264_v53  ;;  %v5874_v41 = vrot.slane %v2568_v31, %v7230_v19  ;;  %v5795_v26 = vrot.slane %v2552_v47, %v7230_v19  ;;  %v11242_v62 = vld [vmem:[#allocation18_spill] sm:$0xff]  ;;  %v5791_v23 = vsel %vm3404_vm7, %v5790_v1, %v5786_v2  ;;  %vm11245_vm7 = vmmov %vm11240_vm4 }
 0x46c   :  { %v11047_v15 = vpop.xlane.xlu1 %2050  ;;  %v5657_v19 = vrot.slane %v2524_v54, %v7270_v57  ;;  %v5648_v36 = vsel %vm11243_vm0, %v5647_v16, %v5643_v7  ;;  %v5884_v34 = vrot.slane %v2570_v38, %v7250_v39 }
 0x46d   :  { %v11050_v63 = vpop.xlane.xlu0 %1999  ;;  %v5796_v12 = vsel %vm3411_vm8, %v5795_v26, %v5791_v23  ;;  %v5653_v8 = vsel %vm11244_vm6, %v5652_v45, %v5648_v36  ;;  %v2571_v33 = vmul.f32 0.020408163, %v11047_v15  ;;  %v6560_v36 = vpop.f32.mrf.mxu0 }
 0x46e   :  { %v2554_v51 = vmul.f32 0.020408163, %v11050_v63  ;;  %v5658_v63 = vsel %vm11245_vm7, %v5657_v19, %v5653_v8 }
 0x470   :  { %v1964_v29 = vpop.xlane.xlu1 %1963  ;;  %v5805_v5 = vrot.slane %v2554_v51, %v7250_v39  ;;  %v11247_v39 = vld [vmem:[#allocation17_spill] sm:$0xff]  ;;  %v6595_v51 = vpop.f32.mrf.mxu1 }
 0x471   :  { %v1913_v27 = vpop.xlane.xlu0 %1912  ;;  %v2542_v10 = vmul.f32 0.020408163, %v1964_v29  ;;  %v5742_v29 = vsel %vm3446_vm13, %v5741_v56, %v5737_v52  ;;  %v5800_v56 = vrot.slane %v2553_v37, %v7224_v14  ;;  %v11256_v37 = vld [vmem:[#allocation20_spill] sm:$0xff] }
 0x472   :  { %v2525_v11 = vmul.f32 0.020408163, %v1913_v27  ;;  %v5875_v27 = vsel %vm3411_vm8, %v5874_v41, %v5870_v25  ;;  %vm11246_vm8 = vmmov %vm11237_vm1 }
 0x473   :  { %v5746_v32 = vrot.slane %v2542_v10, %v7284_v6  ;;  %v5879_v10 = vrot.slane %v2569_v30, %v7224_v14  ;;  %v5801_v41 = vsel %vm11246_vm8, %v5800_v56, %v5796_v12  ;;  %vm11251_vm1 = vmmov %vm11239_vm3 }
 0x474   :  { %v11067_v59 = vpop.xlane.xlu1 %2053  ;;  %v5662_v42 = vrot.slane %v2525_v11, %v7264_v53  ;;  %v5806_v54 = vsel %vm11249_vm11, %v5805_v5, %v5801_v41  ;;  %vm11252_vm2 = vmmov %vm11251_vm1 }
 0x475   :  { %v2003_v13 = vpop.xlane.xlu0 %2002  ;;  %v5747_v58 = vsel %vm3453_vm14, %v5746_v32, %v5742_v29  ;;  %v2572_v44 = vmul.f32 0.020408163, %v11067_v59  ;;  %v5880_v29 = vsel %vm11248_vm9, %v5879_v10, %v5875_v27  ;;  %vm11253_vm3 = vmmov %vm11240_vm4  ;;  %v11255_v27 = vld [vmem:[#allocation19_spill] sm:$0xff]  ;;  %v6561_v10 = vpop.f32.mrf.mxu0 }
 0x476   :  { %v2555_v48 = vmul.f32 0.020408163, %v2003_v13  ;;  %v5663_v46 = vsel %vm3446_vm13, %v5662_v42, %v5658_v63  ;;  %v5885_v30 = vsel %vm11250_vm10, %v5884_v34, %v5880_v29  ;;  %vm11254_vm4 = vmmov %vm11253_vm3 }
 0x477   :  { %v5894_v52 = vrot.slane %v2572_v44, %v7270_v57  ;;  %v6630_v42 = vpop.f32.mrf.mxu0 }
 0x478   :  { %v1967_v17 = vpop.xlane.xlu1 %1966  ;;  %v5810_v15 = vrot.slane %v2555_v48, %v7244_v35  ;;  %v6562_v48 = vadd.f32 %v6561_v10, %v6560_v36 }
 0x479   :  { %v2543_v49 = vmul.f32 0.020408163, %v1967_v17  ;;  %v1916_v28 = vpop.xlane.xlu0 %1915 }
 0x47a   :  { %v2526_v0 = vmul.f32 0.020408163, %v1916_v28  ;;  %v5811_v11 = vsel %vm11251_vm1, %v5810_v15, %v5806_v54 }
 0x47b   :  { %v5751_v61 = vrot.slane %v2543_v49, %v7289_v9  ;;  %v5889_v49 = vrot.slane %v2571_v33, %v7244_v35 }
 0x47c   :  { %v2057_v43 = vpop.xlane.xlu1 %2056  ;;  %v5667_v31 = vrot.slane %v2526_v0, %v7284_v6 }
 0x47d   :  { %v2006_v60 = vpop.xlane.xlu0 %2005  ;;  %v5752_v21 = vsel %vm3460_vm15, %v5751_v61, %v5747_v58  ;;  %v2573_v13 = vmul.f32 0.020408163, %v2057_v43  ;;  %v5890_v25 = vsel %vm11252_vm2, %v5889_v49, %v5885_v30 }
 0x47e   :  { %v5925_v22 = vsel %vm5911_vm12, %v5752_v21, %v11242_v62  ;;  %v2556_v50 = vmul.f32 0.020408163, %v2006_v60  ;;  %v5668_v20 = vsel %vm3453_vm14, %v5667_v31, %v5663_v46  ;;  %v5895_v60 = vsel %vm11254_vm4, %v5894_v52, %v5890_v25  ;;  %v6526_v31 = vld [vmem:[%s11161_s2] ss:$0 sm:$0xff]  ;;  %s6835_s2 = smov [#allocation2]  }
 0x47f   :  { %6428 = vmatprep.mubr.f32.mxu0 %v5925_v22  ;;  %v5899_v35 = vrot.slane %v2573_v13, %v7264_v53  ;;  %s6518_s5 = sshll.u32 %s6835_s2, 4  ;;  %s6519_s5 = int_to_ptr.vmem [resolvable:$true] %s6518_s5 }
 0x480   :  { %v2009_v18 = vpop.xlane.xlu1 %2008  ;;  %v5815_v59 = vrot.slane %v2556_v50, %v7270_v57  ;;  %s6813_s6 = scalar_lea.vmem %s6519_s5, 32  ;;  %p6818_p1 = scmp.lt.s32.totalorder %s6519_s5, %s6519_s5 }
 0x481   :  { %v1919_v40 = vpop.xlane.xlu0 %1918  ;;  %v2557_v24 = vmul.f32 0.020408163, %v2009_v18  ;;  %v5900_v2 = vsel %vm3446_vm13, %v5899_v35, %v5895_v60  ;;  %v6596_v18 = vpop.f32.mrf.mxu1  ;;  %p6814_p0 = scmp.ne.s32.totalorder %s6519_s5, %s6813_s6  ;;  %p6819_p2 = scmp.lt.s32.totalorder %s6813_s6, %s6813_s6 }
 0x482   :  { %v2527_v55 = vmul.f32 0.020408163, %v1919_v40  ;;  %v5816_v26 = vsel %vm11253_vm3, %v5815_v59, %v5811_v11  ;;  %v6597_v8 = vadd.f32 %v6596_v18, %v6595_v51 }
 0x483   :  { %v5820_v4 = vrot.slane %v2557_v24, %v7264_v53  ;;  %v6665_v12 = vpop.f32.mrf.mxu1  ;;  %p6820_p3 = por %p6819_p2, %p6818_p1 }
 0x484   :  { %v5672_v32 = vrot.slane %v2527_v55, %v7289_v9  ;;  %v2012_v17 = vpop.xlane.xlu1 %2011  ;;  %v6011_v55 = vadd.f32 %v6562_v48, %v6526_v31 }
 0x485   :  { %v2558_v14 = vmul.f32 0.020408163, %v2012_v17  ;;  %v2060_v47 = vpop.xlane.xlu0 %2059  ;;  %v5821_v53 = vsel %vm3446_vm13, %v5820_v4, %v5816_v26  ;;  %v6666_v40 = vpop.f32.mrf.mxu1  ;;  %p6821_p4 = pnand %p6820_p3, %p6814_p0 }
 0x486   :  { %v2574_v28 = vmul.f32 0.020408163, %v2060_v47  ;;  %v5673_v3 = vsel %vm3460_vm15, %v5672_v32, %v5668_v20  ;;  %v6081_v44 = vadd.f32 %v6597_v8, %v6011_v55  ;;  %v6667_v24 = vadd.f32 %v6666_v40, %v6665_v12 }
 0x487   :  { %v5924_v1 = vsel %vm5911_vm12, %v5673_v3, %v11247_v39  ;;  %v5825_v61 = vrot.slane %v2558_v14, %v7284_v6 }
 0x488   :  { %6429 = vmatmul.mubr.f32.vlgmr.msra.gmra.mxu0 %v5924_v1  ;;  %v2015_v16 = vpop.xlane.xlu1 %2014  ;;  %v5904_v57 = vrot.slane %v2574_v28, %v7284_v6 }
 0x489   :  { %v2559_v43 = vmul.f32 0.020408163, %v2015_v16  ;;  %v2063_v58 = vpop.xlane.xlu0 %2062  ;;  %v5826_v7 = vsel %vm3453_vm14, %v5825_v61, %v5821_v53 }
 0x48a   :  { %v2575_v0 = vmul.f32 0.020408163, %v2063_v58  ;;  %v5905_v6 = vsel %vm3453_vm14, %v5904_v57, %v5900_v2 }
 0x48b   :  { %v5830_v21 = vrot.slane %v2559_v43, %v7289_v9 }
 0x48c   :  { %v5909_v45 = vrot.slane %v2575_v0, %v7289_v9  ;;  %v6631_v9 = vpop.f32.mrf.mxu0 }
 0x48d   :  { %v5831_v62 = vsel %vm3460_vm15, %v5830_v21, %v5826_v7  ;;  %v6632_v56 = vadd.f32 %v6631_v9, %v6630_v42 }
 0x48e   :  { %v5910_v22 = vsel %vm3460_vm15, %v5909_v45, %v5905_v6  ;;  %v5926_v23 = vsel %vm5911_vm12, %v5831_v62, %v11255_v27 }
 0x48f   :  { %v5927_v19 = vsel %vm5911_vm12, %v5910_v22, %v11256_v37  ;;  %v6151_v46 = vadd.f32 %v6632_v56, %v6081_v44  ;;  %vm6510_vm12 = vcmask 74752  }
 0x490   :  { %6498 = vmatprep.mubr.f32.mxu1 %v5927_v19 }
 0x491   :  { %6499 = vmatmul.mubr.f32.vlgmr.msra.gmra.mxu1 %v5926_v23  ;;  %v6221_v17 = vadd.f32 %v6667_v24, %v6151_v46 }
 0x4c7   :  { %v6700_v38 = vpop.f32.mrf.mxu0 }
 0x4c9   :  { %v6701_v33 = vpop.f32.mrf.mxu0 }
 0x4ca   :  { %v6702_v13 = vadd.f32 %v6701_v33, %v6700_v38 }
 0x4cc   :  { %v6291_v15 = vadd.f32 %v6702_v13, %v6221_v17 }
 0x4d1   :  { %v6735_v50 = vpop.f32.mrf.mxu1 }
 0x4d3   :  { %v6736_v5 = vpop.f32.mrf.mxu1 }
 0x4d4   :  { %v6737_v34 = vadd.f32 %v6736_v5, %v6735_v50 }
 0x4d6   :  { %v6361_v47 = vadd.f32 %v6737_v34, %v6291_v15 }
 0x548   :  { %v6770_v63 = vpop.f32.mrf.mxu0 }
 0x54a   :  { %v6771_v32 = vpop.f32.mrf.mxu0 }
 0x54b   :  { %v6772_v20 = vadd.f32 %v6771_v32, %v6770_v63 }
 0x54d   :  { %v6431_v59 = vadd.f32 %v6772_v20, %v6361_v47 }
 0x551   :  { %v6805_v14 = vpop.f32.mrf.mxu1 }
 0x553   :  { %v6806_v49 = vpop.f32.mrf.mxu1 }
 0x554   :  { %v6807_v28 = vadd.f32 %v6806_v49, %v6805_v14 }
 0x556   :  { %v6501_v3 = vadd.f32 %v6807_v28, %v6431_v59 }
 0x558   :  { %v6527_v41 = vmul.f32 -1.442695, %v6501_v3 }
 0x55a   :  { %6809 = vpow2.f32 %v6527_v41 }
 0x567   :  { %v6810_v52 = vpop.eup %6809 }
 0x568   :  { %v6507_v4 = vadd.f32 1.0, %v6810_v52 }
 0x56a   :  { %6811 = vrcp.f32 %v6507_v4 }
 0x577   :  { %v6812_v39 = vpop.eup %6811 }
 0x578   :  { %6511 = vst.msk [vmem:[#allocation2] sm:$0x3] %vm6510_vm12, %v6812_v39 }
 0x579   :  { %6824 = shalt.err (!%p6821_p4)
}
 0x57a   :  { %6521 = dma.vmem_to_hbm [thread:$0]  %s6519_s5, 32, %s11162_s3, [#allocation3]  }
 0x57b   :  { %6833 = dma.done.wait [#allocation3], 32  }
 0x57c   :  { %6834 = vsyncadd [#allocation3], 4294967264 }
 0x57d   :  { %6525 = vsyncpa [#allocation3], 1 }

</bundles_post_ra>
